<compile_context>
chip_gen: v5e
topology: v5e:2x2
jax: 0.10.0
libtpu: 0.0.40
codegen_flags: <defaults>
</compile_context>

<pallas_src>
import math
import jax
import jax.numpy as jnp
from jax.experimental import pallas as pl
from jax.experimental.pallas import tpu as pltpu

HIDDEN = 64
TILE_N = 256   # multiple of 128 -> full-width vst; (64, 256) f32 intermediate fits vregs


def dfnn_kernel(t_ref, w1_ref, b1_ref, w2_ref, c_ref, o_ref):
    t = t_ref[...]                                          # (1, TILE_N)
    # affine1 + sin: (H,1) broadcast against (1, TILE_N) -> (H, TILE_N)
    h = jnp.sin(w1_ref[...] * t + b1_ref[...])              # EUP sin, lane-dense
    # affine2: weighted reduce over the hidden (sublane) axis -> (1, TILE_N)
    y = jnp.sum(h * w2_ref[...], axis=0, keepdims=True)
    # augment + folded biases (wa, b2 + ba) held in one tiny resident operand
    wa = c_ref[0:1, 0:1]                                    # (1, 1)
    cc = c_ref[0:1, 1:2]                                    # (1, 1) = b2 + ba
    o_ref[...] = (y + t * wa + cc).astype(o_ref.dtype)


def dfnn_forward(t, w1, b1, w2, b2, wa, ba, *, tile_n=TILE_N):
    """t: (N,1). w1: affine1.weight (H,1), b1: affine1.bias (H,),
    w2: affine2.weight (1,H), b2: (1,), wa: augment.weight (1,1), ba: (1,)."""
    N = t.shape[0]
    H = w1.shape[0]
    n_pad = pl.cdiv(N, tile_n) * tile_n
    grid = (n_pad // tile_n,)

    # Lane-dense input row (pad tail with zeros; sliced off after the call).
    t_row = jnp.pad(t.reshape(1, N).astype(jnp.float32), ((0, 0), (0, n_pad - N)))
    # Column-layout params (H on sublanes, broadcast across lanes).
    w1_col = w1.reshape(H, 1).astype(jnp.float32)
    b1_col = b1.reshape(H, 1).astype(jnp.float32)
    w2_col = w2.reshape(H, 1).astype(jnp.float32)
    # Fold the scalar constants: [augment.weight, affine2.bias + augment.bias]
    consts = jnp.stack([wa.reshape(()), b2.reshape(()) + ba.reshape(())]).reshape(1, 2)
    consts = consts.astype(jnp.float32)

    out = pl.pallas_call(
        dfnn_kernel,
        out_shape=jax.ShapeDtypeStruct((1, n_pad), jnp.float32),
        grid=grid,
        in_specs=[
            pl.BlockSpec((1, tile_n), lambda i: (0, i)),    # t tile
            pl.BlockSpec((H, 1), lambda i: (0, 0)),         # w1 (resident)
            pl.BlockSpec((H, 1), lambda i: (0, 0)),         # b1 (resident)
            pl.BlockSpec((H, 1), lambda i: (0, 0)),         # w2 (resident)
            pl.BlockSpec((1, 2), lambda i: (0, 0)),         # [wa, b2+ba] (resident)
        ],
        out_specs=pl.BlockSpec((1, tile_n), lambda i: (0, i)),
        compiler_params=pltpu.CompilerParams(
            dimension_semantics=("parallel",),              # megacore sharding on v7x
        ),
        cost_estimate=pl.CostEstimate(
            flops=4 * H * n_pad + 3 * n_pad,
            transcendentals=H * n_pad,
            bytes_accessed=4 * (2 * n_pad + 3 * H + 2),
        ),
    )(t_row, w1_col, b1_col, w2_col, consts)
    return out[0, :N].reshape(N, 1)


def make_params(key):
    """Parameter init mirroring the module: affine1 follows init_weights()
    (Fourier frequencies), affine2/augment use small random values."""
    H = HIDDEN
    m = H // 2
    freqs = 2.0 * math.pi * jnp.arange(m, dtype=jnp.float32)
    w1 = jnp.concatenate([freqs, freqs]).reshape(H, 1)                  # affine1.weight (H,1)
    b1 = jnp.concatenate([jnp.zeros(m), jnp.full((m,), math.pi / 2)])   # affine1.bias (H,)
    k1, k2, k3, k4 = jax.random.split(key, 4)
    w2 = jax.random.normal(k1, (1, H), jnp.float32) * 0.1               # affine2.weight (1,H)
    b2 = jax.random.normal(k2, (1,), jnp.float32) * 0.1                 # affine2.bias (1,)
    wa = jax.random.normal(k3, (1, 1), jnp.float32) * 0.1               # augment.weight (1,1)
    ba = jax.random.normal(k4, (1,), jnp.float32) * 0.1                 # augment.bias (1,)
    return w1, b1.astype(jnp.float32), w2, b2, wa, ba


def reference(t, w1, b1, w2, b2, wa, ba):
    # Pure-JAX reference (broadcast form; mathematically identical to the Linear layers).
    H = w1.shape[0]
    h = jnp.sin(t * w1.reshape(1, H) + b1.reshape(1, H))
    y = jnp.sum(h * w2.reshape(1, H), axis=-1, keepdims=True) + b2.reshape(1, 1)
    return y + t * wa.reshape(1, 1) + ba.reshape(1, 1)


if __name__ == "__main__":
    key = jax.random.PRNGKey(0)
    kp, kt = jax.random.split(key)
    params = make_params(kp)

    N = 300  # non-multiple of the tile -> exercises padding + a 2-step grid
    t = jax.random.uniform(kt, (N, 1), jnp.float32)   # time inputs in [0, 1)

    out = jax.block_until_ready(dfnn_forward(t, *params))
    ref = reference(t, *params)

    assert out.shape == (N, 1)
    assert jnp.allclose(out, ref, atol=1e-4, rtol=1e-4), float(jnp.max(jnp.abs(out - ref)))
    print("KERNEL_OK")
</pallas_src>

<mosaic_0001>
module attributes {stable_mosaic.version = 11 : i64} {
  func.func @dfnn_kernel(%arg0: i32, %arg1: memref<1x256xf32, #tpu.memory_space<vmem>>, %arg2: memref<64x1xf32, #tpu.memory_space<vmem>>, %arg3: memref<64x1xf32, #tpu.memory_space<vmem>>, %arg4: memref<64x1xf32, #tpu.memory_space<vmem>>, %arg5: memref<1x2xf32, #tpu.memory_space<vmem>>, %arg6: memref<1x256xf32, #tpu.memory_space<vmem>>) attributes {dimension_semantics = [#tpu.dimension_semantics<parallel>], iteration_bounds = array<i64: 2>, scalar_prefetch = 0 : i64, scratch_operands = 0 : i64, tpu.core_type = #tpu.core_type<tc>, window_params = [{transform_indices = @transform_0, window_bounds = array<i64: 1, 256>}, {pipeline_mode = #tpu.pipeline_mode<synchronous>, transform_indices = @transform_1, window_bounds = array<i64: 64, 1>}, {pipeline_mode = #tpu.pipeline_mode<synchronous>, transform_indices = @transform_2, window_bounds = array<i64: 64, 1>}, {pipeline_mode = #tpu.pipeline_mode<synchronous>, transform_indices = @transform_3, window_bounds = array<i64: 64, 1>}, {pipeline_mode = #tpu.pipeline_mode<synchronous>, transform_indices = @transform_4, window_bounds = array<i64: 1, 2>}, {transform_indices = @transform_5, window_bounds = array<i64: 1, 256>}]} {
    %c0 = arith.constant 0 : index
    %c0_0 = arith.constant 0 : index
    %0 = vector.load %arg1[%c0, %c0_0] : memref<1x256xf32, #tpu.memory_space<vmem>>, vector<1x256xf32>
    %c0_1 = arith.constant 0 : index
    %c0_2 = arith.constant 0 : index
    %1 = vector.load %arg2[%c0_1, %c0_2] : memref<64x1xf32, #tpu.memory_space<vmem>>, vector<64x1xf32>
    %2 = vector.broadcast %1 : vector<64x1xf32> to vector<64x256xf32>
    %3 = vector.broadcast %0 : vector<1x256xf32> to vector<64x256xf32>
    %4 = arith.mulf %2, %3 : vector<64x256xf32>
    %c0_3 = arith.constant 0 : index
    %c0_4 = arith.constant 0 : index
    %5 = vector.load %arg3[%c0_3, %c0_4] : memref<64x1xf32, #tpu.memory_space<vmem>>, vector<64x1xf32>
    %6 = vector.broadcast %5 : vector<64x1xf32> to vector<64x256xf32>
    %7 = arith.addf %4, %6 : vector<64x256xf32>
    %8 = math.sin %7 : vector<64x256xf32>
    %c0_5 = arith.constant 0 : index
    %c0_6 = arith.constant 0 : index
    %9 = vector.load %arg4[%c0_5, %c0_6] : memref<64x1xf32, #tpu.memory_space<vmem>>, vector<64x1xf32>
    %10 = vector.broadcast %9 : vector<64x1xf32> to vector<64x256xf32>
    %11 = arith.mulf %8, %10 : vector<64x256xf32>
    %cst = arith.constant dense<0.000000e+00> : vector<256xf32>
    %12 = vector.multi_reduction <add>, %11, %cst [0] : vector<64x256xf32> to vector<256xf32>
    %13 = vector.shape_cast %12 : vector<256xf32> to vector<1x256xf32>
    %c0_7 = arith.constant 0 : index
    %c0_8 = arith.constant 0 : index
    %14 = vector.load %arg5[%c0_7, %c0_8] : memref<1x2xf32, #tpu.memory_space<vmem>>, vector<1x1xf32>
    %c0_9 = arith.constant 0 : index
    %c1 = arith.constant 1 : index
    %15 = vector.load %arg5[%c0_9, %c1] : memref<1x2xf32, #tpu.memory_space<vmem>>, vector<1x1xf32>
    %16 = vector.broadcast %14 : vector<1x1xf32> to vector<1x256xf32>
    %17 = arith.mulf %0, %16 : vector<1x256xf32>
    %18 = arith.addf %13, %17 : vector<1x256xf32>
    %19 = vector.broadcast %15 : vector<1x1xf32> to vector<1x256xf32>
    %20 = arith.addf %18, %19 : vector<1x256xf32>
    %c0_10 = arith.constant 0 : index
    %c0_11 = arith.constant 0 : index
    %21 = vector.load %arg6[%c0_10, %c0_11] : memref<1x256xf32, #tpu.memory_space<vmem>>, vector<1x256xf32>
    tpu.vector_store %arg6[%c0_10, %c0_11], %20 {strides = array<i32>} : memref<1x256xf32, #tpu.memory_space<vmem>>, vector<1x256xf32>,
    return
  }
  func.func @transform_0(%arg0: i32) -> (i32, i32) {
    %c0_i32 = arith.constant 0 : i32
    %c0_i32_0 = arith.constant 0 : i32
    return %c0_i32, %arg0 : i32, i32
  }
  func.func @transform_1(%arg0: i32) -> (i32, i32) {
    %c0_i32 = arith.constant 0 : i32
    %c0_i32_0 = arith.constant 0 : i32
    %c0_i32_1 = arith.constant 0 : i32
    return %c0_i32, %c0_i32_0 : i32, i32
  }
  func.func @transform_2(%arg0: i32) -> (i32, i32) {
    %c0_i32 = arith.constant 0 : i32
    %c0_i32_0 = arith.constant 0 : i32
    %c0_i32_1 = arith.constant 0 : i32
    return %c0_i32, %c0_i32_0 : i32, i32
  }
  func.func @transform_3(%arg0: i32) -> (i32, i32) {
    %c0_i32 = arith.constant 0 : i32
    %c0_i32_0 = arith.constant 0 : i32
    %c0_i32_1 = arith.constant 0 : i32
    return %c0_i32, %c0_i32_0 : i32, i32
  }
  func.func @transform_4(%arg0: i32) -> (i32, i32) {
    %c0_i32 = arith.constant 0 : i32
    %c0_i32_0 = arith.constant 0 : i32
    %c0_i32_1 = arith.constant 0 : i32
    return %c0_i32, %c0_i32_0 : i32, i32
  }
  func.func @transform_5(%arg0: i32) -> (i32, i32) {
    %c0_i32 = arith.constant 0 : i32
    %c0_i32_0 = arith.constant 0 : i32
    return %c0_i32, %arg0 : i32, i32
  }
}

</mosaic_0001>

<bundles_post_ra>
// kernel: tpu_custom_call.1
= control target key start
LH: loop header
LB: loop body
LE: loop exit
PB: predicated region body
PF: predicated region fallthrough
CT: control target
= control target key end

     0   :  { %10 = vsyncpa [#allocation3], 0  ;;  %s6678_s0 = inlined_call_operand.vmem [shape: f32[1,512], index: 0, kind: input, shape index: {}]   ;;  %s6679_s1 = inlined_call_operand.vmem [shape: f32[64,1], index: 1, kind: input, shape index: {}]   ;;  %s6680_s2 = inlined_call_operand.vmem [shape: f32[64,1], index: 2, kind: input, shape index: {}]   ;;  %s6681_s3 = inlined_call_operand.vmem [shape: f32[64,1], index: 3, kind: input, shape index: {}]   ;;  %s6682_s4 = inlined_call_operand.vmem [shape: f32[1,2], index: 4, kind: input, shape index: {}]   ;;  %s6683_s5 = inlined_call_operand.hbm [shape: f32[1,512], index: 5, kind: output, shape index: {}]  }
   0x1   :  { %12 = vsyncpa [#allocation3 + $0x1], 0  ;;  %s3246_s18 = smov 0   ;;  %s3248_s19 = smov 0  }
   0x2   :  { %s3250_s20 = smov 0   ;;  %s3252_s21 = smov 0  }
   0x3 LB: > { %s3031_s22 = sadd.s32 4294967295, %s3206_s21   ;;  %s3032_s23 = sadd.s32 4294967294, %s3206_s21   ;;  %s3206_s21 = sphi %s3252_s21, %s7195_s21   ;;  %s3202_s20 = sphi %s3250_s20, %s7194_s20   ;;  %s3198_s19 = sphi %s3248_s19, %s7193_s19   ;;  %s3194_s18 = sphi %s3246_s18, %s7192_s18  }
   0x4   : > { %s3269_s24 = sadd.s32 1, %s3206_s21   ;;  %s135_s25 = sadd.s32 1, %s3202_s20 }
   0x5   : > { %s132_s26 = ssub.s32 %s3206_s21, %s3269_s24  ;;  %p145_p0 = scmp.ne.s32.totalorder %s3202_s20, %s3198_s19 }
   0x6   : > { %p133_p1 = scmp.eq.s32.totalorder %s132_s26, 0  ;;  %p146_p2 = scmp.eq.s32.totalorder %s3031_s22, 1 }
   0x7   : > { %p151_p3 = scmp.ne.s32.totalorder %s3198_s19, %s3194_s18  ;;  %p152_p4 = scmp.eq.s32.totalorder %s3032_s23, 1 }
   0x8   : > { %s3281_s27 = scalar_select %p133_p1, %s3202_s20, %s135_s25  }
   0x9   : > { %p3283_p5 = por %p146_p2, %p145_p0  ;;  %p3287_p6 = por %p152_p4, %p151_p3 }
   0xa   : > { %p3035_p7 = scmp.ge.s32.totalorder %s3206_s21, 1  ;;  %p190_p8 = scmp.lt.s32.totalorder %s3206_s21, 3 }
   0xc   : > { %p191_p9 = pnand %p3035_p7, %p190_p8 }
   0xe   : > { %194 = sbr.rel (%p191_p9) target bundleno = 806 (0x326), region = 40 }
  0x13   : > { %v294_v0 = vld [vmem:[%s6680_s2 + $0x8] sm:$0xff]  ;;  %v226_v1 = vld [vmem:[%s6679_s1 + $0x10] sm:$0xff]  ;;  %v224_v2 = vld [vmem:[%s6679_s1] sm:$0xff]  ;;  %v6684_v3 = vmov 0   ;;  %s3373_s7 = sshll.u32 %s3031_s22, 1  ;;  %s214_s13 = sand.u32 1, %s3198_s19  }
  0x14   : > { %3139 = vset.pattern.permute.xlu2 %v6684_v3  ;;  %3138 = vset.pattern.permute.xlu1 %v6684_v3  ;;  %v227_v4 = vld [vmem:[%s6679_s1 + $0x18] sm:$0xff]  ;;  %v293_v5 = vld [vmem:[%s6680_s2] sm:$0xff]  ;;  %v225_v6 = vld [vmem:[%s6679_s1 + $0x8] sm:$0xff]  ;;  %p218_p10 = scmp.lt.s32.totalorder %s3373_s7, 3  ;;  %v6702_v49 = vmov 2102212464   ;;  %s2971_s17 = scalar_lea.hbm %s6683_s5, %s3373_s7 }
  0x15   : > { %3137 = vset.pattern.permute.xlu0 %v6684_v3  ;;  %308 = vperm.xlu2 %3139, %v294_v0   ;;  %v296_v7 = vld [vmem:[%s6680_s2 + $0x18] sm:$0xff]  ;;  %v228_v8 = vld [vmem:[%s6679_s1 + $0x20] sm:$0xff]  ;;  %v295_v9 = vld [vmem:[%s6680_s2 + $0x10] sm:$0xff]  ;;  %v6709_v52 = vmov 920167782   ;;  %s3036_s14 = sshll.u32 %s214_s13, 1 }
  0x16   : > { %244 = vperm.xlu1 %3138, %v226_v1   ;;  %234 = vperm.xlu0 %3137, %v224_v2   ;;  %v230_v10 = vld [vmem:[%s6679_s1 + $0x30] sm:$0xff]  ;;  %v297_v11 = vld [vmem:[%s6680_s2 + $0x20] sm:$0xff]  ;;  %v229_v12 = vld [vmem:[%s6679_s1 + $0x28] sm:$0xff]  ;;  %s219_s8 = scalar_select %p218_p10, %s3373_s7, 3  ;;  %v6694_v55 = vmov 1326507024  }
  0x17   : > { %v299_v13 = vld [vmem:[%s6680_s2 + $0x30] sm:$0xff]  ;;  %v231_v14 = vld [vmem:[%s6679_s1 + $0x38] sm:$0xff]  ;;  %v298_v15 = vld [vmem:[%s6680_s2 + $0x28] sm:$0xff]  ;;  %v6687_v58 = vmov 683565275   ;;  %s216_s23 = scalar_lea.vmem [#allocation2], %s3036_s14 }
  0x18   : > { %v2838_v16 = vld [vmem:[%s6681_s3 + $0x8] sm:$0xff]  ;;  %v2837_v17 = vld [vmem:[%s6681_s3] sm:$0xff]  ;;  %v300_v18 = vld [vmem:[%s6680_s2 + $0x38] sm:$0xff]  ;;  %s3382_s11 = scalar_lea.vmem %s6678_s0, %s219_s8  ;;  %v6689_v60 = vmov 2475754826   ;;  %s2973_s25 = sshll.u32 %s216_s23, 4  ;;  %s2974_s25 = int_to_ptr.vmem [resolvable:$true] %s2973_s25 }
  0x19   : > { %v2841_v19 = vld [vmem:[%s6681_s3 + $0x20] sm:$0xff]  ;;  %v2840_v20 = vld [vmem:[%s6681_s3 + $0x18] sm:$0xff]  ;;  %v2839_v21 = vld [vmem:[%s6681_s3 + $0x10] sm:$0xff]  ;;  %v6691_v1 = vmov 2131351028   ;;  %s2975_s26 = sshll.u32 %s2971_s17, 4  ;;  %s2976_s26 = int_to_ptr.hbm [resolvable:$true] %s2975_s26 }
  0x1a   : > { %v2844_v22 = vld [vmem:[%s6681_s3 + $0x38] sm:$0xff]  ;;  %v2843_v23 = vld [vmem:[%s6681_s3 + $0x30] sm:$0xff]  ;;  %v2842_v24 = vld [vmem:[%s6681_s3 + $0x28] sm:$0xff]  ;;  %s2961_s30 = scalar_lea.sflag [#allocation3], %s214_s13  ;;  %s3158_s6 = sshra.s32 %s2976_s26, 4  ;;  %s3159_s6 = int_to_ptr.hbm [resolvable:$true] %s3158_s6 }
  0x1b   : > { %v2927_v25 = vld [vmem:[%s6682_s4] sm:$0x1]  ;;  %s3160_s7 = scalar_lea.hbm %s3159_s6, 2  ;;  %s3164_s10 = scalar_lea.hbm %s6683_s5, 4 }
  0x1c   : > { %v223_v27 = vld [vmem:[%s3382_s11] sm:$0x3]  ;;  %p3161_p11 = scmp.ne.s32.totalorder %s3159_s6, %s3160_s7  ;;  %p3165_p0 = scmp.lt.s32.totalorder %s3159_s6, %s6683_s5 }
  0x1d   : > { %249 = vperm.xlu2 %3139, %v227_v4   ;;  %v3385_v29 = vperm.slane %v223_v27, 0  ;;  %v3388_v32 = vperm.slane %v223_v27, 1  ;;  %p3166_p1 = scmp.lt.s32.totalorder %s3164_s10, %s3160_s7 }
  0x1e   : > { %303 = vperm.xlu1 %3138, %v293_v5   ;;  %239 = vperm.xlu0 %3137, %v225_v6   ;;  %p3162_p12 = pnand %p3161_p11, %p3283_p5 }
  0x1f   : > { %6870 = vst [vmem:[#allocation5_spill] sm:$0xff] %v3385_v29  ;;  %p3167_p2 = por %p3166_p1, %p3165_p0 }
  0x20   : > { %6871 = vst [vmem:[#allocation6_spill] sm:$0xff] %v3388_v32  ;;  %p3163_p13 = pneg %p3162_p12 }
  0x22   : > { %p3168_p3 = pnand %p3167_p2, %p3163_p13 }
  0x25   : > { %318 = vperm.xlu2 %3139, %v296_v7  }
  0x26   : > { %254 = vperm.xlu1 %3138, %v228_v8   ;;  %313 = vperm.xlu0 %3137, %v295_v9  }
  0x2d   : > { %264 = vperm.xlu2 %3139, %v230_v10  }
  0x2e   : > { %323 = vperm.xlu1 %3138, %v297_v11   ;;  %259 = vperm.xlu0 %3137, %v229_v12  }
  0x35   : > { %333 = vperm.xlu2 %3139, %v299_v13  }
  0x36   : > { %269 = vperm.xlu1 %3138, %v231_v14   ;;  %328 = vperm.xlu0 %3137, %v298_v15  }
  0x3d   : > { %2852 = vperm.xlu2 %3139, %v2838_v16  }
  0x3e   : > { %2847 = vperm.xlu1 %3138, %v2837_v17   ;;  %338 = vperm.xlu0 %3137, %v300_v18  }
  0x45   : > { %2867 = vperm.xlu2 %3139, %v2841_v19  }
  0x46   : > { %2862 = vperm.xlu1 %3138, %v2840_v20   ;;  %2857 = vperm.xlu0 %3137, %v2839_v21  }
  0x4d   : > { %2882 = vperm.xlu2 %3139, %v2844_v22  }
  0x4e   : > { %2877 = vperm.xlu1 %3138, %v2843_v23   ;;  %2872 = vperm.xlu0 %3137, %v2842_v24  }
  0x56   : > { %2930 = vperm.xlu0 %3137, %v2927_v25  }
  0x6f   : > { %v309_v31 = vpop.permute.xlu2 %308 }
  0x88   : > { %v3376_v26 = vpop.permute.xlu0 %234 }
  0x90   : > { %v240_v28 = vpop.permute.xlu0 %239 }
  0x91   : > { %v279_v30 = vmul.f32 %v3385_v29, %v240_v28  ;;  %v280_v34 = vmul.f32 %v3388_v32, %v240_v28 }
  0x93   : > { %v3390_v33 = vadd.f32 %v309_v31, %v279_v30  ;;  %v3394_v36 = vadd.f32 %v309_v31, %v280_v34  ;;  %v3463_v31 = vpop.permute.xlu2 %249 }
  0x95   : > { %6872 = vst [vmem:[#allocation7_spill] sm:$0xff] %v3390_v33  ;;  %v670_v35 = vand.u32 2139095040, %v3390_v33  ;;  %v825_v39 = vand.u32 2139095040, %v3394_v36  ;;  %v6693_v44 = vand.u32 2147483647, %v3390_v33 }
  0x97   : > { %v671_v37 = vshrl.u32 %v670_v35, 23  ;;  %v826_v41 = vshrl.u32 %v825_v39, 23  ;;  %v674_v51 = vand.u32 8388607, %v6693_v44 }
  0x99   : > { %v3044_v38 = vadd.s32 4294967169, %v671_v37  ;;  %v3047_v42 = vadd.s32 4294967169, %v826_v41  ;;  %v675_v5 = vor.u32 8388608, %v674_v51  ;;  %v6686_v41 = vand.u32 2147483647, %v3394_v36 }
  0x9b   : > { %v677_v40 = vadd.s32 1, %v3044_v38  ;;  %v832_v46 = vadd.s32 1, %v3047_v42  ;;  %v3443_v16 = vshll.u32 %v675_v5, 8 }
  0x9d   : > { %vm678_vm0 = vcmp.gt.s32.totalorder %v677_v40, 0  ;;  %vm833_vm1 = vcmp.gt.s32.totalorder %v832_v46, 0  ;;  %v716_v23 = vand.u32 65535, %v3443_v16  ;;  %v717_v25 = vshrl.u32 %v3443_v16, 16 }
  0x9e   : > { %v679_v43 = vsel %vm678_vm0, %v677_v40, 0  ;;  %v834_v57 = vsel %vm833_vm1, %v832_v46, 0 }
  0x9f   : > { %v681_v45 = vand.u32 31, %v679_v43  ;;  %v3400_v48 = vshrl.u32 %v679_v43, 5  ;;  %v3416_v4 = vand.u32 31, %v834_v57  ;;  %v3449_v18 = vshrl.u32 %v834_v57, 5 }
  0xa1   : > { %v3398_v47 = vsub.s32 32, %v681_v45  ;;  %v693_v50 = vshll.u32 %v6702_v49, %v681_v45  ;;  %v696_v54 = vshll.u32 %v6709_v52, %v681_v45  ;;  %v684_v59 = vshll.u32 %v6687_v58, %v681_v45 }
  0xa2   : > { %v687_v0 = vshll.u32 %v6689_v60, %v681_v45  ;;  %vm702_vm2 = vcmp.lt.s32.totalorder %v3400_v48, 4  ;;  %v690_v9 = vshll.u32 %v6691_v1, %v681_v45  ;;  %vm699_vm3 = vcmp.lt.s32.totalorder %v3400_v48, 1 }
  0xa3   : > { %v694_v53 = vshrl.u32 %v6709_v52, %v3398_v47  ;;  %v697_v56 = vshrl.u32 %v6694_v55, %v3398_v47  ;;  %v685_v61 = vshrl.u32 %v6689_v60, %v3398_v47  ;;  %v688_v2 = vshrl.u32 %v6691_v1, %v3398_v47 }
  0xa4   : > { %v691_v10 = vshrl.u32 %v6702_v49, %v3398_v47  ;;  %v3432_v12 = vsub.s32 32, %v3416_v4  ;;  %vm701_vm4 = vcmp.lt.s32.totalorder %v3400_v48, 3  ;;  %vm700_vm5 = vcmp.lt.s32.totalorder %v3400_v48, 2 }
  0xa5   : > { %v695_v62 = vor.u32 %v694_v53, %v693_v50  ;;  %v698_v63 = vor.u32 %v697_v56, %v696_v54  ;;  %v3419_v6 = vor.u32 %v685_v61, %v684_v59  ;;  %v3421_v7 = vor.u32 %v688_v2, %v687_v0 }
  0xa6   : > { %v3434_v13 = vor.u32 %v691_v10, %v690_v9  ;;  %v849_v21 = vshrl.u32 %v6709_v52, %v3432_v12  ;;  %v852_v34 = vshrl.u32 %v6694_v55, %v3432_v12  ;;  %v848_v35 = vshll.u32 %v6702_v49, %v3416_v4 }
  0xa7   : > { %v712_v8 = vsel %vm702_vm2, %v698_v63, 1326507024  ;;  %v708_v11 = vsel %vm702_vm2, %v695_v62, 920167782  ;;  %v707_v14 = vsel %vm699_vm3, %v3419_v6, %v3421_v7  ;;  %v851_v39 = vshll.u32 %v6709_v52, %v3416_v4 }
  0xa8   : > { %v713_v15 = vsel %vm701_vm4, %v695_v62, %v712_v8  ;;  %v709_v17 = vsel %vm701_vm4, %v3434_v13, %v708_v11  ;;  %v711_v20 = vsel %vm699_vm3, %v3421_v7, %v3434_v13  ;;  %vm857_vm6 = vcmp.lt.s32.totalorder %v3449_v18, 4 }
  0xa9   : > { %v710_v19 = vsel %vm700_vm5, %v707_v14, %v709_v17  ;;  %v714_v22 = vsel %vm700_vm5, %v711_v20, %v713_v15  ;;  %v850_v42 = vor.u32 %v849_v21, %v848_v35  ;;  %v853_v50 = vor.u32 %v852_v34, %v851_v39 }
  0xaa   : > { %v740_v24 = vand.u32 65535, %v710_v19  ;;  %v718_v27 = vand.u32 65535, %v714_v22  ;;  %v719_v28 = vshrl.u32 %v714_v22, 16  ;;  %v741_v30 = vshrl.u32 %v710_v19, 16  ;;  %v319_v19 = vpop.permute.xlu2 %318 }
  0xab   : > { %v840_v54 = vshrl.u32 %v6689_v60, %v3432_v12  ;;  %v843_v59 = vshrl.u32 %v6691_v1, %v3432_v12  ;;  %v839_v62 = vshll.u32 %v6687_v58, %v3416_v4  ;;  %v842_v63 = vshll.u32 %v6689_v60, %v3416_v4 }
  0xac   : > { %v3469_v37 = vmul.u32 %v719_v28, %v716_v23  ;;  %v3471_v38 = vmul.u32 %v740_v24, %v717_v25  ;;  %v743_v40 = vmul.u32 %v741_v30, %v716_v23  ;;  %v720_v43 = vmul.u32 %v718_v27, %v716_v23 }
  0xad   : > { %v3477_v45 = vmul.u32 %v718_v27, %v717_v25  ;;  %v742_v51 = vmul.u32 %v740_v24, %v716_v23  ;;  %v745_v2 = vmul.u32 %v741_v30, %v717_v25  ;;  %v829_v8 = vand.u32 8388607, %v6686_v41 }
  0xae   : > { %v724_v46 = vshll.u32 %v3469_v37, 16  ;;  %v746_v53 = vshll.u32 %v743_v40, 16  ;;  %v748_v57 = vshll.u32 %v3471_v38, 16  ;;  %v3499_v10 = vor.u32 %v840_v54, %v839_v62 }
  0xaf   : > { %v726_v0 = vshll.u32 %v3477_v45, 16  ;;  %v3501_v11 = vor.u32 %v843_v59, %v842_v63  ;;  %v723_v14 = vmul.u32 %v719_v28, %v717_v25  ;;  %v845_v15 = vshll.u32 %v6691_v1, %v3416_v4 }
  0xb0   : > { %vm728_vm7 = vc.u32 %v720_v43, %v724_v46  ;;  %v730_v56 = vadd.s32 %v724_v46, %v720_v43  ;;  %vm750_vm8 = vc.u32 %v742_v51, %v746_v53  ;;  %v3485_v61 = vadd.s32 %v746_v53, %v742_v51  ;;  %v3531_v43 = vpop.permute.xlu1 %244 }
  0xb1   : > { %v751_v5 = vsel %vm750_vm8, 1, %v6684_v3  ;;  %v729_v9 = vsel %vm728_vm7, 1, %v6684_v3  ;;  %v846_v17 = vshrl.u32 %v6702_v49, %v3432_v12  ;;  %v863_v20 = vsel %vm857_vm6, %v850_v42, 920167782 }
  0xb2   : > { %vm754_vm9 = vc.u32 %v3485_v61, %v748_v57  ;;  %vm732_vm10 = vc.u32 %v730_v56, %v726_v0  ;;  %v867_v21 = vsel %vm857_vm6, %v853_v50, 1326507024  ;;  %v753_v22 = vadd.s32 %v751_v5, %v745_v2 }
  0xb3   : > { %v731_v23 = vadd.s32 %v729_v9, %v723_v14  ;;  %v755_v24 = vsel %vm754_vm9, 1, %v6684_v3  ;;  %v3512_v27 = vor.u32 %v846_v17, %v845_v15  ;;  %vm854_vm11 = vcmp.lt.s32.totalorder %v3449_v18, 1 }
  0xb4   : > { %v733_v4 = vsel %vm732_vm10, 1, %v6684_v3  ;;  %v830_v25 = vor.u32 8388608, %v829_v8  ;;  %vm856_vm12 = vcmp.lt.s32.totalorder %v3449_v18, 3  ;;  %v862_v28 = vsel %vm854_vm11, %v3499_v10, %v3501_v11  ;;  %v265_v8 = vpop.permute.xlu2 %264 }
  0xb5   : > { %v864_v30 = vsel %vm856_vm12, %v3512_v27, %v863_v20  ;;  %v866_v34 = vsel %vm854_vm11, %v3501_v11, %v3512_v27  ;;  %v868_v35 = vsel %vm856_vm12, %v850_v42, %v867_v21  ;;  %v757_v39 = vadd.s32 %v755_v24, %v753_v22 }
  0xb6   : > { %vm855_vm13 = vcmp.lt.s32.totalorder %v3449_v18, 2  ;;  %v735_v46 = vadd.s32 %v733_v4, %v731_v23  ;;  %v283_v51 = vmul.f32 %v3385_v29, %v3463_v31  ;;  %v747_v53 = vshrl.u32 %v743_v40, 16 }
  0xb7   : > { %v865_v50 = vsel %vm855_vm13, %v862_v28, %v864_v30  ;;  %v869_v54 = vsel %vm855_vm13, %v866_v34, %v868_v35  ;;  %v3539_v56 = vshll.u32 %v830_v25, 8  ;;  %v725_v42 = vshrl.u32 %v3469_v37, 16 }
  0xb8   : > { %v758_v59 = vadd.s32 %v757_v39, %v747_v53  ;;  %v896_v62 = vshrl.u32 %v865_v50, 16  ;;  %v284_v63 = vmul.f32 %v3388_v32, %v3463_v31  ;;  %v874_v2 = vshrl.u32 %v869_v54, 16 }
  0xb9   : > { %v736_v0 = vadd.s32 %v735_v46, %v725_v42  ;;  %v3544_v5 = vadd.f32 %v319_v19, %v283_v51  ;;  %v749_v9 = vshrl.u32 %v3471_v38, 16  ;;  %v871_v40 = vand.u32 65535, %v3539_v56 }
  0xba   : > { %v727_v14 = vshrl.u32 %v3477_v45, 16  ;;  %v704_v37 = vsel %vm702_vm2, %v3434_v13, 2102212464  ;;  %v3554_v20 = vadd.f32 %v319_v19, %v284_v63  ;;  %v683_v31 = vshrl.u32 %v6687_v58, %v3398_v47  ;;  %v3563_v45 = vpop.permute.xlu1 %303 }
  0xbb   : > { %6873 = vst [vmem:[#allocation8_spill] sm:$0xff] %v3544_v5  ;;  %v759_v15 = vadd.s32 %v758_v59, %v749_v9  ;;  %v3552_v17 = vmul.u32 %v896_v62, %v871_v40  ;;  %v3560_v22 = vmul.u32 %v874_v2, %v871_v40  ;;  %v1290_v23 = vand.u32 2139095040, %v3544_v5 }
  0xbc   : > { %6874 = vst [vmem:[#allocation9_spill] sm:$0xff] %v3554_v20  ;;  %v3558_v21 = vadd.s32 %v736_v0, %v727_v14  ;;  %v895_v24 = vand.u32 65535, %v865_v50  ;;  %v703_v13 = vsel %vm699_vm3, %v683_v31, %v3419_v6  ;;  %v705_v19 = vsel %vm701_vm4, %v3421_v7, %v704_v37  ;;  %v334_v51 = vpop.permute.xlu2 %333 }
  0xbd   : > { %v3574_v47 = vadd.s32 %v3485_v61, %v748_v57  ;;  %v873_v4 = vand.u32 65535, %v869_v54  ;;  %v763_v25 = vadd.s32 1, %v759_v15  ;;  %v872_v28 = vshrl.u32 %v3539_v56, 16 }
  0xbe   : > { %v901_v30 = vshll.u32 %v3552_v17, 16  ;;  %v1445_v34 = vand.u32 2139095040, %v3554_v20  ;;  %v879_v6 = vshll.u32 %v3560_v22, 16  ;;  %v1291_v35 = vshrl.u32 %v1290_v23, 23 }
  0xbf   : > { %vm762_vm14 = vc.u32 %v3558_v21, %v3574_v47  ;;  %v706_v7 = vsel %vm700_vm5, %v703_v13, %v705_v19  ;;  %v897_v38 = vmul.u32 %v895_v24, %v871_v40  ;;  %v3584_v57 = vmul.u32 %v895_v24, %v872_v28 }
  0xc0   : > { %v289_v61 = vmul.f32 %v3385_v29, %v265_v8  ;;  %v875_v39 = vmul.u32 %v873_v4, %v871_v40  ;;  %v3587_v46 = vmul.u32 %v873_v4, %v872_v28  ;;  %v290_v50 = vmul.f32 %v3388_v32, %v265_v8 }
  0xc1   : > { %v764_v53 = vsel %vm762_vm14, %v763_v25, %v759_v15  ;;  %vm905_vm15 = vc.u32 %v897_v38, %v901_v30  ;;  %v3590_v54 = vadd.s32 %v901_v30, %v897_v38  ;;  %v760_v42 = vmul.u32 %v3443_v16, %v706_v7 }
  0xc2   : > { %vm883_vm0 = vc.u32 %v875_v39, %v879_v6  ;;  %v885_v48 = vadd.s32 %v879_v6, %v875_v39  ;;  %v3056_v59 = vadd.s32 4294967169, %v1291_v35  ;;  %v1446_v63 = vshrl.u32 %v1445_v34, 23  ;;  %v3604_v23 = vpop.permute.xlu1 %254 }
  0xc3   : > { %v903_v0 = vshll.u32 %v3584_v57, 16  ;;  %v3594_v9 = vadd.f32 %v334_v51, %v289_v61  ;;  %v765_v40 = vadd.s32 %v764_v53, %v760_v42  ;;  %v881_v14 = vshll.u32 %v3587_v46, 16 }
  0xc4   : > { %v906_v8 = vsel %vm905_vm15, 1, %v6684_v3  ;;  %v3598_v37 = vadd.f32 %v334_v51, %v290_v50  ;;  %v884_v15 = vsel %vm883_vm0, 1, %v6684_v3  ;;  %v900_v31 = vmul.u32 %v896_v62, %v872_v28 }
  0xc5   : > { %6875 = vst [vmem:[#allocation10_spill] sm:$0xff] %v3594_v9  ;;  %vm909_vm1 = vc.u32 %v3590_v54, %v903_v0  ;;  %v878_v16 = vmul.u32 %v874_v2, %v872_v28  ;;  %vm887_vm2 = vc.u32 %v885_v48, %v881_v14  ;;  %v3059_v24 = vadd.s32 4294967169, %v1446_v63 }
  0xc6   : > { %6876 = vst [vmem:[#allocation11_spill] sm:$0xff] %v3598_v37  ;;  %v277_v13 = vmul.f32 %v3385_v29, %v3376_v26  ;;  %v908_v19 = vadd.s32 %v906_v8, %v900_v31  ;;  %v2220_v4 = vand.u32 2139095040, %v3594_v9  ;;  %v766_v25 = vadd.s32 536870912, %v765_v40 }
  0xc7   : > { %v886_v30 = vadd.s32 %v884_v15, %v878_v16  ;;  %v910_v34 = vsel %vm909_vm1, 1, %v6684_v3  ;;  %v1297_v62 = vadd.s32 1, %v3056_v59  ;;  %v2375_v6 = vand.u32 2139095040, %v3598_v37 }
  0xc8   : > { %v888_v35 = vsel %vm887_vm2, 1, %v6684_v3  ;;  %v3613_v2 = vadd.f32 %v3563_v45, %v277_v13  ;;  %v1452_v28 = vadd.s32 1, %v3059_v24  ;;  %v912_v7 = vadd.s32 %v910_v34, %v908_v19 }
  0xc9   : > { %v2221_v38 = vshrl.u32 %v2220_v4, 23  ;;  %v3615_v61 = vshrl.u32 %v766_v25, 30  ;;  %v890_v39 = vadd.s32 %v888_v35, %v886_v30  ;;  %vm1298_vm3 = vcmp.gt.s32.totalorder %v1297_v62, 0 }
  0xca   : > { %6877 = vst [vmem:[#allocation12_spill] sm:$0xff] %v3613_v2  ;;  %v2376_v50 = vshrl.u32 %v2375_v6, 23  ;;  %v902_v51 = vshrl.u32 %v3552_v17, 16  ;;  %v360_v53 = vand.u32 2139095040, %v3613_v2  ;;  %v880_v42 = vshrl.u32 %v3560_v22, 16  ;;  %v3623_v31 = vpop.permute.xlu1 %323 }
  0xcb   : > { %vm1453_vm4 = vcmp.gt.s32.totalorder %v1452_v28, 0  ;;  %v278_v48 = vmul.f32 %v3388_v32, %v3376_v26  ;;  %v1299_v63 = vsel %vm1298_vm3, %v1297_v62, 0  ;;  %v3074_v14 = vadd.s32 4294967169, %v2221_v38 }
  0xcc   : > { %v913_v59 = vadd.s32 %v912_v7, %v902_v51  ;;  %v768_v8 = vshll.u32 %v3615_v61, 30  ;;  %v891_v15 = vadd.s32 %v890_v39, %v880_v42  ;;  %v3077_v16 = vadd.s32 4294967169, %v2376_v50 }
  0xcd   : > { %v3626_v24 = vadd.f32 %v3563_v45, %v278_v48  ;;  %v904_v17 = vshrl.u32 %v3584_v57, 16  ;;  %v285_v22 = vmul.f32 %v3385_v29, %v3604_v23  ;;  %v1454_v13 = vsel %vm1453_vm4, %v1452_v28, 0 }
  0xce   : > { %v361_v19 = vshrl.u32 %v360_v53, 23  ;;  %v882_v26 = vshrl.u32 %v3587_v46, 16  ;;  %v3632_v4 = vand.u32 31, %v1299_v63  ;;  %v859_v25 = vsel %vm857_vm6, %v3512_v27, 2102212464 }
  0xcf   : > { %6878 = vst [vmem:[#allocation13_spill] sm:$0xff] %v3626_v24  ;;  %v914_v30 = vadd.s32 %v913_v59, %v904_v17  ;;  %v3638_v34 = vadd.f32 %v3623_v31, %v285_v22  ;;  %v2227_v45 = vadd.s32 1, %v3074_v14  ;;  %v3640_v62 = vsub.s32 %v765_v40, %v768_v8 }
  0xd0   : > { %6879 = vst [vmem:[#allocation14_spill] sm:$0xff] %v3632_v4  ;;  %v838_v6 = vshrl.u32 %v6687_v58, %v3432_v12  ;;  %v3644_v35 = vadd.s32 %v891_v15, %v882_v26  ;;  %v3646_v28 = vand.u32 31, %v1454_v13  ;;  %v2382_v46 = vadd.s32 1, %v3077_v16 }
  0xd1   : > { %6880 = vst [vmem:[#allocation15_spill] sm:$0xff] %v3638_v34  ;;  %v515_v7 = vand.u32 2139095040, %v3626_v24  ;;  %v3038_v38 = vadd.s32 4294967169, %v361_v19  ;;  %v860_v40 = vsel %vm856_vm12, %v3501_v11, %v859_v25  ;;  %v3658_v12 = vadd.s32 %v3590_v54, %v903_v0 }
  0xd2   : > { %6881 = vst [vmem:[#allocation16_spill] sm:$0xff] %v3646_v28  ;;  %v858_v27 = vsel %vm854_vm11, %v838_v6, %v3499_v10  ;;  %v3660_v39 = vshrl.u32 %v1299_v63, 5  ;;  %v3663_v50 = vsub.s32 32, %v3632_v4  ;;  %v918_v51 = vadd.s32 1, %v914_v30 }
  0xd3   : > { %v1600_v53 = vand.u32 2139095040, %v3638_v34  ;;  %v3666_v42 = vshrl.u32 %v1454_v13, 5  ;;  %vm2228_vm5 = vcmp.gt.s32.totalorder %v2227_v45, 0  ;;  %v771_v10 = vsub.s32 0, %v3640_v62 }
  0xd4   : > { %6882 = vst [vmem:[#allocation17_spill] sm:$0xff] %v3660_v39  ;;  %vm917_vm6 = vc.u32 %v3644_v35, %v3658_v12  ;;  %v3672_v11 = vsub.s32 32, %v3646_v28  ;;  %vm2383_vm7 = vcmp.gt.s32.totalorder %v2382_v46, 0  ;;  %vm770_vm8 = vcmp.lt.s32.totalorder %v3640_v62, 0 }
  0xd5   : > { %6883 = vst [vmem:[#allocation18_spill] sm:$0xff] %v3663_v50  ;;  %v861_v57 = vsel %vm855_vm13, %v858_v27, %v860_v40  ;;  %v1313_v54 = vshll.u32 %v6702_v49, %v3632_v4  ;;  %v1316_v0 = vshll.u32 %v6709_v52, %v3632_v4  ;;  %v367_v48 = vadd.s32 1, %v3038_v38 }
  0xd6   : > { %6884 = vst [vmem:[#allocation19_spill] sm:$0xff] %v3666_v42  ;;  %v516_v59 = vshrl.u32 %v515_v7, 23  ;;  %v1314_v63 = vshrl.u32 %v6709_v52, %v3663_v50  ;;  %v2229_v14 = vsel %vm2228_vm5, %v2227_v45, 0  ;;  %v919_v8 = vsel %vm917_vm6, %v918_v51, %v914_v30 }
  0xd7   : > { %6885 = vst [vmem:[#allocation20_spill] sm:$0xff] %v3672_v11  ;;  %v1601_v15 = vshrl.u32 %v1600_v53, 23  ;;  %v1317_v16 = vshrl.u32 %v6694_v55, %v3663_v50  ;;  %v2384_v17 = vsel %vm2383_vm7, %v2382_v46, 0  ;;  %v772_v18 = vsel %vm770_vm8, %v771_v10, %v3640_v62 }
  0xd8   : > { %v915_v22 = vmul.u32 %v3539_v56, %v861_v57  ;;  %v1468_v13 = vshll.u32 %v6702_v49, %v3646_v28  ;;  %v1469_v19 = vshrl.u32 %v6709_v52, %v3672_v11  ;;  %v1471_v26 = vshll.u32 %v6709_v52, %v3646_v28 }
  0xd9   : > { %v1472_v25 = vshrl.u32 %v6694_v55, %v3672_v11  ;;  %v3695_v30 = vand.u32 31, %v2229_v14  ;;  %vm368_vm9 = vcmp.gt.s32.totalorder %v367_v48, 0  ;;  %v3041_v45 = vadd.s32 4294967169, %v516_v59 }
  0xda   : > { %v920_v6 = vadd.s32 %v919_v8, %v915_v22  ;;  %v3697_v46 = vand.u32 31, %v2384_v17  ;;  %v773_v56 = vclz %v772_v18  ;;  %v3062_v7 = vadd.s32 4294967169, %v1601_v15 }
  0xdb   : > { %6886 = vst [vmem:[#allocation21_spill] sm:$0xff] %v3695_v30  ;;  %v3699_v38 = vor.u32 %v1314_v63, %v1313_v54  ;;  %v1318_v27 = vor.u32 %v1317_v16, %v1316_v0  ;;  %vm6765_vm10 = vcmp.lt.s32.totalorder %v3660_v39, 4  ;;  %v3702_v40 = vor.u32 %v1469_v19, %v1468_v13 }
  0xdc   : > { %6887 = vst [vmem:[#allocation22_spill] sm:$0xff] %v3697_v46  ;;  %v1473_v51 = vor.u32 %v1472_v25, %v1471_v26  ;;  %v369_v53 = vsel %vm368_vm9, %v367_v48, 0  ;;  %vm6764_vm11 = vcmp.lt.s32.totalorder %v3666_v42, 4  ;;  %v3706_v10 = vsub.s32 32, %v3695_v30 }
  0xdd   : > { %6888 = vst [vmem:[#allocation23_spill] sm:$0xff] %v3699_v38  ;;  %v522_v57 = vadd.s32 1, %v3041_v45  ;;  %v921_v59 = vadd.s32 536870912, %v920_v6  ;;  %v281_v8 = vmul.f32 %v3385_v29, %v3531_v43  ;;  %v3711_v54 = vsub.s32 32, %v3697_v46 }
  0xde   : > { %6889 = vst [vmem:[#allocation24_spill] sm:$0xff] %v3702_v40  ;;  %v3045_v0 = vadd.s32 4294967294, %v773_v56  ;;  %v1607_v63 = vadd.s32 1, %v3062_v7  ;;  %v3716_v15 = vsel %vm6765_vm10, %v3699_v38, 920167782  ;;  %v3722_v16 = vshrl.u32 %v2229_v14, 5 }
  0xdf   : > { %6890 = vst [vmem:[#allocation25_spill] sm:$0xff] %v3706_v10  ;;  %v3720_v48 = vsel %vm6765_vm10, %v1318_v27, 1326507024  ;;  %v3724_v18 = vand.u32 31, %v369_v53  ;;  %v3729_v22 = vsel %vm6764_vm11, %v3702_v40, 920167782  ;;  %v282_v19 = vmul.f32 %v3388_v32, %v3531_v43  ;;  %v314_v27 = vpop.permute.xlu0 %313 }
  0xe0   : > { %6891 = vst [vmem:[#allocation26_spill] sm:$0xff] %v3711_v54  ;;  %v3733_v13 = vsel %vm6764_vm11, %v1473_v51, 1326507024  ;;  %v3737_v26 = vshrl.u32 %v2384_v17, 5  ;;  %v2243_v14 = vshll.u32 %v6702_v49, %v3695_v30  ;;  %v2244_v25 = vshrl.u32 %v6709_v52, %v3706_v10 }
  0xe1   : > { %6892 = vst [vmem:[#allocation27_spill] sm:$0xff] %v3716_v15  ;;  %vm523_vm12 = vcmp.gt.s32.totalorder %v522_v57, 0  ;;  %v3743_v45 = vshrl.u32 %v921_v59, 30  ;;  %v2247_v56 = vshrl.u32 %v6694_v55, %v3706_v10  ;;  %v2399_v7 = vshrl.u32 %v6709_v52, %v3711_v54 }
  0xe2   : > { %6893 = vst [vmem:[#allocation28_spill] sm:$0xff] %v3720_v48  ;;  %vm3046_vm13 = vcmp.lt.s32.totalorder %v3045_v0, 0  ;;  %vm1608_vm14 = vcmp.gt.s32.totalorder %v1607_v63, 0  ;;  %v2246_v43 = vshll.u32 %v6709_v52, %v3695_v30  ;;  %vm6763_vm15 = vcmp.lt.s32.totalorder %v3722_v16, 4 }
  0xe3   : > { %6894 = vst [vmem:[#allocation29_spill] sm:$0xff] %v3722_v16  ;;  %v2402_v17 = vshrl.u32 %v6694_v55, %v3711_v54  ;;  %v3755_v51 = vsub.s32 32, %v3724_v18  ;;  %v2398_v59 = vshll.u32 %v6702_v49, %v3697_v46  ;;  %v2401_v3 = vshll.u32 %v6709_v52, %v3697_v46 }
  0xe4   : > { %6895 = vst [vmem:[#allocation30_spill] sm:$0xff] %v3729_v22  ;;  %vm6762_vm0 = vcmp.lt.s32.totalorder %v3737_v26, 4  ;;  %v524_v41 = vsel %vm523_vm12, %v522_v57, 0  ;;  %v3762_v58 = vsel %vm3046_vm13, 0, %v3045_v0  ;;  %v923_v60 = vshll.u32 %v3743_v45, 30 }
  0xe5   : > { %6896 = vst [vmem:[#allocation31_spill] sm:$0xff] %v3733_v13  ;;  %v3765_v1 = vadd.f32 %v314_v27, %v281_v8  ;;  %v1609_v44 = vsel %vm1608_vm14, %v1607_v63, 0  ;;  %v3767_v55 = vor.u32 %v2244_v25, %v2243_v14  ;;  %v2248_v54 = vor.u32 %v2247_v56, %v2246_v43 }
  0xe6   : > { %6897 = vst [vmem:[#allocation32_spill] sm:$0xff] %v3737_v26  ;;  %v3769_v37 = vor.u32 %v2399_v7, %v2398_v59  ;;  %v3771_v30 = vshrl.u32 %v369_v53, 5  ;;  %v2403_v49 = vor.u32 %v2402_v17, %v2401_v3  ;;  %v384_v46 = vshrl.u32 %v6709_v52, %v3755_v51 }
  0xe7   : > { %6898 = vst [vmem:[#allocation33_spill] sm:$0xff] %v3765_v1  ;;  %v3775_v10 = vand.u32 31, %v524_v41  ;;  %v286_v57 = vmul.f32 %v3388_v32, %v3604_v23  ;;  %v6902_v8 = vmov 2102212464   ;;  %v781_v63 = vsub.s32 4294967266, %v3762_v58 }
  0xe8   : > { %6899 = vst [vmem:[#allocation34_spill] sm:$0xff] %v3767_v55  ;;  %v383_v0 = vshll.u32 %v6902_v8, %v3724_v18  ;;  %v3782_v14 = vadd.f32 %v314_v27, %v282_v19  ;;  %v1611_v25 = vand.u32 31, %v1609_v44  ;;  %v6904_v53 = vmov 1326507024  }
  0xe9   : > { %6900 = vst [vmem:[#allocation35_spill] sm:$0xff] %v3769_v37  ;;  %v3786_v56 = vshrl.u32 %v6904_v53, %v3755_v51  ;;  %v3788_v3 = vsub.s32 %v920_v6, %v923_v60  ;;  %v980_v7 = vand.u32 2139095040, %v3765_v1  ;;  %v3792_v43 = vadd.f32 %v3623_v31, %v286_v57 }
  0xea   : > { %6901 = vst [vmem:[#allocation36_spill] sm:$0xff] %v3775_v10  ;;  %v3797_v23 = vsel %vm6763_vm15, %v3767_v55, 920167782  ;;  %v3801_v19 = vsel %vm6763_vm15, %v2248_v54, 1326507024  ;;  %v3810_v60 = vshll.u32 %v6709_v52, %v3724_v18  ;;  %v3816_v6 = vor.u32 %v384_v46, %v383_v0 }
  0xeb   : > { %6903 = vst [vmem:[#allocation37_spill] sm:$0xff] %v3782_v14  ;;  %v3806_v27 = vsel %vm6762_vm0, %v3769_v37, 920167782  ;;  %v3814_v31 = vsel %vm6762_vm0, %v2403_v49, 1326507024  ;;  %v3818_v17 = vshrl.u32 %v524_v41, 5  ;;  %v538_v41 = vshll.u32 %v6902_v8, %v3775_v10 }
  0xec   : > { %6905 = vst [vmem:[#allocation38_spill] sm:$0xff] %v3792_v43  ;;  %v3821_v54 = vsub.s32 32, %v3775_v10  ;;  %v782_v59 = vadd.s32 127, %v781_v63  ;;  %v791_v57 = vsub.s32 4, %v3615_v61  ;;  %v3825_v37 = vsub.s32 32, %v1611_v25 }
  0xed   : > { %6906 = vst [vmem:[#allocation39_spill] sm:$0xff] %v3797_v23  ;;  %v926_v49 = vsub.s32 0, %v3788_v3  ;;  %v1755_v46 = vand.u32 2139095040, %v3792_v43  ;;  %vm669_vm1 = vcmp.lt.s32.totalorder %v3390_v33, 0  ;;  %v777_v0 = vsub.s32 32, %v3762_v58 }
  0xee   : > { %6907 = vst [vmem:[#allocation40_spill] sm:$0xff] %v3801_v19  ;;  %vm925_vm2 = vcmp.lt.s32.totalorder %v3788_v3, 0  ;;  %v6912_v63 = vmov 920167782   ;;  %v6913_v23 = vand.u32 2147483647, %v3390_v33  ;;  %v761_v19 = vadd.s32 %v3574_v47, %v3558_v21 }
  0xef   : > { %6908 = vst [vmem:[#allocation41_spill] sm:$0xff] %v3806_v27  ;;  %v1135_v27 = vand.u32 2139095040, %v3782_v14  ;;  %v539_v26 = vshrl.u32 %v6912_v63, %v3821_v54  ;;  %v3840_v52 = vshll.u32 %v6912_v63, %v3775_v10  ;;  %v783_v16 = vshll.u32 %v782_v59, 23 }
  0xf0   : > { %6909 = vst [vmem:[#allocation42_spill] sm:$0xff] %v3814_v31  ;;  %v981_v31 = vshrl.u32 %v980_v7, 23  ;;  %v3844_v7 = vshrl.u32 %v6904_v53, %v3821_v54  ;;  %vm3848_vm3 = vcmp.le.f32.partialorder %v6913_v23, 0.7853982  ;;  %v792_v9 = vsel %vm669_vm1, %v791_v57, %v3615_v61 }
  0xf1   : > { %6910 = vst [vmem:[#allocation43_spill] sm:$0xff] %v3818_v17  ;;  %v1136_v14 = vshrl.u32 %v1135_v27, 23  ;;  %v1627_v1 = vshrl.u32 %v6904_v53, %v3825_v37  ;;  %v927_v22 = vsel %vm925_vm2, %v926_v49, %v3788_v3  ;;  %v1624_v23 = vshrl.u32 %v6912_v63, %v3825_v37 }
  0xf2   : > { %6911 = vst [vmem:[#allocation44_spill] sm:$0xff] %v3821_v54  ;;  %v3050_v40 = vadd.s32 4294967169, %v981_v31  ;;  %v1756_v13 = vshrl.u32 %v1755_v46, 23  ;;  %v778_v42 = vshll.u32 %v3640_v62, %v3762_v58  ;;  %v779_v21 = vshrl.u32 %v761_v19, %v777_v0 }
  0xf3   : > { %v1626_v59 = vshll.u32 %v6912_v63, %v1611_v25  ;;  %v3866_v61 = vshrl.u32 %v1609_v44, 5  ;;  %v6916_v27 = vmov 2131351028   ;;  %v1621_v31 = vshrl.u32 %v6902_v8, %v3825_v37 }
  0xf4   : > { %v1618_v57 = vshrl.u32 %v6916_v27, %v3825_v37  ;;  %v1623_v49 = vshll.u32 %v6902_v8, %v1611_v25  ;;  %v784_v11 = vor.u32 4788187, %v783_v16  ;;  %v928_v46 = vclz %v927_v22 }
  0xf5   : > { %v6917_v28 = vmov 2475754826   ;;  %v1628_v62 = vor.u32 %v1627_v1, %v1626_v59  ;;  %v1620_v0 = vshll.u32 %v6916_v27, %v1611_v25  ;;  %v3065_v47 = vadd.s32 4294967169, %v1756_v13 }
  0xf6   : > { %v1615_v58 = vshrl.u32 %v6917_v28, %v3825_v37  ;;  %v1617_v19 = vshll.u32 %v6917_v28, %v1611_v25  ;;  %v1625_v44 = vor.u32 %v1624_v23, %v1623_v49  ;;  %vm392_vm4 = vcmp.lt.s32.totalorder %v3771_v30, 4 }
  0xf7   : > { %v780_v20 = vor.u32 %v779_v21, %v778_v42  ;;  %v3053_v38 = vadd.s32 4294967169, %v1136_v14  ;;  %v6918_v48 = vand.u32 2147483647, %v3638_v34  ;;  %v6919_v39 = vmov 683565275  }
  0xf8   : > { %v1614_v16 = vshll.u32 %v6919_v39, %v1611_v25  ;;  %vm6766_vm5 = vcmp.lt.s32.totalorder %v3818_v17, 4  ;;  %v3882_v22 = vor.u32 %v1618_v57, %v1617_v19  ;;  %v3884_v1 = vor.u32 %v1621_v31, %v1620_v0 }
  0xf9   : > { %v1604_v15 = vand.u32 8388607, %v6918_v48  ;;  %vm1632_vm6 = vcmp.lt.s32.totalorder %v3866_v61, 4  ;;  %v1762_v59 = vadd.s32 1, %v3065_v47  ;;  %v794_v13 = vsel %vm3848_vm3, 0, %v792_v9 }
  0xfa   : > { %v3048_v23 = vadd.s32 4294967294, %v928_v46  ;;  %v3889_v42 = vor.u32 %v1615_v58, %v1614_v16  ;;  %v1642_v48 = vsel %vm1632_vm6, %v1628_v62, 1326507024  ;;  %v785_v14 = vand.u32 2147483647, %v784_v11 }
  0xfb   : > { %v987_v25 = vadd.s32 1, %v3050_v40  ;;  %v1638_v21 = vsel %vm1632_vm6, %v1625_v44, 920167782  ;;  %vm1763_vm7 = vcmp.gt.s32.totalorder %v1762_v59, 0  ;;  %v787_v57 = vcvt.s32.f32 %v780_v20 }
  0xfc   : > { %v1142_v31 = vadd.s32 1, %v3053_v38  ;;  %vm1629_vm8 = vcmp.lt.s32.totalorder %v3866_v61, 1  ;;  %vm1631_vm9 = vcmp.lt.s32.totalorder %v3866_v61, 3  ;;  %v1605_v47 = vor.u32 8388608, %v1604_v15 }
  0xfd   : > { %v1641_v9 = vsel %vm1629_vm8, %v3882_v22, %v3884_v1  ;;  %v1643_v11 = vsel %vm1631_vm9, %v1625_v44, %v1642_v48  ;;  %v1764_v40 = vsel %vm1763_vm7, %v1762_v59, 0  ;;  %v3903_v49 = vor.u32 %v539_v26, %v538_v41 }
  0xfe   : > { %vm3049_vm12 = vcmp.lt.s32.totalorder %v3048_v23, 0  ;;  %v1637_v20 = vsel %vm1629_vm8, %v3889_v42, %v3882_v22  ;;  %v1639_v38 = vsel %vm1631_vm9, %v3884_v1, %v1638_v21  ;;  %v788_v15 = vmul.f32 %v787_v57, %v785_v14 }
  0xff   : > { %6920 = vst [vmem:[#allocation45_spill] sm:$0xff] %v3903_v49  ;;  %vm988_vm13 = vcmp.gt.s32.totalorder %v987_v25, 0  ;;  %vm1630_vm14 = vcmp.lt.s32.totalorder %v3866_v61, 2  ;;  %v1766_v46 = vand.u32 31, %v1764_v40  ;;  %v543_v58 = vor.u32 %v3844_v7, %v3840_v52 }
 0x100   : > { %v811_v26 = vadd.s32 3, %v794_v13  ;;  %vm1143_vm2 = vcmp.gt.s32.totalorder %v1142_v31, 0  ;;  %v3917_v41 = vsel %vm1630_vm14, %v1641_v9, %v1643_v11  ;;  %v3922_v62 = vsel %vm392_vm4, %v3816_v6, 920167782 }
 0x101   : > { %v3924_v19 = vsel %vm3049_vm12, 0, %v3048_v23  ;;  %v1640_v0 = vsel %vm1630_vm14, %v1637_v20, %v1639_v38  ;;  %v3928_v44 = vshll.u32 %v1605_v47, 8  ;;  %v6921_v52 = vor.u32 %v3786_v56, %v3810_v60 }
 0x102   : > { %v3940_v16 = vsel %vm6766_vm5, %v3903_v49, 920167782  ;;  %v989_v59 = vsel %vm988_vm13, %v987_v25, 0  ;;  %v789_v13 = vxor.u32 2147483648, %v788_v15  ;;  %v1144_v23 = vsel %vm1143_vm2, %v1142_v31, 0 }
 0x103   : > { %v3935_v7 = vsel %vm392_vm4, %v6921_v52, 1326507024  ;;  %6922 = vst [vmem:[#allocation46_spill] sm:$0xff] %v3940_v16  ;;  %v6738_v48 = vshrl.u32 %v3917_v41, 16  ;;  %v3943_v14 = vsub.s32 32, %v1766_v46  ;;  %v3949_v56 = vand.u32 3, %v811_v26 }
 0x104   : > { %v3947_v21 = vsel %vm6766_vm5, %v543_v58, 1326507024  ;;  %v936_v60 = vsub.s32 4294967266, %v3924_v19  ;;  %v1671_v57 = vshrl.u32 %v1640_v0, 16  ;;  %v916_v47 = vadd.s32 %v3658_v12, %v3644_v35 }
 0x105   : > { %6923 = vst [vmem:[#allocation47_spill] sm:$0xff] %v3943_v14  ;;  %v3954_v9 = vshrl.u32 %v989_v59, 5  ;;  %v1646_v25 = vand.u32 65535, %v3928_v44  ;;  %v3959_v20 = vand.u32 31, %v989_v59  ;;  %v3961_v38 = vshrl.u32 %v1144_v23, 5 }
 0x106   : > { %6924 = vst [vmem:[#allocation48_spill] sm:$0xff] %v3947_v21  ;;  %v3963_v58 = vand.u32 31, %v1144_v23  ;;  %v3967_v26 = vsel %vm669_vm1, %v789_v13, %v788_v15  ;;  %v1670_v12 = vand.u32 65535, %v1640_v0  ;;  %v1779_v52 = vshrl.u32 %v6912_v63, %v3943_v14 }
 0x107   : > { %6925 = vst [vmem:[#allocation49_spill] sm:$0xff] %v3949_v56  ;;  %v3971_v35 = vmul.u32 %v6738_v48, %v1646_v25  ;;  %v932_v11 = vsub.s32 32, %v3924_v19  ;;  %v937_v59 = vadd.s32 127, %v936_v60  ;;  %v1647_v31 = vshrl.u32 %v3928_v44, 16 }
 0x108   : > { %6926 = vst [vmem:[#allocation50_spill] sm:$0xff] %v3954_v9  ;;  %v3977_v50 = vmul.u32 %v1671_v57, %v1646_v25  ;;  %v1648_v23 = vand.u32 65535, %v3917_v41  ;;  %v6930_v15 = vand.u32 2147483647, %v3792_v43  ;;  %v1778_v4 = vshll.u32 %v6902_v8, %v1766_v46 }
 0x109   : > { %6927 = vst [vmem:[#allocation51_spill] sm:$0xff] %v3959_v20  ;;  %v1782_v0 = vshrl.u32 %v6904_v53, %v3943_v14  ;;  %v3985_v48 = vshrl.u32 %v1764_v40, 5  ;;  %v1770_v5 = vshrl.u32 %v6917_v28, %v3943_v14  ;;  %v1773_v60 = vshrl.u32 %v6916_v27, %v3943_v14 }
 0x10a   : > { %6928 = vst [vmem:[#allocation52_spill] sm:$0xff] %v3961_v38  ;;  %v1759_v13 = vand.u32 8388607, %v6930_v15  ;;  %v1776_v34 = vshrl.u32 %v6902_v8, %v3943_v14  ;;  %v1654_v32 = vshll.u32 %v3971_v35, 16  ;;  %v1672_v43 = vmul.u32 %v1670_v12, %v1646_v25 }
 0x10b   : > { %6929 = vst [vmem:[#allocation53_spill] sm:$0xff] %v3963_v58  ;;  %v1780_v15 = vor.u32 %v1779_v52, %v1778_v4  ;;  %v1781_v38 = vshll.u32 %v6912_v63, %v1766_v46  ;;  %v1676_v29 = vshll.u32 %v3977_v50, 16  ;;  %v1769_v40 = vshll.u32 %v6919_v39, %v1766_v46 }
 0x10c   : > { %v1772_v49 = vshll.u32 %v6917_v28, %v1766_v46  ;;  %v1775_v21 = vshll.u32 %v6916_v27, %v1766_v46  ;;  %v1650_v16 = vmul.u32 %v1648_v23, %v1646_v25  ;;  %v3999_v56 = vmul.u32 %v1648_v23, %v1647_v31 }
 0x10d   : > { %v4001_v17 = vmul.u32 %v1670_v12, %v1647_v31  ;;  %v1783_v10 = vor.u32 %v1782_v0, %v1781_v38  ;;  %v4003_v54 = vor.u32 %v1770_v5, %v1769_v40  ;;  %vm1787_vm1 = vcmp.lt.s32.totalorder %v3985_v48, 4 }
 0x10e   : > { %v4005_v24 = vor.u32 %v1773_v60, %v1772_v49  ;;  %v4007_v4 = vor.u32 %v1776_v34, %v1775_v21  ;;  %vm824_vm7 = vcmp.lt.s32.totalorder %v3394_v36, 0  ;;  %v934_v52 = vshrl.u32 %v916_v47, %v932_v11 }
 0x10f   : > { %v938_v14 = vshll.u32 %v937_v59, 23  ;;  %v1660_v9 = vadd.s32 %v1654_v32, %v1650_v16  ;;  %v1793_v46 = vsel %vm1787_vm1, %v1780_v15, 920167782  ;;  %vm1658_vm12 = vc.u32 %v1650_v16, %v1654_v32 }
 0x110   : > { %v1675_v25 = vmul.u32 %v1671_v57, %v1647_v31  ;;  %vm1680_vm13 = vc.u32 %v1672_v43, %v1676_v29  ;;  %v4013_v38 = vadd.s32 %v1676_v29, %v1672_v43  ;;  %v1656_v5 = vshll.u32 %v3999_v56, 16 }
 0x111   : > { %vm1784_vm2 = vcmp.lt.s32.totalorder %v3985_v48, 1  ;;  %vm1786_vm0 = vcmp.lt.s32.totalorder %v3985_v48, 3  ;;  %v1797_v34 = vsel %vm1787_vm1, %v1783_v10, 1326507024  ;;  %v6931_v49 = vand.u32 2147483647, %v3394_v36 }
 0x112   : > { %v6768_v32 = vshll.u32 %v4001_v17, 16  ;;  %v1760_v16 = vor.u32 8388608, %v1759_v13  ;;  %v1792_v29 = vsel %vm1784_vm2, %v4003_v54, %v4005_v24  ;;  %v1794_v43 = vsel %vm1786_vm0, %v4007_v4, %v1793_v46 }
 0x113   : > { %vm4022_vm15 = vcmp.le.f32.partialorder %v6931_v49, 0.7853982  ;;  %v6934_v10 = vshrl.u32 %v3917_v41, 16  ;;  %v6935_v47 = vmov 0   ;;  %vm1662_vm11 = vc.u32 %v1660_v9, %v1656_v5 }
 0x114   : > { %v1659_v11 = vsel %vm1658_vm12, 1, %v6935_v47  ;;  %v1681_v12 = vsel %vm1680_vm13, 1, %v6935_v47  ;;  %vm1684_vm10 = vc.u32 %v4013_v38, %v6768_v32  ;;  %vm1785_vm5 = vcmp.lt.s32.totalorder %v3985_v48, 2 }
 0x115   : > { %v1653_v57 = vmul.u32 %v6934_v10, %v1647_v31  ;;  %v1796_v59 = vsel %vm1784_vm2, %v4005_v24, %v4007_v4  ;;  %v1798_v41 = vsel %vm1786_vm0, %v1780_v15, %v1797_v34  ;;  %v933_v31 = vshll.u32 %v3788_v3, %v3924_v19 }
 0x116   : > { %v939_v9 = vor.u32 4788187, %v938_v14  ;;  %v4051_v23 = vsub.s32 32, %v3959_v20  ;;  %v4055_v13 = vsel %vm1785_vm5, %v1792_v29, %v1794_v43  ;;  %v4061_v0 = vsel %vm3848_vm3, %v3390_v33, %v3967_v26 }
 0x117   : > { %v1661_v60 = vadd.s32 %v1659_v11, %v1653_v57  ;;  %v1683_v40 = vadd.s32 %v1681_v12, %v1675_v25  ;;  %v4063_v15 = vshll.u32 %v1760_v16, 8  ;;  %v935_v46 = vor.u32 %v934_v52, %v933_v31  ;;  %v3142_v31 = vld [vmem:[%s6682_s4] sm:$0x1] }
 0x118   : > { %6936 = vst [vmem:[#allocation54_spill] sm:$0xff] %v4051_v23  ;;  %v1663_v3 = vsel %vm1662_vm11, 1, %v6935_v47  ;;  %v1685_v19 = vsel %vm1684_vm10, 1, %v6935_v47  ;;  %v4069_v14 = vsel %vm1785_vm5, %v1796_v59, %v1798_v41  ;;  %v6937_v5 = vsub.s32 4, %v3743_v45 }
 0x119   : > { %v4078_v26 = vshll.u32 %v6902_v8, %v3959_v20  ;;  %v4082_v52 = vshll.u32 %v6912_v63, %v3959_v20  ;;  %v6767_v25 = vshrl.u32 %v4055_v13, 16  ;;  %v4087_v34 = vmul.f32 %v4061_v0, %v4061_v0 }
 0x11a   : > { %v947_v55 = vsel %vm824_vm7, %v6937_v5, %v3743_v45  ;;  %v940_v49 = vand.u32 2147483647, %v939_v9  ;;  %v4091_v16 = vshrl.u32 %v6912_v63, %v4051_v23  ;;  %v1665_v45 = vadd.s32 %v1663_v3, %v1661_v60 }
 0x11b   : > { %v1687_v29 = vadd.s32 %v1685_v19, %v1683_v40  ;;  %v1801_v43 = vand.u32 65535, %v4063_v15  ;;  %v1804_v10 = vshrl.u32 %v4069_v14, 16  ;;  %v3215_v57 = vmov 1  }
 0x11c   : > { %3140 = vset.pattern.permute.xlu1 %v3215_v57  ;;  %3141 = vset.pattern.permute.xlu0 %v3215_v57  ;;  %v942_v11 = vcvt.s32.f32 %v935_v46  ;;  %v949_v12 = vsel %vm4022_vm15, 0, %v947_v55  ;;  %v4099_v59 = vshrl.u32 %v6904_v53, %v4051_v23  ;;  %v4102_v41 = vsub.s32 32, %v3963_v58 }
 0x11d   : > { %2943 = vperm.xlu1 %3140, %v3142_v31   ;;  %v1634_v9 = vsel %vm1632_vm6, %v3884_v1, 2102212464  ;;  %v1655_v60 = vshrl.u32 %v3971_v35, 16  ;;  %v1677_v40 = vshrl.u32 %v3977_v50, 16  ;;  %v4114_v46 = vmul.u32 %v6767_v25, %v1801_v43 }
 0x11e   : > { %6938 = vst [vmem:[#allocation55_spill] sm:$0xff] %v4102_v41  ;;  %v803_v3 = vmul.f32 -0.00019511016, %v4087_v34  ;;  %v4117_v19 = vmul.f32 %v942_v11, %v940_v49  ;;  %v4121_v5 = vshll.u32 %v6902_v8, %v3963_v58  ;;  %v1613_v55 = vshrl.u32 %v6919_v39, %v3825_v37 }
 0x11f   : > { %v1666_v1 = vadd.s32 %v1665_v45, %v1655_v60  ;;  %v1688_v57 = vadd.s32 %v1687_v29, %v1677_v40  ;;  %v4125_v35 = vmul.u32 %v1804_v10, %v1801_v43  ;;  %v1825_v50 = vand.u32 65535, %v4055_v13 }
 0x120   : > { %6939 = vst [vmem:[#allocation56_spill] sm:$0xff] %v4121_v5  ;;  %v4128_v31 = vadd.s32 3, %v949_v12  ;;  %v1633_v49 = vsel %vm1629_vm8, %v1613_v55, %v3889_v42  ;;  %v1635_v11 = vsel %vm1631_vm9, %v3882_v22, %v1634_v9  ;;  %v1657_v37 = vshrl.u32 %v3999_v56, 16 }
 0x121   : > { %v1679_v45 = vshrl.u32 %v4001_v17, 16  ;;  %v1803_v29 = vand.u32 65535, %v4069_v14  ;;  %v1831_v60 = vshll.u32 %v4114_v46, 16  ;;  %v796_v12 = vmul.f32 -0.001358992, %v4087_v34 }
 0x122   : > { %v804_v40 = vadd.f32 0.008332121, %v803_v3  ;;  %v944_v32 = vxor.u32 2147483648, %v4117_v19  ;;  %v1802_v42 = vshrl.u32 %v4063_v15, 16  ;;  %v4144_v55 = vadd.s32 %v1666_v1, %v1657_v37 }
 0x123   : > { %v1689_v22 = vadd.s32 %v1688_v57, %v1679_v45  ;;  %v1809_v9 = vshll.u32 %v4125_v35, 16  ;;  %v1827_v25 = vmul.u32 %v1825_v50, %v1801_v43  ;;  %v1636_v56 = vsel %vm1630_vm14, %v1633_v49, %v1635_v11 }
 0x124   : > { %v6940_v14 = vshll.u32 %v4001_v17, 16  ;;  %v4154_v23 = vmul.u32 %v1825_v50, %v1802_v42  ;;  %v6941_v3 = vand.u32 2147483647, %v3613_v2  ;;  %v1805_v5 = vmul.u32 %v1803_v29, %v1801_v43 }
 0x125   : > { %v4158_v1 = vmul.u32 %v1803_v29, %v1802_v42  ;;  %vm1835_vm10 = vc.u32 %v1827_v25, %v1831_v60  ;;  %v375_v57 = vshrl.u32 %v6917_v28, %v3755_v51  ;;  %v4162_v37 = vadd.s32 %v1831_v60, %v1827_v25 }
 0x126   : > { %v4152_v20 = vadd.s32 %v4013_v38, %v6940_v14  ;;  %v364_v33 = vand.u32 8388607, %v6941_v3  ;;  %v374_v17 = vshll.u32 %v6919_v39, %v3724_v18  ;;  %v377_v61 = vshll.u32 %v6917_v28, %v3724_v18 }
 0x127   : > { %v378_v38 = vshrl.u32 %v6916_v27, %v3755_v51  ;;  %v1693_v43 = vadd.s32 1, %v1689_v22  ;;  %vm1813_vm3 = vc.u32 %v1805_v5, %v1809_v9  ;;  %v1815_v50 = vadd.s32 %v1809_v9, %v1805_v5 }
 0x128   : > { %vm1692_vm11 = vc.u32 %v4144_v55, %v4152_v20  ;;  %v6777_v49 = vshll.u32 %v4154_v23, 16  ;;  %v365_v11 = vor.u32 8388608, %v364_v33  ;;  %v4173_v25 = vor.u32 %v375_v57, %v374_v17 }
 0x129   : > { %v4175_v45 = vor.u32 %v378_v38, %v377_v61  ;;  %v1811_v29 = vshll.u32 %v4158_v1, 16  ;;  %v1836_v60 = vsel %vm1835_vm10, 1, %v6935_v47  ;;  %v380_v14 = vshll.u32 %v6916_v27, %v3724_v18 }
 0x12a   : > { %v381_v3 = vshrl.u32 %v6902_v8, %v3755_v51  ;;  %v1808_v2 = vmul.u32 %v1804_v10, %v1802_v42  ;;  %v1814_v5 = vsel %vm1813_vm3, 1, %v6935_v47  ;;  %v6942_v9 = vshrl.u32 %v4055_v13, 16 }
 0x12b   : > { %vm1839_vm6 = vc.u32 %v4162_v37, %v6777_v49  ;;  %vm1817_vm8 = vc.u32 %v1815_v50, %v1811_v29  ;;  %vm389_vm9 = vcmp.lt.s32.totalorder %v3771_v30, 1  ;;  %vm391_vm14 = vcmp.lt.s32.totalorder %v3771_v30, 3 }
 0x12c   : > { %v1830_v33 = vmul.u32 %v6942_v9, %v1802_v42  ;;  %v4189_v57 = vor.u32 %v381_v3, %v380_v14  ;;  %v397_v10 = vsel %vm389_vm9, %v4173_v25, %v4175_v45  ;;  %v403_v13 = vsel %vm391_vm14, %v3816_v6, %v3935_v7 }
 0x12d   : > { %v4201_v42 = vshll.u32 %v365_v11, 8  ;;  %v1816_v17 = vadd.s32 %v1814_v5, %v1808_v2  ;;  %v1840_v61 = vsel %vm1839_vm6, 1, %v6935_v47  ;;  %vm390_vm12 = vcmp.lt.s32.totalorder %v3771_v30, 2 }
 0x12e   : > { %v1838_v18 = vadd.s32 %v1836_v60, %v1830_v33  ;;  %v399_v38 = vsel %vm391_vm14, %v4189_v57, %v3922_v62  ;;  %v4211_v50 = vor.u32 %v4091_v16, %v4078_v26  ;;  %v1818_v29 = vsel %vm1817_vm8, 1, %v6935_v47 }
 0x12f   : > { %v4216_v6 = vsel %vm390_vm12, %v397_v10, %v399_v38  ;;  %v401_v2 = vsel %vm389_vm9, %v4175_v45, %v4189_v57  ;;  %v797_v7 = vadd.f32 0.041655596, %v796_v12  ;;  %v945_v62 = vsel %vm824_vm7, %v944_v32, %v4117_v19 }
 0x130   : > { %6943 = vst [vmem:[#allocation57_spill] sm:$0xff] %v4211_v50  ;;  %v1694_v26 = vsel %vm1692_vm11, %v1693_v43, %v1689_v22  ;;  %v404_v16 = vsel %vm390_vm12, %v401_v2, %v403_v13  ;;  %v1690_v11 = vmul.u32 %v3928_v44, %v1636_v56  ;;  %v1842_v60 = vadd.s32 %v1840_v61, %v1838_v18  ;;  %v6945_v2 = vld [vmem:[#allocation47_spill] sm:$0xff] }
 0x131   : > { %v406_v14 = vand.u32 65535, %v4201_v42  ;;  %v409_v3 = vshrl.u32 %v404_v16, 16  ;;  %v805_v5 = vmul.f32 %v804_v40, %v4087_v34  ;;  %v1820_v9 = vadd.s32 %v1818_v29, %v1816_v17  ;;  %v6944_v29 = vld [vmem:[#allocation50_spill] sm:$0xff] }
 0x132   : > { %v431_v32 = vshrl.u32 %v4216_v6, 16  ;;  %v4239_v19 = vsel %vm4022_vm15, %v3394_v36, %v945_v62  ;;  %v4241_v22 = vadd.s32 %v1694_v26, %v1690_v11  ;;  %v1832_v44 = vshrl.u32 %v4114_v46, 16 }
 0x133   : > { %v4244_v56 = vmul.u32 %v409_v3, %v406_v14  ;;  %v4248_v40 = vshrl.u32 %v6912_v63, %v4102_v41  ;;  %v1810_v43 = vshrl.u32 %v4125_v35, 16  ;;  %v430_v33 = vand.u32 65535, %v4216_v6 }
 0x134   : > { %v4252_v18 = vmul.u32 %v431_v32, %v406_v14  ;;  %v798_v21 = vmul.f32 %v797_v7, %v4087_v34  ;;  %v4257_v10 = vshll.u32 %v6912_v63, %v3963_v58  ;;  %v1843_v13 = vadd.s32 %v1842_v60, %v1832_v44 }
 0x135   : > { %v408_v46 = vand.u32 65535, %v404_v16  ;;  %v806_v17 = vadd.f32 -0.16666654, %v805_v5  ;;  %v4261_v61 = vmul.f32 %v4239_v19, %v4239_v19  ;;  %v1821_v38 = vadd.s32 %v1820_v9, %v1810_v43 }
 0x136   : > { %v407_v35 = vshrl.u32 %v4201_v42, 16  ;;  %vm1012_vm15 = vcmp.lt.s32.totalorder %v6944_v29, 4  ;;  %v1696_v6 = vadd.s32 536870912, %v4241_v22  ;;  %v1768_v7 = vshrl.u32 %v6919_v39, %v6945_v2 }
 0x137   : > { %v1834_v62 = vshrl.u32 %v4154_v23, 16  ;;  %v414_v26 = vshll.u32 %v4244_v56, 16  ;;  %v1812_v16 = vshrl.u32 %v4158_v1, 16  ;;  %v432_v11 = vmul.u32 %v430_v33, %v406_v14 }
 0x138   : > { %v4271_v60 = vmul.u32 %v430_v33, %v407_v35  ;;  %v436_v5 = vshll.u32 %v4252_v18, 16  ;;  %v1789_v9 = vsel %vm1787_vm1, %v4007_v4, 2102212464  ;;  %v410_v43 = vmul.u32 %v408_v46, %v406_v14 }
 0x139   : > { %v1844_v44 = vadd.s32 %v1843_v13, %v1834_v62  ;;  %v4277_v12 = vmul.u32 %v408_v46, %v407_v35  ;;  %v799_v2 = vadd.f32 -0.4999988, %v798_v21  ;;  %v958_v49 = vmul.f32 -0.00019511016, %v4261_v61 }
 0x13a   : > { %v4280_v58 = vadd.s32 %v1821_v38, %v1812_v16  ;;  %vm440_vm7 = vc.u32 %v432_v11, %v436_v5  ;;  %v4282_v1 = vshrl.u32 %v1696_v6, 30  ;;  %v1788_v33 = vsel %vm1784_vm2, %v1768_v7, %v4003_v54 }
 0x13b   : > { %vm418_vm13 = vc.u32 %v410_v43, %v414_v26  ;;  %v420_v63 = vadd.s32 %v414_v26, %v410_v43  ;;  %v1790_v4 = vsel %vm1786_vm0, %v4005_v24, %v1789_v9  ;;  %v6946_v14 = vshll.u32 %v4154_v23, 16  ;;  %v4303_v24 = vpop.permute.xlu0 %259 }
 0x13c   : > { %v6781_v13 = vshll.u32 %v4271_v60, 16  ;;  %v4296_v46 = vadd.s32 %v436_v5, %v432_v11  ;;  %v807_v38 = vmul.f32 %v806_v17, %v4087_v34  ;;  %v1848_v6 = vadd.s32 1, %v1844_v44 }
 0x13d   : > { %v4293_v21 = vadd.s32 %v4162_v37, %v6946_v14  ;;  %v416_v54 = vshll.u32 %v4277_v12, 16  ;;  %v441_v7 = vsel %vm440_vm7, 1, %v6935_v47  ;;  %v419_v23 = vsel %vm418_vm13, 1, %v6935_v47 }
 0x13e   : > { %v435_v37 = vmul.u32 %v431_v32, %v407_v35  ;;  %vm444_vm0 = vc.u32 %v4296_v46, %v6781_v13  ;;  %v4310_v62 = vand.u32 3, %v4128_v31  ;;  %v1791_v17 = vsel %vm1785_vm5, %v1788_v33, %v1790_v4  ;;  %v6949_v33 = vld [vmem:[#allocation44_spill] sm:$0xff] }
 0x13f   : > { %vm1847_vm1 = vc.u32 %v4280_v58, %v4293_v21  ;;  %v413_v26 = vmul.u32 %v409_v3, %v407_v35  ;;  %vm422_vm2 = vc.u32 %v420_v63, %v416_v54  ;;  %v959_v16 = vadd.f32 0.008332121, %v958_v49  ;;  %v6948_v3 = vld [vmem:[#allocation13_spill] sm:$0xff] }
 0x140   : > { %v4317_v11 = vsel %vm1012_vm15, %v4211_v50, 920167782  ;;  %v1698_v32 = vshll.u32 %v4282_v1, 30  ;;  %v443_v5 = vadd.s32 %v441_v7, %v435_v37  ;;  %v800_v9 = vmul.f32 %v799_v2, %v4087_v34  ;;  %v6950_v7 = vld [vmem:[#allocation36_spill] sm:$0xff] }
 0x141   : > { %6947 = vst [vmem:[#allocation47_spill] sm:$0xff] %v4317_v11  ;;  %v1849_v43 = vsel %vm1847_vm1, %v1848_v6, %v1844_v44  ;;  %v421_v14 = vadd.s32 %v419_v23, %v413_v26  ;;  %v445_v31 = vsel %vm444_vm0, 1, %v6935_v47  ;;  %v808_v13 = vadd.f32 1.0, %v807_v38 }
 0x142   : > { %v951_v48 = vmul.f32 -0.001358992, %v4261_v61  ;;  %v1845_v63 = vmul.u32 %v4063_v15, %v1791_v17  ;;  %v423_v49 = vsel %vm422_vm2, 1, %v6935_v47  ;;  %v6784_v35 = vand.u32 2147483647, %v6948_v3 }
 0x143   : > { %v530_v4 = vshrl.u32 %v6917_v28, %v6949_v33  ;;  %v533_v54 = vshrl.u32 %v6916_v27, %v6949_v33  ;;  %v536_v34 = vshrl.u32 %v6902_v8, %v6949_v33  ;;  %v960_v44 = vmul.f32 %v959_v16, %v4261_v61 }
 0x144   : > { %v4334_v2 = vsub.s32 %v4241_v22, %v1698_v32  ;;  %v4336_v38 = vadd.s32 %v1849_v43, %v1845_v63  ;;  %v447_v15 = vadd.s32 %v445_v31, %v443_v5  ;;  %v425_v6 = vadd.s32 %v423_v49, %v421_v14 }
 0x145   : > { %v529_v23 = vshll.u32 %v6919_v39, %v6950_v7  ;;  %v532_v37 = vshll.u32 %v6917_v28, %v6950_v7  ;;  %v535_v17 = vshll.u32 %v6916_v27, %v6950_v7  ;;  %v4344_v26 = vadd.f32 1.0, %v800_v9  ;;  %v4363_v7 = vpop.permute.xlu0 %328 }
 0x146   : > { %v4348_v16 = vshrl.u32 %v6904_v53, %v4102_v41  ;;  %v415_v22 = vshrl.u32 %v4244_v56, 16  ;;  %v437_v32 = vshrl.u32 %v4252_v18, 16  ;;  %v519_v5 = vand.u32 8388607, %v6784_v35 }
 0x147   : > { %v4354_v43 = vor.u32 %v530_v4, %v529_v23  ;;  %v4356_v14 = vor.u32 %v533_v54, %v532_v37  ;;  %v4358_v31 = vor.u32 %v536_v34, %v535_v17  ;;  %v4361_v9 = vmul.f32 %v808_v13, %v4061_v0  ;;  %v6951_v23 = vld [vmem:[#allocation43_spill] sm:$0xff]  ;;  %v6952_v0 = vld [vmem:[#allocation49_spill] sm:$0xff]  ;;  %v6954_v17 = vld [vmem:[#allocation48_spill] sm:$0xff] }
 0x148   : > { %v952_v63 = vadd.f32 0.041655596, %v951_v48  ;;  %v961_v49 = vadd.f32 -0.16666654, %v960_v44  ;;  %v448_v41 = vadd.s32 %v447_v15, %v437_v32  ;;  %vm1700_vm5 = vcmp.lt.s32.totalorder %v4334_v2, 0  ;;  %v6953_v15 = vld [vmem:[#allocation46_spill] sm:$0xff] }
 0x149   : > { %v1701_v56 = vsub.s32 0, %v4334_v2  ;;  %v1851_v18 = vadd.s32 536870912, %v4336_v38  ;;  %v426_v4 = vadd.s32 %v425_v6, %v415_v22  ;;  %v373_v54 = vshrl.u32 %v6919_v39, %v3755_v51  ;;  %v6955_v22 = vld [vmem:[#allocation45_spill] sm:$0xff] }
 0x14a   : > { %v439_v34 = vshrl.u32 %v4271_v60, 16  ;;  %vm544_vm10 = vcmp.lt.s32.totalorder %v6951_v23, 1  ;;  %vm546_vm11 = vcmp.lt.s32.totalorder %v6951_v23, 3  ;;  %vm814_vm3 = vcmp.eq.s32.totalorder %v6952_v0, 0 }
 0x14b   : > { %v417_v13 = vshrl.u32 %v4277_v12, 16  ;;  %v520_v48 = vor.u32 8388608, %v519_v5  ;;  %v552_v44 = vsel %vm544_vm10, %v4354_v43, %v4356_v14  ;;  %v554_v51 = vsel %vm546_vm11, %v4358_v31, %v6953_v15 }
 0x14c   : > { %v394_v6 = vsel %vm392_vm4, %v4189_v57, 2102212464  ;;  %v449_v37 = vadd.s32 %v448_v41, %v439_v34  ;;  %v556_v12 = vsel %vm544_vm10, %v4356_v14, %v4358_v31  ;;  %v558_v32 = vsel %vm546_vm11, %v6955_v22, %v6954_v17 }
 0x14d   : > { %v953_v5 = vmul.f32 %v952_v63, %v4261_v61  ;;  %v962_v35 = vmul.f32 %v961_v49, %v4261_v61  ;;  %v4396_v15 = vadd.s32 %v426_v4, %v417_v13  ;;  %vm545_vm6 = vcmp.lt.s32.totalorder %v6951_v23, 2 }
 0x14e   : > { %vm817_vm4 = vcmp.eq.s32.totalorder %v6952_v0, 2  ;;  %v1702_v41 = vsel %vm1700_vm5, %v1701_v56, %v4334_v2  ;;  %v4403_v57 = vshrl.u32 %v1851_v18, 30  ;;  %v393_v34 = vsel %vm389_vm9, %v373_v54, %v4173_v25 }
 0x14f   : > { %6956 = vst [vmem:[#allocation44_spill] sm:$0xff] %v4396_v15  ;;  %v4410_v63 = vsel %vm545_vm6, %v552_v44, %v554_v51  ;;  %vm813_vm8 = vcmp.lt.s32.totalorder %v6952_v0, 2  ;;  %v395_v49 = vsel %vm391_vm14, %v4175_v45, %v394_v6  ;;  %v6958_v4 = vshll.u32 %v4271_v60, 16  ;;  %v6962_v45 = vld [vmem:[#allocation5_spill] sm:$0xff] }
 0x150   : > { %6957 = vst [vmem:[#allocation36_spill] sm:$0xff] %v4403_v57  ;;  %v4423_v18 = vsel %vm545_vm6, %v556_v12, %v558_v32  ;;  %v4425_v25 = vshll.u32 %v520_v48, 8  ;;  %v815_v54 = vxor.u32 2147483648, %v4361_v9  ;;  %v6960_v13 = vor.u32 %v4099_v59, %v4082_v52  ;;  %v4448_v32 = vpop.permute.xlu0 %338 }
 0x151   : > { %v4419_v56 = vadd.s32 %v4296_v46, %v6958_v4  ;;  %v287_v60 = vmul.f32 %v6962_v45, %v4303_v24  ;;  %v4437_v46 = vpop.permute.xlu1 %269  ;;  %v453_v51 = vadd.s32 1, %v449_v37  ;;  %v954_v6 = vadd.f32 -0.4999988, %v953_v5 }
 0x152   : > { %v4433_v44 = vsel %vm1012_vm15, %v6960_v13, 1326507024  ;;  %v963_v12 = vadd.f32 1.0, %v962_v35  ;;  %v1703_v17 = vclz %v1702_v41  ;;  %v396_v59 = vsel %vm390_vm12, %v393_v34, %v395_v49  ;;  %v6966_v34 = vld [vmem:[#allocation52_spill] sm:$0xff] }
 0x153   : > { %6959 = vst [vmem:[#allocation43_spill] sm:$0xff] %v4419_v56  ;;  %vm452_vm9 = vc.u32 %v4396_v15, %v4419_v56  ;;  %v4443_v52 = vadd.f32 %v4363_v7, %v287_v60  ;;  %v818_v4 = vxor.u32 2147483648, %v4344_v26  ;;  %v1853_v35 = vshll.u32 %v4403_v57, 30  ;;  %v6964_v60 = vld [vmem:[#allocation56_spill] sm:$0xff] }
 0x154   : > { %6961 = vst [vmem:[#allocation49_spill] sm:$0xff] %v4433_v44  ;;  %v291_v5 = vmul.f32 %v6962_v45, %v4437_v46  ;;  %v561_v13 = vand.u32 65535, %v4425_v25  ;;  %v816_v41 = vsel %vm814_vm3, %v4344_v26, %v815_v54  ;;  %v4460_v30 = vor.u32 %v4248_v40, %v6964_v60 }
 0x155   : > { %6963 = vst [vmem:[#allocation46_spill] sm:$0xff] %v4443_v52  ;;  %vm6844_vm14 = vcmp.lt.s32.totalorder %v6966_v34, 4  ;;  %v454_v49 = vsel %vm452_vm9, %v453_v51, %v449_v37  ;;  %v955_v22 = vmul.f32 %v954_v6, %v4261_v61  ;;  %v450_v48 = vmul.u32 %v4201_v42, %v396_v59 }
 0x156   : > { %6965 = vst [vmem:[#allocation48_spill] sm:$0xff] %v4460_v30  ;;  %v6967_v50 = vshrl.u32 %v4410_v63, 16  ;;  %v4470_v44 = vadd.f32 %v4448_v32, %v291_v5  ;;  %v4473_v26 = vmul.f32 %v963_v12, %v4239_v19  ;;  %vm969_vm12 = vcmp.eq.s32.totalorder %v4310_v62, 0 }
 0x157   : > { %v3063_v40 = vadd.s32 4294967294, %v1703_v17  ;;  %v1910_v54 = vand.u32 2139095040, %v4443_v52  ;;  %v6969_v37 = vshrl.u32 %v4423_v18, 16  ;;  %v819_v42 = vsel %vm817_vm4, %v818_v4, %v4361_v9 }
 0x158   : > { %v4467_v45 = vmul.u32 %v6967_v50, %v561_v13  ;;  %6968 = vst [vmem:[#allocation45_spill] sm:$0xff] %v4470_v44  ;;  %v4485_v50 = vsub.s32 %v4336_v38, %v1853_v35  ;;  %v4487_v51 = vadd.s32 %v454_v49, %v450_v48  ;;  %v585_v19 = vand.u32 65535, %v4410_v63 }
 0x159   : > { %v4479_v61 = vmul.u32 %v6969_v37, %v561_v13  ;;  %v4492_v6 = vsel %vm813_vm8, %v816_v41, %v819_v42  ;;  %v1163_v12 = vor.u32 %v4348_v16, %v4257_v10  ;;  %v4499_v17 = vsel %vm6844_vm14, %v4460_v30, 920167782  ;;  %v6972_v42 = vld [vmem:[#allocation6_spill] sm:$0xff]  ;;  %v6973_v30 = vld [vmem:[#allocation7_spill] sm:$0xff] }
 0x15a   : > { %6970 = vst [vmem:[#allocation5_spill] sm:$0xff] %v4485_v50  ;;  %v563_v9 = vand.u32 65535, %v4423_v18  ;;  %v956_v38 = vadd.f32 1.0, %v955_v22  ;;  %v562_v48 = vshrl.u32 %v4425_v25, 16  ;;  %v591_v59 = vshll.u32 %v4467_v45, 16 }
 0x15b   : > { %6971 = vst [vmem:[#allocation56_spill] sm:$0xff] %v4499_v17  ;;  %v2530_v4 = vand.u32 2139095040, %v4470_v44  ;;  %v970_v0 = vxor.u32 2147483648, %v4473_v26  ;;  %vm3064_vm7 = vcmp.lt.s32.totalorder %v3063_v40, 0  ;;  %v1911_v35 = vshrl.u32 %v1910_v54, 23 }
 0x15c   : > { %v569_v10 = vshll.u32 %v4479_v61, 16  ;;  %v1856_v16 = vsub.s32 0, %v4485_v50  ;;  %v456_v5 = vadd.s32 536870912, %v4487_v51  ;;  %v587_v41 = vmul.u32 %v585_v19, %v561_v13 }
 0x15d   : > { %v4509_v60 = vmul.u32 %v585_v19, %v562_v48  ;;  %vm972_vm13 = vcmp.eq.s32.totalorder %v4310_v62, 2  ;;  %vm1855_vm1 = vcmp.lt.s32.totalorder %v4485_v50, 0  ;;  %v565_v22 = vmul.u32 %v563_v9, %v561_v13 }
 0x15e   : > { %v4513_v49 = vmul.u32 %v563_v9, %v562_v48  ;;  %v2531_v37 = vshrl.u32 %v2530_v4, 23  ;;  %vm968_vm0 = vcmp.lt.s32.totalorder %v4310_v62, 2  ;;  %v973_v54 = vxor.u32 2147483648, %v956_v38 }
 0x15f   : > { %v288_v52 = vmul.f32 %v6972_v42, %v4303_v24  ;;  %vm595_vm2 = vc.u32 %v587_v41, %v591_v59  ;;  %v4518_v17 = vadd.s32 %v591_v59, %v587_v41  ;;  %vm810_vm5 = vweird.f32 %v6973_v30 }
 0x160   : > { %v1706_v19 = vsel %vm3064_vm7, 0, %v3063_v40  ;;  %vm573_vm3 = vc.u32 %v565_v22, %v569_v10  ;;  %v575_v11 = vadd.s32 %v569_v10, %v565_v22  ;;  %v3080_v29 = vadd.s32 4294967169, %v2531_v37 }
 0x161   : > { %v971_v13 = vsel %vm969_vm12, %v956_v38, %v970_v0  ;;  %v1857_v9 = vsel %vm1855_vm1, %v1856_v16, %v4485_v50  ;;  %v4525_v4 = vshrl.u32 %v456_v5, 30  ;;  %v593_v3 = vshll.u32 %v4509_v60, 16 }
 0x162   : > { %vm965_vm4 = vweird.f32 %v3394_v36  ;;  %v3068_v24 = vadd.s32 4294967169, %v1911_v35  ;;  %v571_v59 = vshll.u32 %v4513_v49, 16  ;;  %v596_v41 = vsel %vm595_vm2, 1, %v6935_v47 }
 0x163   : > { %v2537_v40 = vadd.s32 1, %v3080_v29  ;;  %v1711_v57 = vsub.s32 4294967266, %v1706_v19  ;;  %v574_v10 = vsel %vm573_vm3, 1, %v6935_v47  ;;  %v6974_v22 = vshrl.u32 %v4410_v63, 16 }
 0x164   : > { %vm599_vm8 = vc.u32 %v4518_v17, %v593_v3  ;;  %v1858_v0 = vclz %v1857_v9  ;;  %v6975_v16 = vshrl.u32 %v4423_v18, 16  ;;  %vm577_vm9 = vc.u32 %v575_v11, %v571_v59 }
 0x165   : > { %v590_v38 = vmul.u32 %v6974_v22, %v562_v48  ;;  %vm2538_vm12 = vcmp.gt.s32.totalorder %v2537_v40, 0  ;;  %v1707_v35 = vsub.s32 32, %v1706_v19  ;;  %v458_v37 = vshll.u32 %v4525_v4, 30 }
 0x166   : > { %v568_v5 = vmul.u32 %v6975_v16, %v562_v48  ;;  %v2539_v56 = vsel %vm2538_vm12, %v2537_v40, 0  ;;  %v4541_v15 = vadd.f32 %v4363_v7, %v288_v52  ;;  %v1917_v63 = vadd.s32 1, %v3068_v24 }
 0x167   : > { %v598_v29 = vadd.s32 %v596_v41, %v590_v38  ;;  %v600_v50 = vsel %vm599_vm8, 1, %v6935_v47  ;;  %v974_v9 = vsel %vm972_vm13, %v973_v54, %v4473_v26  ;;  %v1691_v11 = vadd.s32 %v4152_v20, %v4144_v55 }
 0x168   : > { %6976 = vst [vmem:[#allocation6_spill] sm:$0xff] %v4541_v15  ;;  %v576_v22 = vadd.s32 %v574_v10, %v568_v5  ;;  %v1712_v18 = vadd.s32 127, %v1711_v57  ;;  %v578_v48 = vsel %vm577_vm9, 1, %v6935_v47  ;;  %v975_v59 = vsel %vm968_vm0, %v971_v13, %v974_v9 }
 0x169   : > { %v4554_v7 = vsel %vm6844_vm14, %v1163_v12, 1326507024  ;;  %v3066_v52 = vadd.s32 4294967294, %v1858_v0  ;;  %v2541_v24 = vand.u32 31, %v2539_v56  ;;  %v4559_v41 = vsel %vm810_vm5, nan, %v4492_v6 }
 0x16a   : > { %6977 = vst [vmem:[#allocation7_spill] sm:$0xff] %v4554_v7  ;;  %v1709_v26 = vshrl.u32 %v1691_v11, %v1707_v35  ;;  %v4562_v20 = vsub.s32 %v4487_v51, %v458_v37  ;;  %v602_v55 = vadd.s32 %v600_v50, %v598_v29  ;;  %v292_v62 = vmul.f32 %v6972_v42, %v4437_v46 }
 0x16b   : > { %vm1918_vm7 = vcmp.gt.s32.totalorder %v1917_v63, 0  ;;  %v2065_v57 = vand.u32 2139095040, %v4541_v15  ;;  %v580_v12 = vadd.s32 %v578_v48, %v576_v22  ;;  %v4569_v54 = vsel %vm965_vm4, nan, %v975_v59 }
 0x16c   : > { %v1708_v30 = vshll.u32 %v4334_v2, %v1706_v19  ;;  %v1713_v6 = vshll.u32 %v1712_v18, 23  ;;  %v592_v13 = vshrl.u32 %v4467_v45, 16  ;;  %v1721_v51 = vsub.s32 4, %v4282_v1 }
 0x16d   : > { %vm3067_vm13 = vcmp.lt.s32.totalorder %v3066_v52, 0  ;;  %v570_v50 = vshrl.u32 %v4479_v61, 16  ;;  %v4575_v40 = vsub.s32 32, %v2541_v24  ;;  %v4579_v42 = vsel %vm1918_vm7, %v1917_v63, 0 }
 0x16e   : > { %v4577_v46 = vor.u32 %v1709_v26, %v1708_v30  ;;  %v461_v36 = vsub.s32 0, %v4562_v20  ;;  %v603_v10 = vadd.s32 %v602_v55, %v592_v13  ;;  %v2066_v38 = vshrl.u32 %v2065_v57, 23 }
 0x16f   : > { %vm460_vm1 = vcmp.lt.s32.totalorder %v4562_v20, 0  ;;  %vm6978_vm0 = vcmp.lt.s32.totalorder %v6951_v23, 4  ;;  %v581_v45 = vadd.s32 %v580_v12, %v570_v50  ;;  %v4586_v19 = vor.u32 4788187, %v1713_v6  ;;  %v6981_v6 = vld [vmem:[#allocation15_spill] sm:$0xff] }
 0x170   : > { %v549_v2 = vsel %vm6978_vm0, %v4358_v31, 2102212464  ;;  %v4588_v61 = vsel %vm3067_vm13, 0, %v3066_v52  ;;  %v528_v0 = vshrl.u32 %v6919_v39, %v6949_v33  ;;  %v594_v16 = vshrl.u32 %v4509_v60, 16 }
 0x171   : > { %v572_v5 = vshrl.u32 %v4513_v49, 16  ;;  %v4595_v35 = vadd.f32 %v4448_v32, %v292_v62  ;;  %v6980_v37 = vmov 920167782   ;;  %v2557_v31 = vshrl.u32 %v6904_v53, %v4575_v40 }
 0x172   : > { %v2554_v29 = vshrl.u32 %v6980_v37, %v4575_v40  ;;  %v462_v63 = vsel %vm460_vm1, %v461_v36, %v4562_v20  ;;  %v548_v22 = vsel %vm544_vm10, %v528_v0, %v4354_v43  ;;  %v550_v33 = vsel %vm546_vm11, %v4356_v14, %v549_v2 }
 0x173   : > { %6979 = vst [vmem:[#allocation58_spill] sm:$0xff] %v4595_v35  ;;  %v604_v49 = vadd.s32 %v603_v10, %v594_v16  ;;  %v4608_v9 = vadd.s32 %v581_v45, %v572_v5  ;;  %v6796_v32 = vand.u32 2147483647, %v4470_v44  ;;  %v2553_v11 = vshll.u32 %v6902_v8, %v2541_v24 }
 0x174   : > { %v2556_v18 = vshll.u32 %v6980_v37, %v2541_v24  ;;  %v4613_v48 = vshrl.u32 %v2539_v56, 5  ;;  %v2545_v59 = vshrl.u32 %v6917_v28, %v4575_v40  ;;  %v2548_v43 = vshrl.u32 %v6916_v27, %v4575_v40 }
 0x175   : > { %v2551_v14 = vshrl.u32 %v6902_v8, %v4575_v40  ;;  %v4624_v52 = vadd.s32 %v4518_v17, %v593_v3  ;;  %v2555_v26 = vor.u32 %v2554_v29, %v2553_v11  ;;  %v2685_v62 = vand.u32 2139095040, %v4595_v35 }
 0x176   : > { %v2558_v55 = vor.u32 %v2557_v31, %v2556_v18  ;;  %v608_v56 = vadd.s32 1, %v604_v49  ;;  %v2544_v57 = vshll.u32 %v6919_v39, %v2541_v24  ;;  %v2547_v12 = vshll.u32 %v6917_v28, %v2541_v24 }
 0x177   : > { %v2550_v30 = vshll.u32 %v6916_v27, %v2541_v24  ;;  %vm1599_vm10 = vcmp.lt.s32.totalorder %v6981_v6, 0  ;;  %v463_v13 = vclz %v462_v63  ;;  %v551_v60 = vsel %vm545_vm6, %v548_v22, %v550_v33 }
 0x178   : > { %vm607_vm11 = vc.u32 %v4608_v9, %v4624_v52  ;;  %v2534_v3 = vand.u32 8388607, %v6796_v32  ;;  %v4637_v17 = vor.u32 %v2545_v59, %v2544_v57  ;;  %v4639_v50 = vor.u32 %v2548_v43, %v2547_v12 }
 0x179   : > { %v4641_v36 = vor.u32 %v2551_v14, %v2550_v30  ;;  %vm2562_vm2 = vcmp.lt.s32.totalorder %v4613_v48, 4  ;;  %v4645_v24 = vand.u32 31, %v4579_v42  ;;  %v3071_v10 = vadd.s32 4294967169, %v2066_v38 }
 0x17a   : > { %v2568_v23 = vsel %vm2562_vm2, %v2555_v26, 920167782  ;;  %v2572_v2 = vsel %vm2562_vm2, %v2558_v55, 1326507024  ;;  %v1866_v45 = vsub.s32 4294967266, %v4588_v61  ;;  %v605_v0 = vmul.u32 %v4425_v25, %v551_v60  ;;  %v2853_v55 = vpop.permute.xlu2 %2852 }
 0x17b   : > { %6982 = vst [vmem:[#allocation59_spill] sm:$0xff] %v4645_v24  ;;  %v609_v16 = vsel %vm607_vm11, %v608_v56, %v604_v49  ;;  %v2686_v5 = vshrl.u32 %v2685_v62, 23  ;;  %v3039_v29 = vadd.s32 4294967294, %v463_v13  ;;  %v2535_v31 = vor.u32 8388608, %v2534_v3 }
 0x17c   : > { %vm2559_vm6 = vcmp.lt.s32.totalorder %v4613_v48, 1  ;;  %vm2561_vm5 = vcmp.lt.s32.totalorder %v4613_v48, 3  ;;  %v1715_v33 = vand.u32 2147483647, %v4586_v19  ;;  %v1862_v49 = vsub.s32 32, %v4588_v61 }
 0x17d   : > { %v2567_v38 = vsel %vm2559_vm6, %v4637_v17, %v4639_v50  ;;  %v2569_v63 = vsel %vm2561_vm5, %v4641_v36, %v2568_v23  ;;  %v2571_v25 = vsel %vm2559_vm6, %v4639_v50, %v4641_v36  ;;  %v2573_v22 = vsel %vm2561_vm5, %v2555_v26, %v2572_v2 }
 0x17e   : > { %v2072_v11 = vadd.s32 1, %v3071_v10  ;;  %v4670_v18 = vadd.s32 %v609_v16, %v605_v0  ;;  %v1846_v59 = vadd.s32 %v4293_v21, %v4280_v58  ;;  %v4675_v43 = vsub.s32 32, %v4645_v24 }
 0x17f   : > { %vm2560_vm3 = vcmp.lt.s32.totalorder %v4613_v48, 2  ;;  %v3083_v14 = vadd.s32 4294967169, %v2686_v5  ;;  %v1867_v62 = vadd.s32 127, %v1866_v45  ;;  %vm3040_vm4 = vcmp.lt.s32.totalorder %v3039_v29, 0 }
 0x180   : > { %6983 = vst [vmem:[#allocation60_spill] sm:$0xff] %v4675_v43  ;;  %v2570_v19 = vsel %vm2560_vm3, %v2567_v38, %v2569_v63  ;;  %v4682_v26 = vsel %vm2560_vm3, %v2571_v25, %v2573_v22  ;;  %v4685_v56 = vmul.f32 %v2853_v55, %v4559_v41  ;;  %v4688_v58 = vmul.f32 %v2853_v55, %v4569_v54 }
 0x181   : > { %v4695_v21 = vsel %vm1599_vm10, %v1721_v51, %v4282_v1  ;;  %v4697_v57 = vshll.u32 %v2535_v31, 8  ;;  %v1717_v12 = vcvt.s32.f32 %v4577_v46  ;;  %v1864_v30 = vshrl.u32 %v1846_v59, %v1862_v49  ;;  %v6988_v46 = vld [vmem:[#allocation5_spill] sm:$0xff] }
 0x182   : > { %6984 = vst [vmem:[#allocation61_spill] sm:$0xff] %v4685_v56  ;;  %vm2073_vm8 = vcmp.gt.s32.totalorder %v2072_v11, 0  ;;  %v611_v13 = vadd.s32 536870912, %v4670_v18  ;;  %v4701_v41 = vsel %vm3040_vm4, 0, %v3039_v29  ;;  %v6797_v54 = vshrl.u32 %v4682_v26, 16 }
 0x183   : > { %6985 = vst [vmem:[#allocation62_spill] sm:$0xff] %v4688_v58  ;;  %v2601_v60 = vshrl.u32 %v2570_v19, 16  ;;  %v2692_v3 = vadd.s32 1, %v3083_v14  ;;  %v4704_v10 = vmul.f32 %v1717_v12, %v1715_v33  ;;  %v1868_v23 = vshll.u32 %v1867_v62, 23 }
 0x184   : > { %6986 = vst [vmem:[#allocation63_spill] sm:$0xff] %v4695_v21  ;;  %v4707_v1 = vshrl.u32 %v4579_v42, 5  ;;  %v1934_v51 = vshrl.u32 %v6980_v37, %v4675_v43  ;;  %v1863_v2 = vshll.u32 %v6988_v46, %v4588_v61  ;;  %v1933_v45 = vshll.u32 %v6902_v8, %v4645_v24  ;;  %v6993_v46 = vld [vmem:[#allocation43_spill] sm:$0xff] }
 0x185   : > { %v4717_v0 = vshll.u32 %v6980_v37, %v4645_v24  ;;  %v2576_v16 = vand.u32 65535, %v4697_v57  ;;  %v4722_v5 = vshrl.u32 %v6904_v53, %v4675_v43  ;;  %v4724_v42 = vsel %vm2073_vm8, %v2072_v11, 0 }
 0x186   : > { %6987 = vst [vmem:[#allocation64_spill] sm:$0xff] %v4707_v1  ;;  %v471_v29 = vsub.s32 4294967266, %v4701_v41  ;;  %v4727_v31 = vshrl.u32 %v611_v13, 30  ;;  %v4729_v61 = vor.u32 %v1864_v30, %v1863_v2  ;;  %vm2693_vm9 = vcmp.gt.s32.totalorder %v2692_v3, 0 }
 0x187   : > { %v4733_v38 = vmul.u32 %v6797_v54, %v2576_v16  ;;  %v4735_v63 = vmul.u32 %v2601_v60, %v2576_v16  ;;  %v4738_v22 = vor.u32 4788187, %v1868_v23  ;;  %v4740_v33 = vor.u32 %v1934_v51, %v1933_v45  ;;  %v6992_v51 = vld [vmem:[#allocation44_spill] sm:$0xff] }
 0x188   : > { %6989 = vst [vmem:[#allocation5_spill] sm:$0xff] %v4727_v31  ;;  %v2578_v49 = vand.u32 65535, %v4682_v26  ;;  %v4744_v11 = vand.u32 31, %v4724_v42  ;;  %v467_v59 = vsub.s32 32, %v4701_v41  ;;  %v2600_v14 = vand.u32 65535, %v2570_v19 }
 0x189   : > { %6990 = vst [vmem:[#allocation65_spill] sm:$0xff] %v4740_v33  ;;  %v472_v62 = vadd.s32 127, %v471_v29  ;;  %v613_v12 = vshll.u32 %v4727_v31, 30  ;;  %v2577_v30 = vshrl.u32 %v4697_v57, 16  ;;  %v2694_v13 = vsel %vm2693_vm9, %v2692_v3, 0 }
 0x18a   : > { %6991 = vst [vmem:[#allocation66_spill] sm:$0xff] %v4744_v11  ;;  %v451_v2 = vadd.s32 %v6993_v46, %v6992_v51  ;;  %v2584_v45 = vshll.u32 %v4733_v38, 16  ;;  %v2606_v32 = vshll.u32 %v4735_v63, 16  ;;  %v2696_v54 = vand.u32 31, %v2694_v13 }
 0x18b   : > { %v4758_v29 = vmul.u32 %v2578_v49, %v2577_v30  ;;  %v2580_v21 = vmul.u32 %v2578_v49, %v2576_v16  ;;  %v2602_v3 = vmul.u32 %v2600_v14, %v2576_v16  ;;  %v4760_v15 = vmul.u32 %v2600_v14, %v2577_v30 }
 0x18c   : > { %v469_v55 = vshrl.u32 %v451_v2, %v467_v59  ;;  %v473_v23 = vshll.u32 %v472_v62, 23  ;;  %v4763_v51 = vsub.s32 %v4670_v18, %v613_v12  ;;  %v6994_v46 = vand.u32 2147483647, %v4595_v35 }
 0x18d   : > { %v4767_v24 = vsub.s32 32, %v2696_v54  ;;  %vm2588_vm12 = vc.u32 %v2580_v21, %v2584_v45  ;;  %v2605_v25 = vmul.u32 %v2601_v60, %v2577_v30  ;;  %vm2610_vm7 = vc.u32 %v2602_v3, %v2606_v32 }
 0x18e   : > { %v2689_v43 = vand.u32 8388607, %v6994_v46  ;;  %v4769_v19 = vadd.s32 %v2606_v32, %v2602_v3  ;;  %v2586_v59 = vshll.u32 %v4758_v29, 16  ;;  %v2590_v49 = vadd.s32 %v2584_v45, %v2580_v21 }
 0x18f   : > { %v2700_v16 = vshrl.u32 %v6917_v28, %v4767_v24  ;;  %v2703_v18 = vshrl.u32 %v6916_v27, %v4767_v24  ;;  %v6809_v14 = vshll.u32 %v4760_v15, 16  ;;  %v2699_v62 = vshll.u32 %v6919_v39, %v2696_v54 }
 0x190   : > { %v2706_v12 = vshrl.u32 %v6902_v8, %v4767_v24  ;;  %v2709_v32 = vshrl.u32 %v6980_v37, %v4767_v24  ;;  %v2589_v60 = vsel %vm2588_vm12, 1, %v6935_v47  ;;  %v2611_v21 = vsel %vm2610_vm7, 1, %v6935_v47 }
 0x191   : > { %v2702_v2 = vshll.u32 %v6917_v28, %v2696_v54  ;;  %v2708_v45 = vshll.u32 %v6902_v8, %v2696_v54  ;;  %vm4789_vm13 = vc.u32 %v4769_v19, %v6809_v14  ;;  %v4793_v46 = vshrl.u32 %v2694_v13, 5 }
 0x192   : > { %v4795_v58 = vor.u32 %v2700_v16, %v2699_v62  ;;  %v2705_v56 = vshll.u32 %v6916_v27, %v2696_v54  ;;  %v2711_v35 = vshll.u32 %v6980_v37, %v2696_v54  ;;  %v2712_v44 = vshrl.u32 %v6904_v53, %v4767_v24 }
 0x193   : > { %v4798_v7 = vor.u32 %v2703_v18, %v2702_v2  ;;  %v2710_v34 = vor.u32 %v2709_v32, %v2708_v45  ;;  %vm6826_vm1 = vcmp.lt.s32.totalorder %v4707_v1, 4  ;;  %v616_v14 = vsub.s32 0, %v4763_v51 }
 0x194   : > { %v6997_v31 = vshrl.u32 %v4682_v26, 16  ;;  %vm2592_vm0 = vc.u32 %v2590_v49, %v2586_v59  ;;  %v4807_v16 = vor.u32 %v2706_v12, %v2705_v56  ;;  %v6998_v62 = vand.u32 2147483647, %v6981_v6 }
 0x195   : > { %v6999_v18 = vmov 0  ;;  %vm615_vm4 = vcmp.lt.s32.totalorder %v4763_v51, 0  ;;  %v2613_v54 = vadd.s32 %v2611_v21, %v2605_v25  ;;  %v2690_v32 = vor.u32 8388608, %v2689_v43 }
 0x196   : > { %v2583_v13 = vmul.u32 %v6997_v31, %v2577_v30  ;;  %vm4811_vm11 = vcmp.le.f32.partialorder %v6998_v62, 0.7853982  ;;  %v2713_v2 = vor.u32 %v2712_v44, %v2711_v35  ;;  %v2615_v26 = vsel %vm4789_vm13, 1, %v6935_v47 }
 0x197   : > { %v7000_v18 = vsel %vm4811_vm11, 4294967295, %v6999_v18  ;;  %vm2714_vm8 = vcmp.lt.s32.totalorder %v4793_v46, 1  ;;  %vm2717_vm9 = vcmp.lt.s32.totalorder %v4793_v46, 4  ;;  %v2593_v56 = vsel %vm2592_vm0, 1, %v6935_v47 }
 0x198   : > { %7001 = vst [vmem:[#allocation44_spill] sm:$0xff] %v7000_v18  ;;  %v2591_v45 = vadd.s32 %v2589_v60, %v2583_v13  ;;  %v2722_v31 = vsel %vm2714_vm8, %v4795_v58, %v4798_v7  ;;  %v2723_v43 = vsel %vm2717_vm9, %v2710_v34, 920167782  ;;  %v2727_v44 = vsel %vm2717_vm9, %v2713_v2, 1326507024  ;;  %v7003_v60 = vld [vmem:[#allocation38_spill] sm:$0xff] }
 0x199   : > { %v474_v35 = vor.u32 4788187, %v473_v23  ;;  %v617_v25 = vsel %vm615_vm4, %v616_v14, %v4763_v51  ;;  %vm2716_vm12 = vcmp.lt.s32.totalorder %v4793_v46, 3  ;;  %v2726_v30 = vsel %vm2714_vm8, %v4798_v7, %v4807_v16 }
 0x19a   : > { %v2617_v59 = vadd.s32 %v2615_v26, %v2613_v54  ;;  %vm2715_vm7 = vcmp.lt.s32.totalorder %v4793_v46, 2  ;;  %v2724_v49 = vsel %vm2716_vm12, %v4807_v16, %v2723_v43  ;;  %v2728_v12 = vsel %vm2716_vm12, %v2710_v34, %v2727_v44 }
 0x19b   : > { %v7002_v23 = vxor.u32 2147483648, %v4704_v10  ;;  %vm1754_vm13 = vcmp.lt.s32.totalorder %v7003_v60, 0  ;;  %v7004_v21 = vshll.u32 %v4562_v20, %v4701_v41  ;;  %v2595_v13 = vadd.s32 %v2593_v56, %v2591_v45 }
 0x19c   : > { %v4853_v62 = vsel %vm2715_vm7, %v2722_v31, %v2724_v49  ;;  %v7005_v54 = vand.u32 2147483647, %v4738_v22  ;;  %v7006_v34 = vcvt.s32.f32 %v4729_v61  ;;  %v2607_v26 = vshrl.u32 %v4735_v63, 16 }
 0x19d   : > { %v1720_v14 = vsel %vm1599_vm10, %v7002_v23, %v4704_v10  ;;  %v470_v3 = vor.u32 %v469_v55, %v7004_v21  ;;  %v4862_v10 = vsel %vm2715_vm7, %v2726_v30, %v2728_v12  ;;  %v4864_v43 = vshll.u32 %v2690_v32, 8 }
 0x19e   : > { %v1873_v2 = vmul.f32 %v7006_v34, %v7005_v54  ;;  %v1938_v20 = vor.u32 %v4722_v5, %v4717_v0  ;;  %v475_v41 = vand.u32 2147483647, %v474_v35  ;;  %v618_v55 = vclz %v617_v25 }
 0x19f   : > { %v2585_v45 = vshrl.u32 %v4733_v38, 16  ;;  %v4872_v61 = vsel %vm6826_vm1, %v4740_v33, 920167782  ;;  %v4875_v63 = vshrl.u32 %v4724_v42, 5  ;;  %v2618_v22 = vadd.s32 %v2617_v59, %v2607_v26  ;;  %v7014_v59 = vld [vmem:[#allocation12_spill] sm:$0xff] }
 0x1a0   : > { %7007 = vst [vmem:[#allocation43_spill] sm:$0xff] %v4872_v61  ;;  %v6812_v56 = vshrl.u32 %v4853_v62, 16  ;;  %v4881_v32 = vsel %vm4811_vm11, %v6981_v6, %v1720_v14  ;;  %v477_v0 = vcvt.s32.f32 %v470_v3  ;;  %v6813_v38 = vshrl.u32 %v4862_v10, 16 }
 0x1a1   : > { %7008 = vst [vmem:[#allocation67_spill] sm:$0xff] %v4875_v63  ;;  %v2596_v5 = vadd.s32 %v2595_v13, %v2585_v45  ;;  %v7009_v31 = vand.u32 2147483647, %v7003_v60  ;;  %v7010_v44 = vmov 0  ;;  %v1874_v42 = vxor.u32 2147483648, %v1873_v2 }
 0x1a2   : > { %v4891_v35 = vsub.s32 32, %v4744_v11  ;;  %v2609_v25 = vshrl.u32 %v4760_v15, 16  ;;  %v2731_v30 = vand.u32 65535, %v4864_v43  ;;  %vm359_vm0 = vcmp.lt.s32.totalorder %v7014_v59, 0 }
 0x1a3   : > { %vm4886_vm10 = vcmp.le.f32.partialorder %v7009_v31, 0.7853982  ;;  %v4898_v49 = vsel %vm6826_vm1, %v1938_v20, 1326507024  ;;  %v478_v12 = vmul.f32 %v477_v0, %v475_v41  ;;  %v3042_v23 = vadd.s32 4294967294, %v618_v55 }
 0x1a4   : > { %v7011_v44 = vsel %vm4886_vm10, 4294967295, %v7010_v44  ;;  %7013 = vst [vmem:[#allocation69_spill] sm:$0xff] %v4891_v35  ;;  %v2587_v14 = vshrl.u32 %v4758_v29, 16  ;;  %v2543_v21 = vshrl.u32 %v6919_v39, %v4575_v40  ;;  %v2564_v3 = vsel %vm2562_vm2, %v4641_v36, 2102212464 }
 0x1a5   : > { %7012 = vst [vmem:[#allocation68_spill] sm:$0xff] %v7011_v44  ;;  %v2619_v13 = vadd.s32 %v2618_v22, %v2609_v25  ;;  %v4908_v54 = vmul.u32 %v6812_v56, %v2731_v30  ;;  %v4912_v34 = vmul.f32 %v4881_v32, %v4881_v32  ;;  %v2088_v26 = vshll.u32 %v6902_v8, %v4744_v11 }
 0x1a6   : > { %7015 = vst [vmem:[#allocation12_spill] sm:$0xff] %v4898_v49  ;;  %v4916_v29 = vadd.s32 %v2596_v5, %v2587_v14  ;;  %v4920_v40 = vmul.u32 %v6813_v38, %v2731_v30  ;;  %v1875_v36 = vsel %vm1754_vm13, %v1874_v42, %v1873_v2  ;;  %v2089_v20 = vshrl.u32 %v6980_v37, %v4891_v35 }
 0x1a7   : > { %7016 = vst [vmem:[#allocation70_spill] sm:$0xff] %v4912_v34  ;;  %v7017_v41 = vand.u32 2147483647, %v7014_v59  ;;  %v2563_v45 = vsel %vm2559_vm6, %v2543_v21, %v4637_v17  ;;  %v2755_v22 = vand.u32 65535, %v4853_v62  ;;  %vm3043_vm4 = vcmp.lt.s32.totalorder %v3042_v23, 0 }
 0x1a8   : > { %v2565_v2 = vsel %vm2561_vm5, %v4639_v50, %v2564_v3  ;;  %v7020_v0 = vshll.u32 %v4760_v15, 16  ;;  %v2733_v31 = vand.u32 65535, %v4862_v10  ;;  %v479_v42 = vxor.u32 2147483648, %v478_v12 }
 0x1a9   : > { %vm4928_vm2 = vcmp.le.f32.partialorder %v7017_v41, 0.7853982  ;;  %v2623_v25 = vadd.s32 1, %v2619_v13  ;;  %v2732_v14 = vshrl.u32 %v4864_v43, 16  ;;  %v2761_v17 = vshll.u32 %v4908_v54, 16 }
 0x1aa   : > { %v4942_v5 = vadd.s32 %v4769_v19, %v7020_v0  ;;  %v1733_v21 = vmul.f32 -0.00019511016, %v4912_v34  ;;  %v4950_v41 = vshll.u32 %v6980_v37, %v4744_v11  ;;  %v2739_v15 = vshll.u32 %v4920_v40, 16 }
 0x1ab   : > { %v4955_v50 = vsel %vm3043_vm4, 0, %v3042_v23  ;;  %v2566_v19 = vsel %vm2560_vm3, %v2563_v45, %v2565_v2  ;;  %v2757_v3 = vmul.u32 %v2755_v22, %v2731_v30  ;;  %v4959_v0 = vmul.u32 %v2755_v22, %v2732_v14 }
 0x1ac   : > { %vm2622_vm6 = vc.u32 %v4916_v29, %v4942_v5  ;;  %v4964_v56 = vsel %vm4886_vm10, %v7003_v60, %v1875_v36  ;;  %v4966_v37 = vor.u32 %v2089_v20, %v2088_v26  ;;  %v4970_v38 = vshrl.u32 %v6904_v53, %v4891_v35 }
 0x1ad   : > { %7021 = vst [vmem:[#allocation71_spill] sm:$0xff] %v4964_v56  ;;  %v2735_v6 = vmul.u32 %v2733_v31, %v2731_v30  ;;  %v480_v23 = vsel %vm359_vm0, %v479_v42, %v478_v12  ;;  %v2624_v48 = vsel %vm2622_vm6, %v2623_v25, %v2619_v13  ;;  %v4974_v45 = vmul.u32 %v2733_v31, %v2732_v14  ;;  %v7028_v42 = vld [vmem:[#allocation18_spill] sm:$0xff] }
 0x1ae   : > { %7022 = vst [vmem:[#allocation72_spill] sm:$0xff] %v4966_v37  ;;  %v4976_v22 = vadd.s32 %v2761_v17, %v2757_v3  ;;  %v626_v2 = vsub.s32 4294967266, %v4955_v50  ;;  %v2620_v36 = vmul.u32 %v4697_v57, %v2566_v19  ;;  %vm2765_vm3 = vc.u32 %v2757_v3, %v2761_v17  ;;  %v7024_v57 = vld [vmem:[#allocation8_spill] sm:$0xff]  ;;  %v7027_v3 = vld [vmem:[#allocation14_spill] sm:$0xff] }
 0x1af   : > { %vm2743_vm5 = vc.u32 %v2735_v6, %v2739_v15  ;;  %v1734_v26 = vadd.f32 0.008332121, %v1733_v21  ;;  %v4982_v53 = vmul.f32 %v4964_v56, %v4964_v56  ;;  %v2745_v30 = vadd.s32 %v2739_v15, %v2735_v6 }
 0x1b0   : > { %v6815_v20 = vshll.u32 %v4959_v0, 16  ;;  %v4988_v12 = vsel %vm4928_vm2, %v7014_v59, %v480_v23  ;;  %v606_v13 = vadd.s32 %v4624_v52, %v4608_v9  ;;  %v4992_v31 = vadd.s32 %v2624_v48, %v2620_v36 }
 0x1b1   : > { %7023 = vst [vmem:[#allocation73_spill] sm:$0xff] %v4982_v53  ;;  %v2741_v25 = vshll.u32 %v4974_v45, 16  ;;  %v2744_v17 = vsel %vm2743_vm5, 1, %v6935_v47  ;;  %v2766_v6 = vsel %vm2765_vm3, 1, %v6935_v47  ;;  %v627_v21 = vadd.s32 127, %v626_v2 }
 0x1b2   : > { %vm2769_vm4 = vc.u32 %v4976_v22, %v6815_v20  ;;  %v7025_v15 = vshrl.u32 %v4862_v10, 16  ;;  %v7026_v9 = vshrl.u32 %v4853_v62, 16  ;;  %v1304_v23 = vshll.u32 %v6919_v39, %v7027_v3 }
 0x1b3   : > { %v5009_v48 = vmul.f32 %v4988_v12, %v4988_v12  ;;  %v622_v36 = vsub.s32 32, %v4955_v50  ;;  %vm2747_vm6 = vc.u32 %v2745_v30, %v2741_v25  ;;  %v1305_v20 = vshrl.u32 %v6917_v28, %v7028_v42  ;;  %v7029_v25 = vld [vmem:[#allocation36_spill] sm:$0xff] }
 0x1b4   : > { %v2738_v19 = vmul.u32 %v7025_v15, %v2732_v14  ;;  %v2760_v52 = vmul.u32 %v7026_v9, %v2732_v14  ;;  %v2626_v2 = vadd.s32 536870912, %v4992_v31  ;;  %v2770_v62 = vsel %vm2769_vm4, 1, %v6935_v47 }
 0x1b5   : > { %v1307_v14 = vshll.u32 %v6917_v28, %v7027_v3  ;;  %v1308_v9 = vshrl.u32 %v6916_v27, %v7028_v42  ;;  %v1310_v44 = vshll.u32 %v6916_v27, %v7027_v3  ;;  %v1311_v30 = vshrl.u32 %v6902_v8, %v7028_v42 }
 0x1b6   : > { %v2746_v10 = vadd.s32 %v2744_v17, %v2738_v19  ;;  %v2768_v15 = vadd.s32 %v2766_v6, %v2760_v52  ;;  %v628_v6 = vshll.u32 %v627_v21, 23  ;;  %v2748_v19 = vsel %vm2747_vm6, 1, %v6935_v47 }
 0x1b7   : > { %v1735_v52 = vmul.f32 %v1734_v26, %v4912_v34  ;;  %v1888_v35 = vmul.f32 -0.00019511016, %v4982_v53  ;;  %v624_v11 = vshrl.u32 %v606_v13, %v622_v36  ;;  %v7030_v61 = vand.u32 2147483647, %v7024_v57  ;;  %v7031_v36 = vld [vmem:[#allocation17_spill] sm:$0xff] }
 0x1b8   : > { %v493_v3 = vmul.f32 -0.00019511016, %v5009_v48  ;;  %v623_v49 = vshll.u32 %v4763_v51, %v4955_v50  ;;  %v5035_v18 = vshrl.u32 %v2626_v2, 30  ;;  %v2772_v1 = vadd.s32 %v2770_v62, %v2768_v15 }
 0x1b9   : > { %v1294_v33 = vand.u32 8388607, %v7030_v61  ;;  %vm6840_vm5 = vcmp.lt.s32.totalorder %v4875_v63, 4  ;;  %v2750_v21 = vadd.s32 %v2748_v19, %v2746_v10  ;;  %v5038_v17 = vor.u32 %v1305_v20, %v1304_v23 }
 0x1ba   : > { %v5040_v26 = vor.u32 %v1308_v9, %v1307_v14  ;;  %v5042_v56 = vor.u32 %v1311_v30, %v1310_v44  ;;  %v629_v13 = vor.u32 4788187, %v628_v6  ;;  %v2762_v61 = vshrl.u32 %v4908_v54, 16  ;;  %v7032_v14 = vld [vmem:[#allocation27_spill] sm:$0xff] }
 0x1bb   : > { %vm1319_vm3 = vcmp.lt.s32.totalorder %v7031_v36, 1  ;;  %vm1321_vm4 = vcmp.lt.s32.totalorder %v7031_v36, 3  ;;  %v1889_v51 = vadd.f32 0.008332121, %v1888_v35  ;;  %v625_v50 = vor.u32 %v624_v11, %v623_v49  ;;  %v7033_v49 = vld [vmem:[#allocation28_spill] sm:$0xff] }
 0x1bc   : > { %v2740_v2 = vshrl.u32 %v4920_v40, 16  ;;  %v1295_v15 = vor.u32 8388608, %v1294_v33  ;;  %v486_v10 = vmul.f32 -0.001358992, %v5009_v48  ;;  %v494_v20 = vadd.f32 0.008332121, %v493_v3 }
 0x1bd   : > { %v2628_v23 = vshll.u32 %v5035_v18, 30  ;;  %v2773_v62 = vadd.s32 %v2772_v1, %v2762_v61  ;;  %vm1320_vm6 = vcmp.lt.s32.totalorder %v7031_v36, 2  ;;  %v1327_v54 = vsel %vm1319_vm3, %v5038_v17, %v5040_v26  ;;  %v7034_v40 = vld [vmem:[#allocation23_spill] sm:$0xff] }
 0x1be   : > { %v2751_v44 = vadd.s32 %v2750_v21, %v2740_v2  ;;  %v1329_v11 = vsel %vm1321_vm4, %v5042_v56, %v7032_v14  ;;  %v630_v33 = vand.u32 2147483647, %v629_v13  ;;  %v2764_v35 = vshrl.u32 %v4959_v0, 16  ;;  %v7035_v14 = vld [vmem:[#allocation13_spill] sm:$0xff] }
 0x1bf   : > { %v1331_v1 = vsel %vm1319_vm3, %v5040_v26, %v5042_v56  ;;  %v1333_v9 = vsel %vm1321_vm4, %v7034_v40, %v7033_v49  ;;  %v481_v30 = vsub.s32 4, %v4525_v4  ;;  %v632_v6 = vcvt.s32.f32 %v625_v50 }
 0x1c0   : > { %v2742_v19 = vshrl.u32 %v4974_v45, 16  ;;  %v5070_v3 = vshll.u32 %v1295_v15, 8  ;;  %v2698_v21 = vshrl.u32 %v6919_v39, %v4767_v24  ;;  %v2719_v13 = vsel %vm2717_vm9, %v4807_v16, 2102212464 }
 0x1c1   : > { %v2774_v61 = vadd.s32 %v2773_v62, %v2764_v35  ;;  %v5079_v2 = vsel %vm1320_vm6, %v1327_v54, %v1329_v11  ;;  %vm514_vm1 = vcmp.lt.s32.totalorder %v7035_v14, 0  ;;  %v487_v49 = vadd.f32 0.041655596, %v486_v10 }
 0x1c2   : > { %v5083_v50 = vsub.s32 %v4992_v31, %v2628_v23  ;;  %v5085_v45 = vadd.s32 %v2751_v44, %v2742_v19  ;;  %v5089_v24 = vsel %vm1320_vm6, %v1331_v1, %v1333_v9  ;;  %v5094_v16 = vsel %vm6840_vm5, %v4966_v37, 920167782 }
 0x1c3   : > { %7036 = vst [vmem:[#allocation8_spill] sm:$0xff] %v5094_v16  ;;  %v495_v15 = vmul.f32 %v494_v20, %v5009_v48  ;;  %v633_v62 = vmul.f32 %v632_v6, %v630_v33  ;;  %v2718_v10 = vsel %vm2714_vm8, %v2698_v21, %v4795_v58  ;;  %v2720_v31 = vsel %vm2716_vm12, %v4798_v7, %v2719_v13 }
 0x1c4   : > { %v7037_v23 = vshll.u32 %v4959_v0, 16  ;;  %v1336_v54 = vand.u32 65535, %v5070_v3  ;;  %v1361_v11 = vshrl.u32 %v5079_v2, 16  ;;  %v1736_v35 = vadd.f32 -0.16666654, %v1735_v52 }
 0x1c5   : > { %v482_v20 = vsel %vm359_vm0, %v481_v30, %v4525_v4  ;;  %v2778_v33 = vadd.s32 1, %v2774_v61  ;;  %v6827_v58 = vshrl.u32 %v5089_v24, 16  ;;  %v1890_v1 = vmul.f32 %v1889_v51, %v4982_v53 }
 0x1c6   : > { %v5106_v44 = vadd.s32 %v4976_v22, %v7037_v23  ;;  %v488_v7 = vmul.f32 %v487_v49, %v5009_v48  ;;  %v2631_v0 = vsub.s32 0, %v5083_v50  ;;  %v496_v22 = vadd.f32 -0.16666654, %v495_v15 }
 0x1c7   : > { %v634_v40 = vxor.u32 2147483648, %v633_v62  ;;  %vm2630_vm9 = vcmp.lt.s32.totalorder %v5083_v50, 0  ;;  %v2721_v52 = vsel %vm2715_vm7, %v2718_v10, %v2720_v31  ;;  %v484_v4 = vsel %vm4928_vm2, 0, %v482_v20 }
 0x1c8   : > { %vm2777_vm8 = vc.u32 %v5085_v45, %v5106_v44  ;;  %v1337_v9 = vshrl.u32 %v5070_v3, 16  ;;  %v1360_v51 = vand.u32 65535, %v5079_v2  ;;  %v5128_v30 = vmul.u32 %v1361_v11, %v1336_v54 }
 0x1c9   : > { %v1737_v6 = vmul.f32 %v1736_v35, %v4912_v34  ;;  %v2779_v19 = vsel %vm2777_vm8, %v2778_v33, %v2774_v61  ;;  %v1338_v21 = vand.u32 65535, %v5089_v24  ;;  %v5134_v46 = vmul.u32 %v6827_v58, %v1336_v54 }
 0x1ca   : > { %v1891_v13 = vadd.f32 -0.16666654, %v1890_v1  ;;  %v489_v55 = vadd.f32 -0.4999988, %v488_v7  ;;  %v2632_v49 = vsel %vm2630_vm9, %v2631_v0, %v5083_v50  ;;  %v2775_v15 = vmul.u32 %v4864_v43, %v2721_v52 }
 0x1cb   : > { %v7038_v10 = vor.u32 %v4970_v38, %v4950_v41  ;;  %v497_v61 = vmul.f32 %v496_v22, %v5009_v48  ;;  %v501_v23 = vadd.s32 3, %v484_v4  ;;  %v635_v35 = vsel %vm514_vm1, %v634_v40, %v633_v62  ;;  %v7049_v40 = vld [vmem:[#allocation16_spill] sm:$0xff] }
 0x1cc   : > { %v5148_v20 = vadd.s32 %v2779_v19, %v2775_v15  ;;  %v1362_v33 = vmul.u32 %v1360_v51, %v1336_v54  ;;  %v5150_v1 = vmul.u32 %v1360_v51, %v1337_v9  ;;  %v1366_v43 = vshll.u32 %v5128_v30, 16 }
 0x1cd   : > { %v5143_v31 = vsel %vm6840_vm5, %v7038_v10, 1326507024  ;;  %v2633_v7 = vclz %v2632_v49  ;;  %v1340_v0 = vmul.u32 %v1338_v21, %v1336_v54  ;;  %v5153_v38 = vmul.u32 %v1338_v21, %v1337_v9  ;;  %v7043_v49 = vld [vmem:[#allocation5_spill] sm:$0xff] }
 0x1ce   : > { %7039 = vst [vmem:[#allocation14_spill] sm:$0xff] %v5143_v31  ;;  %v1344_v41 = vshll.u32 %v5134_v46, 16  ;;  %v1738_v52 = vadd.f32 1.0, %v1737_v6  ;;  %v1892_v22 = vmul.f32 %v1891_v13, %v4982_v53  ;;  %v490_v4 = vmul.f32 %v489_v55, %v5009_v48 }
 0x1cf   : > { %v7040_v62 = vand.u32 2147483647, %v7035_v14  ;;  %v498_v51 = vadd.f32 1.0, %v497_v61  ;;  %v5164_v19 = vand.u32 3, %v501_v23  ;;  %v636_v54 = vsub.s32 4, %v7043_v49 }
 0x1d0   : > { %v2781_v6 = vadd.s32 536870912, %v5148_v20  ;;  %v6828_v48 = vshll.u32 %v5150_v1, 16  ;;  %vm1370_vm7 = vc.u32 %v1362_v33, %v1366_v43  ;;  %v5174_v13 = vadd.s32 %v1366_v43, %v1362_v33 }
 0x1d1   : > { %vm5160_vm12 = vcmp.le.f32.partialorder %v7040_v62, 0.7853982  ;;  %v3081_v55 = vadd.s32 4294967294, %v2633_v7  ;;  %v1346_v15 = vshll.u32 %v5153_v38, 16  ;;  %vm1348_vm0 = vc.u32 %v1340_v0, %v1344_v41 }
 0x1d2   : > { %v5170_v21 = vsel %vm5160_vm12, %v7035_v14, %v635_v35  ;;  %v1350_v10 = vadd.s32 %v1344_v41, %v1340_v0  ;;  %v5178_v61 = vmul.f32 %v1738_v52, %v4881_v32  ;;  %v7045_v23 = vsub.s32 4, %v7029_v25 }
 0x1d3   : > { %v5187_v62 = vadd.f32 1.0, %v1892_v22  ;;  %v491_v58 = vadd.f32 1.0, %v490_v4  ;;  %v499_v33 = vmul.f32 %v498_v51, %v4988_v12  ;;  %vm504_vm2 = vcmp.eq.s32.totalorder %v5164_v19, 0 }
 0x1d4   : > { %7044 = vst [vmem:[#allocation18_spill] sm:$0xff] %v5178_v61  ;;  %v5185_v35 = vsel %vm1754_vm13, %v7045_v23, %v7029_v25  ;;  %v637_v43 = vsel %vm514_vm1, %v636_v54, %v7043_v49  ;;  %v5196_v32 = vmul.f32 %v5170_v21, %v5170_v21  ;;  %v1371_v7 = vsel %vm1370_vm7, 1, %v6935_v47 }
 0x1d5   : > { %7046 = vst [vmem:[#allocation36_spill] sm:$0xff] %v5185_v35  ;;  %v5199_v0 = vshrl.u32 %v2781_v6, 30  ;;  %v1349_v25 = vsel %vm1348_vm0, 1, %v6935_v47  ;;  %v1365_v41 = vmul.u32 %v1361_v11, %v1337_v9  ;;  %vm1374_vm13 = vc.u32 %v5174_v13, %v6828_v48  ;;  %v7048_v6 = vld [vmem:[#allocation9_spill] sm:$0xff] }
 0x1d6   : > { %vm507_vm8 = vcmp.eq.s32.totalorder %v5164_v19, 2  ;;  %vm3082_vm1 = vcmp.lt.s32.totalorder %v3081_v55, 0  ;;  %v7047_v12 = vshrl.u32 %v5089_v24, 16  ;;  %vm1352_vm9 = vc.u32 %v1350_v10, %v1346_v15  ;;  %v7050_v10 = vld [vmem:[#allocation20_spill] sm:$0xff] }
 0x1d7   : > { %v508_v22 = vxor.u32 2147483648, %v491_v58  ;;  %v639_v4 = vsel %vm5160_vm12, 0, %v637_v43  ;;  %v1303_v51 = vshrl.u32 %v6919_v39, %v7028_v42  ;;  %v1373_v2 = vadd.s32 %v1371_v7, %v1365_v41 }
 0x1d8   : > { %v1343_v52 = vmul.u32 %v7047_v12, %v1337_v9  ;;  %v505_v11 = vxor.u32 2147483648, %v499_v33  ;;  %v1375_v54 = vsel %vm1374_vm13, 1, %v6935_v47  ;;  %v6835_v23 = vand.u32 2147483647, %v7048_v6 }
 0x1d9   : > { %v641_v48 = vmul.f32 -0.001358992, %v5196_v32  ;;  %v5217_v60 = vsel %vm3082_vm1, 0, %v3081_v55  ;;  %v2783_v24 = vshll.u32 %v5199_v0, 30  ;;  %v1353_v9 = vsel %vm1352_vm9, 1, %v6935_v47 }
 0x1da   : > { %v1351_v49 = vadd.s32 %v1349_v25, %v1343_v52  ;;  %v1462_v15 = vshll.u32 %v6917_v28, %v7049_v40  ;;  %v1463_v42 = vshrl.u32 %v6916_v27, %v7050_v10  ;;  %v1465_v43 = vshll.u32 %v6916_v27, %v7049_v40 }
 0x1db   : > { %v1466_v7 = vshrl.u32 %v6902_v8, %v7050_v10  ;;  %v509_v55 = vsel %vm507_vm8, %v508_v22, %v499_v33  ;;  %v648_v25 = vmul.f32 -0.00019511016, %v5196_v32  ;;  %v656_v41 = vadd.s32 3, %v639_v4 }
 0x1dc   : > { %v1377_v12 = vadd.s32 %v1375_v54, %v1373_v2  ;;  %v1355_v52 = vadd.s32 %v1353_v9, %v1351_v49  ;;  %v1449_v61 = vand.u32 8388607, %v6835_v23  ;;  %v1459_v35 = vshll.u32 %v6919_v39, %v7049_v40  ;;  %v7051_v23 = vld [vmem:[#allocation19_spill] sm:$0xff] }
 0x1dd   : > { %v1460_v53 = vshrl.u32 %v6917_v28, %v7050_v10  ;;  %v506_v34 = vsel %vm504_vm2, %v491_v58, %v505_v11  ;;  %v2641_v16 = vsub.s32 4294967266, %v5217_v60  ;;  %v5242_v33 = vsub.s32 %v5148_v20, %v2783_v24 }
 0x1de   : > { %v1367_v22 = vshrl.u32 %v5128_v30, 16  ;;  %v642_v4 = vadd.f32 0.041655596, %v641_v48  ;;  %v1345_v2 = vshrl.u32 %v5134_v46, 16  ;;  %v5246_v49 = vor.u32 %v1463_v42, %v1462_v15 }
 0x1df   : > { %v5248_v54 = vor.u32 %v1466_v7, %v1465_v43  ;;  %v649_v9 = vadd.f32 0.008332121, %v648_v25  ;;  %vm1474_vm12 = vcmp.lt.s32.totalorder %v7051_v23, 1  ;;  %vm1476_vm7 = vcmp.lt.s32.totalorder %v7051_v23, 3  ;;  %v7052_v43 = vld [vmem:[#allocation31_spill] sm:$0xff] }
 0x1e0   : > { %v1378_v40 = vadd.s32 %v1377_v12, %v1367_v22  ;;  %vm503_vm0 = vcmp.lt.s32.totalorder %v5164_v19, 2  ;;  %v2637_v58 = vsub.s32 32, %v5217_v60  ;;  %v1356_v20 = vadd.s32 %v1355_v52, %v1345_v2  ;;  %v7055_v52 = vld [vmem:[#allocation30_spill] sm:$0xff] }
 0x1e1   : > { %v1450_v11 = vor.u32 8388608, %v1449_v61  ;;  %v5254_v30 = vor.u32 %v1460_v53, %v1459_v35  ;;  %v2642_v48 = vadd.s32 127, %v2641_v16  ;;  %v2786_v46 = vsub.s32 0, %v5242_v33  ;;  %v7053_v61 = vld [vmem:[#allocation24_spill] sm:$0xff] }
 0x1e2   : > { %v1347_v24 = vshrl.u32 %v5153_v38, 16  ;;  %v1369_v15 = vshrl.u32 %v5150_v1, 16  ;;  %vm2785_vm2 = vcmp.lt.s32.totalorder %v5242_v33, 0  ;;  %vm1475_vm13 = vcmp.lt.s32.totalorder %v7051_v23, 2 }
 0x1e3   : > { %v1486_v42 = vsel %vm1474_vm12, %v5246_v49, %v5248_v54  ;;  %v1488_v53 = vsel %vm1476_vm7, %v7053_v61, %v7052_v43  ;;  %v650_v16 = vmul.f32 %v649_v9, %v5196_v32  ;;  %v2621_v38 = vadd.s32 %v4942_v5, %v4916_v29 }
 0x1e4   : > { %vm7054_vm8 = vcmp.lt.s32.totalorder %v7031_v36, 4  ;;  %v1379_v7 = vadd.s32 %v1378_v40, %v1369_v15  ;;  %v5275_v25 = vadd.s32 %v1356_v20, %v1347_v24  ;;  %v1482_v12 = vsel %vm1474_vm12, %v5254_v30, %v5246_v49 }
 0x1e5   : > { %v1324_v35 = vsel %vm7054_vm8, %v5042_v56, 2102212464  ;;  %v1484_v22 = vsel %vm1476_vm7, %v5248_v54, %v7055_v52  ;;  %v5285_v2 = vshll.u32 %v1450_v11, 8  ;;  %v643_v29 = vmul.f32 %v642_v4, %v5196_v32 }
 0x1e6   : > { %v2639_v5 = vshrl.u32 %v2621_v38, %v2637_v58  ;;  %v2787_v56 = vsel %vm2785_vm2, %v2786_v46, %v5242_v33  ;;  %v5291_v9 = vsel %vm1475_vm13, %v1486_v42, %v1488_v53  ;;  %v2643_v40 = vshll.u32 %v2642_v48, 23 }
 0x1e7   : > { %v1323_v20 = vsel %vm1319_vm3, %v1303_v51, %v5038_v17  ;;  %v1325_v24 = vsel %vm1321_vm4, %v5040_v26, %v1324_v35  ;;  %v7056_v11 = vshll.u32 %v5150_v1, 16  ;;  %v651_v58 = vadd.f32 -0.16666654, %v650_v16  ;;  %v7057_v1 = vld [vmem:[#allocation71_spill] sm:$0xff] }
 0x1e8   : > { %v2638_v46 = vshll.u32 %v5083_v50, %v5217_v60  ;;  %v1383_v15 = vadd.s32 1, %v1379_v7  ;;  %v5308_v48 = vsel %vm1475_vm13, %v1482_v12, %v1484_v22  ;;  %v2788_v42 = vclz %v2787_v56  ;;  %v7059_v12 = vld [vmem:[#allocation33_spill] sm:$0xff]  ;;  %v7060_v22 = vld [vmem:[#allocation54_spill] sm:$0xff] }
 0x1e9   : > { %v5302_v4 = vadd.s32 %v5174_v13, %v7056_v11  ;;  %v1491_v17 = vand.u32 65535, %v5285_v2  ;;  %v6837_v26 = vshrl.u32 %v5291_v9, 16  ;;  %v5316_v13 = vmul.f32 %v5187_v62, %v7057_v1  ;;  %v7061_v11 = vld [vmem:[#allocation51_spill] sm:$0xff] }
 0x1ea   : > { %v5320_v60 = vsel %vm503_vm0, %v506_v34, %v509_v55  ;;  %v5322_v50 = vand.u32 3, %v656_v41  ;;  %v1326_v51 = vsel %vm1320_vm6, %v1323_v20, %v1325_v24  ;;  %v644_v43 = vadd.f32 -0.4999988, %v643_v29 }
 0x1eb   : > { %vm1382_vm3 = vc.u32 %v5275_v25, %v5302_v4  ;;  %7058 = vst [vmem:[#allocation17_spill] sm:$0xff] %v5316_v13  ;;  %v2640_v61 = vor.u32 %v2639_v5, %v2638_v46  ;;  %v2644_v53 = vor.u32 4788187, %v2643_v40  ;;  %v6836_v16 = vshrl.u32 %v5308_v48, 16 }
 0x1ec   : > { %v652_v38 = vmul.f32 %v651_v58, %v5196_v32  ;;  %v1384_v35 = vsel %vm1382_vm3, %v1383_v15, %v1379_v7  ;;  %v5329_v62 = vshrl.u32 %v5285_v2, 16  ;;  %v1493_v19 = vand.u32 65535, %v5291_v9 }
 0x1ed   : > { %v3084_v34 = vadd.s32 4294967294, %v2788_v42  ;;  %v1380_v55 = vmul.u32 %v5070_v3, %v1326_v51  ;;  %v5335_v36 = vmul.u32 %v6837_v26, %v1491_v17  ;;  %v1515_v41 = vand.u32 65535, %v5308_v48 }
 0x1ee   : > { %v6841_v52 = vand.u32 2147483647, %v7059_v12  ;;  %v995_v29 = vshrl.u32 %v6917_v28, %v7060_v22  ;;  %v998_v7 = vshrl.u32 %v6916_v27, %v7060_v22  ;;  %v1001_v5 = vshrl.u32 %v6902_v8, %v7060_v22 }
 0x1ef   : > { %v2645_v56 = vand.u32 2147483647, %v2644_v53  ;;  %v2647_v40 = vcvt.s32.f32 %v2640_v61  ;;  %v5345_v3 = vadd.s32 %v1384_v35, %v1380_v55  ;;  %v5349_v20 = vmul.u32 %v6836_v16, %v1491_v17 }
 0x1f0   : > { %v5352_v24 = vmul.u32 %v1493_v19, %v5329_v62  ;;  %v994_v58 = vshll.u32 %v6919_v39, %v7061_v11  ;;  %v997_v46 = vshll.u32 %v6917_v28, %v7061_v11  ;;  %v1000_v15 = vshll.u32 %v6916_v27, %v7061_v11 }
 0x1f1   : > { %vm3085_vm4 = vcmp.lt.s32.totalorder %v3084_v34, 0  ;;  %v1495_v42 = vmul.u32 %v1493_v19, %v1491_v17  ;;  %v1499_v1 = vshll.u32 %v5335_v36, 16  ;;  %v5362_v51 = vmul.u32 %v1515_v41, %v5329_v62 }
 0x1f2   : > { %v984_v61 = vand.u32 8388607, %v6841_v52  ;;  %v5366_v53 = vor.u32 %v995_v29, %v994_v58  ;;  %v5368_v35 = vor.u32 %v998_v7, %v997_v46  ;;  %v5370_v55 = vor.u32 %v1001_v5, %v1000_v15  ;;  %v7064_v58 = vld [vmem:[#allocation50_spill] sm:$0xff]  ;;  %v7067_v46 = vld [vmem:[#allocation49_spill] sm:$0xff] }
 0x1f3   : > { %vm500_vm6 = vweird.f32 %v7014_v59  ;;  %v645_v11 = vmul.f32 %v644_v43, %v5196_v32  ;;  %v653_v16 = vadd.f32 1.0, %v652_v38  ;;  %v1517_v19 = vmul.u32 %v1515_v41, %v1491_v17  ;;  %v7065_v32 = vld [vmem:[#allocation45_spill] sm:$0xff] }
 0x1f4   : > { %v1521_v26 = vshll.u32 %v5349_v20, 16  ;;  %v2648_v13 = vmul.f32 %v2647_v40, %v2645_v56  ;;  %v5375_v37 = vsel %vm3085_vm4, 0, %v3084_v34  ;;  %v1386_v31 = vadd.s32 536870912, %v5345_v3  ;;  %v7066_v34 = vld [vmem:[#allocation47_spill] sm:$0xff]  ;;  %v7068_v15 = vld [vmem:[#allocation57_spill] sm:$0xff] }
 0x1f5   : > { %v1501_v29 = vshll.u32 %v5352_v24, 16  ;;  %vm5379_vm1 = vc.u32 %v1495_v42, %v1499_v1  ;;  %v1505_v5 = vadd.s32 %v1499_v1, %v1495_v42  ;;  %vm1009_vm9 = vcmp.lt.s32.totalorder %v7064_v58, 1 }
 0x1f6   : > { %vm1011_vm0 = vcmp.lt.s32.totalorder %v7064_v58, 3  ;;  %vm2529_vm2 = vcmp.lt.s32.totalorder %v7065_v32, 0  ;;  %v985_v43 = vor.u32 8388608, %v984_v61  ;;  %v1017_v38 = vsel %vm1009_vm9, %v5366_v53, %v5368_v35 }
 0x1f7   : > { %v1019_v41 = vsel %vm1011_vm0, %v5370_v55, %v7066_v34  ;;  %vm662_vm8 = vcmp.eq.s32.totalorder %v5322_v50, 2  ;;  %vm1525_vm3 = vc.u32 %v1517_v19, %v1521_v26  ;;  %v5396_v56 = vadd.s32 %v1521_v26, %v1517_v19 }
 0x1f8   : > { %v1021_v40 = vsel %vm1009_vm9, %v5368_v35, %v5370_v55  ;;  %v1023_v42 = vsel %vm1011_vm0, %v7068_v15, %v7067_v46  ;;  %v5406_v1 = vadd.f32 1.0, %v645_v11  ;;  %v5409_v61 = vmul.f32 %v653_v16, %v5170_v21 }
 0x1f9   : > { %v5411_v34 = vshrl.u32 %v1386_v31, 30  ;;  %vm1010_vm4 = vcmp.lt.s32.totalorder %v7064_v58, 2  ;;  %v7069_v26 = vand.u32 2147483647, %v7065_v32  ;;  %v2649_v52 = vxor.u32 2147483648, %v2648_v13 }
 0x1fa   : > { %v2792_v17 = vsub.s32 32, %v5375_v37  ;;  %v2796_v46 = vsub.s32 4294967266, %v5375_v37  ;;  %v5424_v11 = vsel %vm1010_vm4, %v1017_v38, %v1019_v41  ;;  %v1504_v31 = vsel %vm5379_vm1, 1, %v6935_v47 }
 0x1fb   : > { %vm5416_vm5 = vcmp.le.f32.partialorder %v7069_v26, 0.7853982  ;;  %v1526_v21 = vsel %vm1525_vm3, 1, %v6935_v47  ;;  %v5432_v16 = vsel %vm1010_vm4, %v1021_v40, %v1023_v42  ;;  %v5434_v15 = vshll.u32 %v985_v43, 8 }
 0x1fc   : > { %v7072_v26 = vshrl.u32 %v5291_v9, 16  ;;  %vm1507_vm14 = vc.u32 %v1505_v5, %v1501_v29  ;;  %v7073_v38 = vshrl.u32 %v5308_v48, 16  ;;  %v7074_v7 = vshll.u32 %v5362_v51, 16 }
 0x1fd   : > { %v511_v40 = vsel %vm500_vm6, nan, %v5320_v60  ;;  %v663_v43 = vxor.u32 2147483648, %v5406_v1  ;;  %v1388_v42 = vshll.u32 %v5411_v34, 30  ;;  %v2776_v29 = vadd.s32 %v5106_v44, %v5085_v45 }
 0x1fe   : > { %v1498_v63 = vmul.u32 %v7072_v26, %v5329_v62  ;;  %v1520_v41 = vmul.u32 %v7073_v38, %v5329_v62  ;;  %vm1529_vm1 = vc.u32 %v5396_v56, %v7074_v7  ;;  %v6846_v62 = vshrl.u32 %v5432_v16, 16  ;;  %v5454_v26 = vpop.permute.xlu1 %2847 }
 0x1ff   : > { %v2797_v38 = vadd.s32 127, %v2796_v46  ;;  %v1508_v7 = vsel %vm1507_vm14, 1, %v6935_v47  ;;  %v1530_v59 = vsel %vm1529_vm1, 1, %v6935_v47  ;;  %v1026_v60 = vand.u32 65535, %v5434_v15 }
 0x200   : > { %v1506_v5 = vadd.s32 %v1504_v31, %v1498_v63  ;;  %v1528_v48 = vadd.s32 %v1526_v21, %v1520_v41  ;;  %v5461_v9 = vmul.f32 %v5454_v26, %v511_v40  ;;  %v2650_v63 = vsel %vm2529_vm2, %v2649_v52, %v2648_v13 }
 0x201   : > { %v2794_v45 = vshrl.u32 %v2776_v29, %v2792_v17  ;;  %v5468_v44 = vsel %vm662_vm8, %v663_v43, %v5409_v61  ;;  %v5472_v31 = vsub.s32 %v5345_v3, %v1388_v42  ;;  %v7075_v21 = vshrl.u32 %v5424_v11, 16 }
 0x202   : > { %v2793_v40 = vshll.u32 %v5242_v33, %v5375_v37  ;;  %v1510_v12 = vadd.s32 %v1508_v7, %v1506_v5  ;;  %v1532_v13 = vadd.s32 %v1530_v59, %v1528_v48  ;;  %v5482_v52 = vmul.u32 %v6846_v62, %v1026_v60 }
 0x203   : > { %v5476_v41 = vmul.u32 %v7075_v21, %v1026_v60  ;;  %v5487_v17 = vsel %vm5416_vm5, %v7065_v32, %v2650_v63  ;;  %v2798_v3 = vshll.u32 %v2797_v38, 23  ;;  %v1458_v43 = vshrl.u32 %v6919_v39, %v7050_v10 }
 0x204   : > { %v1050_v42 = vand.u32 65535, %v5424_v11  ;;  %v2795_v29 = vor.u32 %v2794_v45, %v2793_v40  ;;  %v1500_v37 = vshrl.u32 %v5335_v36, 16  ;;  %v1522_v33 = vshrl.u32 %v5349_v20, 16 }
 0x205   : > { %v1028_v5 = vand.u32 65535, %v5432_v16  ;;  %v1391_v48 = vsub.s32 0, %v5472_v31  ;;  %vm7076_vm14 = vcmp.lt.s32.totalorder %v7051_v23, 4  ;;  %v1027_v38 = vshrl.u32 %v5434_v15, 16 }
 0x206   : > { %v1479_v7 = vsel %vm7076_vm14, %v5248_v54, 2102212464  ;;  %v1056_v59 = vshll.u32 %v5476_v41, 16  ;;  %vm1390_vm6 = vcmp.lt.s32.totalorder %v5472_v31, 0  ;;  %v1511_v10 = vadd.s32 %v1510_v12, %v1500_v37 }
 0x207   : > { %v1533_v63 = vadd.s32 %v1532_v13, %v1522_v33  ;;  %v1034_v36 = vshll.u32 %v5482_v52, 16  ;;  %v2799_v45 = vor.u32 4788187, %v2798_v3  ;;  %v1478_v20 = vsel %vm1474_vm12, %v1458_v43, %v5254_v30 }
 0x208   : > { %v1052_v21 = vmul.u32 %v1050_v42, %v1026_v60  ;;  %v5506_v40 = vmul.u32 %v1050_v42, %v1027_v38  ;;  %v1502_v54 = vshrl.u32 %v5352_v24, 16  ;;  %v1524_v46 = vshrl.u32 %v5362_v51, 16 }
 0x209   : > { %v1030_v62 = vmul.u32 %v1028_v5, %v1026_v60  ;;  %v5510_v6 = vmul.u32 %v1028_v5, %v1027_v38  ;;  %vm659_vm8 = vcmp.eq.s32.totalorder %v5322_v50, 0  ;;  %v1392_v12 = vsel %vm1390_vm6, %v1391_v48, %v5472_v31 }
 0x20a   : > { %v1480_v13 = vsel %vm1476_vm7, %v5246_v49, %v1479_v7  ;;  %vm1060_vm3 = vc.u32 %v1052_v21, %v1056_v59  ;;  %v5517_v30 = vadd.s32 %v1056_v59, %v1052_v21  ;;  %v5519_v3 = vadd.s32 %v1511_v10, %v1502_v54  ;;  %v7083_v54 = vld [vmem:[#allocation58_spill] sm:$0xff] }
 0x20b   : > { %v1534_v43 = vadd.s32 %v1533_v63, %v1524_v46  ;;  %vm1038_vm12 = vc.u32 %v1030_v62, %v1034_v36  ;;  %v1040_v24 = vadd.s32 %v1034_v36, %v1030_v62  ;;  %v5523_v60 = vmul.f32 %v5487_v17, %v5487_v17  ;;  %v7081_v36 = vld [vmem:[#allocation37_spill] sm:$0xff] }
 0x20c   : > { %v2800_v42 = vand.u32 2147483647, %v2799_v45  ;;  %v2802_v37 = vcvt.s32.f32 %v2795_v29  ;;  %v6848_v33 = vshll.u32 %v5506_v40, 16  ;;  %vm658_vm1 = vcmp.lt.s32.totalorder %v5322_v50, 2 }
 0x20d   : > { %7077 = vst [vmem:[#allocation27_spill] sm:$0xff] %v5523_v60  ;;  %v1481_v49 = vsel %vm1475_vm13, %v1478_v20, %v1480_v13  ;;  %v7078_v5 = vshll.u32 %v5362_v51, 16  ;;  %v1036_v62 = vshll.u32 %v5510_v6, 16  ;;  %v1061_v46 = vsel %vm1060_vm3, 1, %v6935_v47  ;;  %v7082_v20 = vld [vmem:[#allocation55_spill] sm:$0xff] }
 0x20e   : > { %v1393_v7 = vclz %v1392_v12  ;;  %v1039_v59 = vsel %vm1038_vm12, 1, %v6935_v47  ;;  %v7079_v29 = vshrl.u32 %v5424_v11, 16  ;;  %vm1064_vm7 = vc.u32 %v5517_v30, %v6848_v33 }
 0x20f   : > { %v5532_v48 = vadd.s32 %v5396_v56, %v7078_v5  ;;  %v1538_v23 = vadd.s32 1, %v1534_v43  ;;  %v7080_v51 = vshrl.u32 %v5432_v16, 16  ;;  %vm1042_vm14 = vc.u32 %v1040_v24, %v1036_v62  ;;  %v7084_v62 = vld [vmem:[#allocation53_spill] sm:$0xff] }
 0x210   : > { %v1055_v10 = vmul.u32 %v7079_v29, %v1027_v38  ;;  %v6851_v45 = vand.u32 2147483647, %v7081_v36  ;;  %v1153_v21 = vshrl.u32 %v6916_v27, %v7082_v20  ;;  %v1156_v11 = vshrl.u32 %v6902_v8, %v7082_v20 }
 0x211   : > { %vm1537_vm13 = vc.u32 %v5519_v3, %v5532_v48  ;;  %v1033_v56 = vmul.u32 %v7080_v51, %v1027_v38  ;;  %vm2684_vm6 = vcmp.lt.s32.totalorder %v7083_v54, 0  ;;  %v2803_v12 = vmul.f32 %v2802_v37, %v2800_v42 }
 0x212   : > { %v1063_v63 = vadd.s32 %v1061_v46, %v1055_v10  ;;  %v1065_v5 = vsel %vm1064_vm7, 1, %v6935_v47  ;;  %v1150_v16 = vshrl.u32 %v6917_v28, %v7082_v20  ;;  %v3057_v38 = vadd.s32 4294967294, %v1393_v7 }
 0x213   : > { %v1041_v13 = vadd.s32 %v1039_v59, %v1033_v56  ;;  %v1043_v24 = vsel %vm1042_vm14, 1, %v6935_v47  ;;  %v1152_v46 = vshll.u32 %v6917_v28, %v7084_v62  ;;  %v1155_v29 = vshll.u32 %v6916_v27, %v7084_v62 }
 0x214   : > { %v7085_v10 = vxor.u32 2147483648, %v5409_v61  ;;  %v7086_v37 = vsub.s32 4, %v5035_v18  ;;  %v1539_v59 = vsel %vm1537_vm13, %v1538_v23, %v1534_v43  ;;  %v1149_v51 = vshll.u32 %v6919_v39, %v7084_v62 }
 0x215   : > { %v1067_v56 = vadd.s32 %v1065_v5, %v1063_v63  ;;  %v1139_v61 = vand.u32 8388607, %v6851_v45  ;;  %v5577_v33 = vor.u32 %v1153_v21, %v1152_v46  ;;  %v7087_v32 = vand.u32 2147483647, %v7083_v54  ;;  %v7090_v46 = vld [vmem:[#allocation52_spill] sm:$0xff] }
 0x216   : > { %v661_v42 = vsel %vm659_vm8, %v5406_v1, %v7085_v10  ;;  %v2652_v7 = vsel %vm2529_vm2, %v7086_v37, %v5035_v18  ;;  %v5579_v1 = vor.u32 %v1156_v11, %v1155_v29  ;;  %v2663_v10 = vmul.f32 -0.00019511016, %v5523_v60  ;;  %v7093_v29 = vld [vmem:[#allocation56_spill] sm:$0xff] }
 0x217   : > { %vm5584_vm2 = vcmp.le.f32.partialorder %v7087_v32, 0.7853982  ;;  %v1535_v43 = vmul.u32 %v5285_v2, %v1481_v49  ;;  %v1045_v23 = vadd.s32 %v1043_v24, %v1041_v13  ;;  %v5589_v62 = vor.u32 %v1150_v16, %v1149_v51  ;;  %v7092_v13 = vld [vmem:[#allocation48_spill] sm:$0xff] }
 0x218   : > { %v665_v63 = vsel %vm658_vm1, %v661_v42, %v5468_v44  ;;  %v2804_v21 = vxor.u32 2147483648, %v2803_v12  ;;  %vm3058_vm8 = vcmp.lt.s32.totalorder %v3057_v38, 0  ;;  %v1057_v11 = vshrl.u32 %v5476_v41, 16  ;;  %v7091_v44 = vld [vmem:[#allocation7_spill] sm:$0xff] }
 0x219   : > { %vm655_vm3 = vweird.f32 %v7035_v14  ;;  %v5596_v5 = vadd.s32 %v1539_v59, %v1535_v43  ;;  %v1035_v32 = vshrl.u32 %v5482_v52, 16  ;;  %vm1164_vm12 = vcmp.lt.s32.totalorder %v7090_v46, 1 }
 0x21a   : > { %vm1166_vm7 = vcmp.lt.s32.totalorder %v7090_v46, 3  ;;  %v1068_v2 = vadd.s32 %v1067_v56, %v1057_v11  ;;  %v1140_v49 = vor.u32 8388608, %v1139_v61  ;;  %v1176_v50 = vsel %vm1164_vm12, %v5577_v33, %v5579_v1 }
 0x21b   : > { %v1178_v41 = vsel %vm1166_vm7, %v7092_v13, %v7091_v44  ;;  %v2664_v16 = vadd.f32 0.008332121, %v2663_v10  ;;  %v1046_v24 = vadd.s32 %v1045_v23, %v1035_v32  ;;  %v1172_v52 = vsel %vm1164_vm12, %v5589_v62, %v5577_v33 }
 0x21c   : > { %v1174_v42 = vsel %vm1166_vm7, %v5579_v1, %v7093_v29  ;;  %v2805_v37 = vsel %vm2684_vm6, %v2804_v21, %v2803_v12  ;;  %v5620_v59 = vsel %vm3058_vm8, 0, %v3057_v38  ;;  %v1059_v51 = vshrl.u32 %v5506_v40, 16 }
 0x21d   : > { %vm1165_vm1 = vcmp.lt.s32.totalorder %v7090_v46, 2  ;;  %v1541_v56 = vadd.s32 536870912, %v5596_v5  ;;  %v993_v61 = vshrl.u32 %v6919_v39, %v7060_v22  ;;  %v1037_v10 = vshrl.u32 %v5510_v6, 16 }
 0x21e   : > { %v5630_v43 = vsel %vm1165_vm1, %v1176_v50, %v1178_v41  ;;  %v1014_v12 = vsel %vm1012_vm15, %v5370_v55, 2102212464  ;;  %v1069_v38 = vadd.s32 %v1068_v2, %v1059_v51  ;;  %v5637_v23 = vsel %vm1165_vm1, %v1172_v52, %v1174_v42 }
 0x21f   : > { %v5639_v21 = vshll.u32 %v1140_v49, 8  ;;  %v2654_v22 = vsel %vm5416_vm5, 0, %v2652_v7  ;;  %v2665_v6 = vmul.f32 %v2664_v16, %v5523_v60  ;;  %v2806_v11 = vsub.s32 4, %v5199_v0 }
 0x220   : > { %v5645_v32 = vadd.s32 %v1046_v24, %v1037_v10  ;;  %v5650_v55 = vsel %vm5584_vm2, %v7083_v54, %v2805_v37  ;;  %v1401_v2 = vsub.s32 4294967266, %v5620_v59  ;;  %v1013_v49 = vsel %vm1009_vm9, %v993_v61, %v5366_v53  ;;  %v7095_v53 = vld [vmem:[#allocation61_spill] sm:$0xff] }
 0x221   : > { %v1184_v19 = vshrl.u32 %v5630_v43, 16  ;;  %v5657_v7 = vshrl.u32 %v1541_v56, 30  ;;  %v1015_v50 = vsel %vm1011_vm0, %v5368_v35, %v1014_v12  ;;  %v7094_v44 = vshll.u32 %v5506_v40, 16 }
 0x222   : > { %v1206_v41 = vshrl.u32 %v5637_v23, 16  ;;  %v666_v16 = vsel %vm655_vm3, nan, %v665_v63  ;;  %v5672_v24 = vadd.f32 %v7095_v53, %v5461_v9  ;;  %v1073_v52 = vadd.s32 1, %v1069_v38 }
 0x223   : > { %v5665_v13 = vadd.s32 %v5517_v30, %v7094_v44  ;;  %v1181_v29 = vand.u32 65535, %v5639_v21  ;;  %v2666_v42 = vadd.f32 -0.16666654, %v2665_v6  ;;  %v2671_v37 = vadd.s32 3, %v2654_v22 }
 0x224   : > { %7096 = vst [vmem:[#allocation28_spill] sm:$0xff] %v5672_v24  ;;  %v5677_v35 = vmul.f32 %v5650_v55, %v5650_v55  ;;  %v2807_v14 = vsel %vm2684_vm6, %v2806_v11, %v5199_v0  ;;  %v1397_v40 = vsub.s32 32, %v5620_v59  ;;  %v1016_v9 = vsel %vm1010_vm4, %v1013_v49, %v1015_v50 }
 0x225   : > { %vm1072_vm15 = vc.u32 %v5645_v32, %v5665_v13  ;;  %v5687_v30 = vmul.u32 %v1184_v19, %v1181_v29  ;;  %v5690_v63 = vmul.f32 %v5454_v26, %v666_v16  ;;  %v1402_v51 = vadd.s32 127, %v1401_v2 }
 0x226   : > { %v1543_v56 = vshll.u32 %v5657_v7, 30  ;;  %v5693_v61 = vmul.u32 %v1206_v41, %v1181_v29  ;;  %v1381_v10 = vadd.s32 %v5302_v4, %v5275_v25  ;;  %v1074_v12 = vsel %vm1072_vm15, %v1073_v52, %v1069_v38 }
 0x227   : > { %v1183_v0 = vand.u32 65535, %v5630_v43  ;;  %v1205_v22 = vand.u32 65535, %v5637_v23  ;;  %v2667_v58 = vmul.f32 %v2666_v42, %v5523_v60  ;;  %v2809_v6 = vsel %vm5584_vm2, 0, %v2807_v14  ;;  %v7097_v23 = vld [vmem:[#allocation10_spill] sm:$0xff] }
 0x228   : > { %v2818_v26 = vmul.f32 -0.00019511016, %v5677_v35  ;;  %v1070_v11 = vmul.u32 %v5434_v15, %v1016_v9  ;;  %v1399_v2 = vshrl.u32 %v1381_v10, %v1397_v40  ;;  %v1182_v49 = vshrl.u32 %v5639_v21, 16 }
 0x229   : > { %v1189_v50 = vshll.u32 %v5687_v30, 16  ;;  %v1211_v25 = vshll.u32 %v5693_v61, 16  ;;  %v1403_v4 = vshll.u32 %v1402_v51, 23  ;;  %v5708_v43 = vsub.s32 %v5596_v5, %v1543_v56 }
 0x22a   : > { %v5710_v38 = vadd.s32 %v1074_v12, %v1070_v11  ;;  %v6850_v18 = vand.u32 2147483647, %v7097_v23  ;;  %v1185_v44 = vmul.u32 %v1183_v0, %v1181_v29  ;;  %v5713_v16 = vmul.u32 %v1183_v0, %v1182_v49  ;;  %v7101_v11 = vld [vmem:[#allocation25_spill] sm:$0xff] }
 0x22b   : > { %v1207_v53 = vmul.u32 %v1205_v22, %v1181_v29  ;;  %v5715_v15 = vmul.u32 %v1205_v22, %v1182_v49  ;;  %v5717_v52 = vadd.f32 1.0, %v2667_v58  ;;  %v5719_v42 = vand.u32 3, %v2671_v37 }
 0x22c   : > { %v5721_v14 = vadd.s32 3, %v2809_v6  ;;  %v1398_v5 = vshll.u32 %v5472_v31, %v5620_v59  ;;  %vm1193_vm5 = vc.u32 %v1185_v44, %v1189_v50  ;;  %v1195_v40 = vadd.s32 %v1189_v50, %v1185_v44 }
 0x22d   : > { %7098 = vst [vmem:[#allocation23_spill] sm:$0xff] %v5719_v42  ;;  %vm1215_vm9 = vc.u32 %v1207_v53, %v1211_v25  ;;  %v5725_v9 = vadd.s32 %v1211_v25, %v1207_v53  ;;  %v2819_v51 = vadd.f32 0.008332121, %v2818_v26  ;;  %v1404_v10 = vor.u32 4788187, %v1403_v4  ;;  %v7102_v25 = vld [vmem:[#allocation21_spill] sm:$0xff] }
 0x22e   : > { %v1400_v56 = vor.u32 %v1399_v2, %v1398_v5  ;;  %v2224_v29 = vand.u32 8388607, %v6850_v18  ;;  %vm1545_vm0 = vcmp.lt.s32.totalorder %v5708_v43, 0  ;;  %v1076_v37 = vadd.s32 536870912, %v5710_v38 }
 0x22f   : > { %v1191_v12 = vshll.u32 %v5713_v16, 16  ;;  %v6852_v0 = vshll.u32 %v5715_v15, 16  ;;  %v1546_v31 = vsub.s32 0, %v5708_v43  ;;  %v1188_v59 = vmul.u32 %v1184_v19, %v1182_v49 }
 0x230   : > { %v1194_v22 = vsel %vm1193_vm5, 1, %v6935_v47  ;;  %v1216_v58 = vsel %vm1215_vm9, 1, %v6935_v47  ;;  %v1210_v26 = vmul.u32 %v1206_v41, %v1182_v49  ;;  %v2235_v2 = vshrl.u32 %v6917_v28, %v7101_v11 }
 0x231   : > { %vm5736_vm4 = vc.u32 %v1195_v40, %v1191_v12  ;;  %vm1219_vm13 = vc.u32 %v5725_v9, %v6852_v0  ;;  %v2225_v50 = vor.u32 8388608, %v2224_v29  ;;  %v2234_v19 = vshll.u32 %v6919_v39, %v7102_v25 }
 0x232   : > { %v2237_v4 = vshll.u32 %v6917_v28, %v7102_v25  ;;  %v2238_v44 = vshrl.u32 %v6916_v27, %v7101_v11  ;;  %v5751_v53 = vshrl.u32 %v1076_v37, 30  ;;  %v1218_v41 = vadd.s32 %v1216_v58, %v1210_v26  ;;  %v7103_v58 = vld [vmem:[#allocation29_spill] sm:$0xff] }
 0x233   : > { %v2240_v49 = vshll.u32 %v6916_v27, %v7102_v25  ;;  %v2241_v5 = vshrl.u32 %v6902_v8, %v7101_v11  ;;  %v1196_v40 = vadd.s32 %v1194_v22, %v1188_v59  ;;  %v1220_v29 = vsel %vm1219_vm13, 1, %v6935_v47  ;;  %v7104_v59 = vld [vmem:[#allocation40_spill] sm:$0xff]  ;;  %v7105_v22 = vld [vmem:[#allocation34_spill] sm:$0xff] }
 0x234   : > { %v5758_v12 = vor.u32 %v2235_v2, %v2234_v19  ;;  %v5760_v18 = vor.u32 %v2238_v44, %v2237_v4  ;;  %v1405_v45 = vand.u32 2147483647, %v1404_v10  ;;  %v1198_v37 = vsel %vm5736_vm4, 1, %v6935_v47 }
 0x235   : > { %v5765_v0 = vor.u32 %v2241_v5, %v2240_v49  ;;  %vm2251_vm14 = vcmp.lt.s32.totalorder %v7103_v58, 3  ;;  %v1547_v26 = vsel %vm1545_vm0, %v1546_v31, %v5708_v43  ;;  %vm2249_vm6 = vcmp.lt.s32.totalorder %v7103_v58, 1  ;;  %v7106_v49 = vld [vmem:[#allocation39_spill] sm:$0xff] }
 0x236   : > { %v2263_v2 = vsel %vm2251_vm14, %v7105_v22, %v7104_v59  ;;  %v5776_v10 = vshll.u32 %v2225_v50, 8  ;;  %v1407_v25 = vcvt.s32.f32 %v1400_v56  ;;  %v1078_v6 = vshll.u32 %v5751_v53, 30 }
 0x237   : > { %v1222_v19 = vadd.s32 %v1220_v29, %v1218_v41  ;;  %v2261_v4 = vsel %vm2249_vm6, %v5760_v18, %v5765_v0  ;;  %v1200_v44 = vadd.s32 %v1198_v37, %v1196_v40  ;;  %vm2250_vm2 = vcmp.lt.s32.totalorder %v7103_v58, 2 }
 0x238   : > { %v2257_v31 = vsel %vm2249_vm6, %v5758_v12, %v5760_v18  ;;  %v2259_v56 = vsel %vm2251_vm14, %v5765_v0, %v7106_v49  ;;  %v1408_v50 = vmul.f32 %v1407_v25, %v1405_v45  ;;  %v1548_v41 = vclz %v1547_v26 }
 0x239   : > { %v1212_v5 = vshrl.u32 %v5693_v61, 16  ;;  %v2264_v29 = vsel %vm2250_vm2, %v2261_v4, %v2263_v2  ;;  %v1190_v40 = vshrl.u32 %v5687_v30, 16  ;;  %v2266_v37 = vand.u32 65535, %v5776_v10 }
 0x23a   : > { %v2268_v59 = vand.u32 65535, %v2264_v29  ;;  %v2269_v22 = vshrl.u32 %v2264_v29, 16  ;;  %v5798_v54 = vsub.s32 %v5710_v38, %v1078_v6  ;;  %v2260_v49 = vsel %vm2250_vm2, %v2257_v31, %v2259_v56 }
 0x23b   : > { %v1223_v42 = vadd.s32 %v1222_v19, %v1212_v5  ;;  %v2267_v45 = vshrl.u32 %v5776_v10, 16  ;;  %vm1289_vm8 = vcmp.lt.s32.totalorder %v7024_v57, 0  ;;  %v2820_v61 = vmul.f32 %v2819_v51, %v5677_v35 }
 0x23c   : > { %v1411_v26 = vsub.s32 4, %v5411_v34  ;;  %v1201_v30 = vadd.s32 %v1200_v44, %v1190_v40  ;;  %v5806_v2 = vmul.u32 %v2269_v22, %v2266_v37  ;;  %v1409_v25 = vxor.u32 2147483648, %v1408_v50 }
 0x23d   : > { %v3060_v4 = vadd.s32 4294967294, %v1548_v41  ;;  %v1214_v38 = vshrl.u32 %v5715_v15, 16  ;;  %v5809_v6 = vmul.u32 %v2268_v59, %v2267_v45  ;;  %v1192_v19 = vshrl.u32 %v5713_v16, 16 }
 0x23e   : > { %v2270_v31 = vmul.u32 %v2268_v59, %v2266_v37  ;;  %v2274_v56 = vshll.u32 %v5806_v2, 16  ;;  %v2291_v5 = vshrl.u32 %v2260_v49, 16  ;;  %v7107_v29 = vand.u32 2147483647, %v7024_v57 }
 0x23f   : > { %v1081_v44 = vsub.s32 0, %v5798_v54  ;;  %v1148_v41 = vshrl.u32 %v6919_v39, %v7082_v20  ;;  %vm7110_vm15 = vcmp.lt.s32.totalorder %v7090_v46, 4  ;;  %v1224_v16 = vadd.s32 %v1223_v42, %v1214_v38 }
 0x240   : > { %vm5815_vm3 = vcmp.le.f32.partialorder %v7107_v29, 0.7853982  ;;  %v1169_v40 = vsel %vm7110_vm15, %v5579_v1, 2102212464  ;;  %vm1080_vm5 = vcmp.lt.s32.totalorder %v5798_v54, 0  ;;  %v5826_v59 = vadd.s32 %v1201_v30, %v1192_v19 }
 0x241   : > { %vm2278_vm9 = vc.u32 %v2270_v31, %v2274_v56  ;;  %v2280_v60 = vadd.s32 %v2274_v56, %v2270_v31  ;;  %vm3061_vm0 = vcmp.lt.s32.totalorder %v3060_v4, 0  ;;  %v1168_v29 = vsel %vm1164_vm12, %v1148_v41, %v5589_v62  ;;  %v7112_v41 = vld [vmem:[#allocation62_spill] sm:$0xff] }
 0x242   : > { %v2276_v24 = vshll.u32 %v5809_v6, 16  ;;  %v2279_v20 = vsel %vm2278_vm9, 1, %v6935_v47  ;;  %v1170_v1 = vsel %vm1166_vm7, %v5577_v33, %v1169_v40  ;;  %v7111_v42 = vshll.u32 %v5715_v15, 16 }
 0x243   : > { %v2273_v38 = vmul.u32 %v2269_v22, %v2267_v45  ;;  %v2293_v19 = vmul.u32 %v2291_v5, %v2266_v37  ;;  %v1082_v31 = vsel %vm1080_vm5, %v1081_v44, %v5798_v54  ;;  %v1228_v56 = vadd.s32 1, %v1224_v16 }
 0x244   : > { %v5839_v30 = vadd.s32 %v5725_v9, %v7111_v42  ;;  %vm2282_vm4 = vc.u32 %v2280_v60, %v2276_v24  ;;  %v2290_v62 = vand.u32 65535, %v2260_v49  ;;  %v5844_v23 = vadd.f32 %v7112_v41, %v5690_v63 }
 0x245   : > { %v5847_v36 = vand.u32 3, %v5721_v14  ;;  %v2281_v33 = vadd.s32 %v2279_v20, %v2273_v38  ;;  %v1410_v15 = vsel %vm1289_vm8, %v1409_v25, %v1408_v50  ;;  %v1551_v9 = vsel %vm3061_vm0, 0, %v3060_v4 }
 0x246   : > { %7113 = vst [vmem:[#allocation13_spill] sm:$0xff] %v5844_v23  ;;  %vm1227_vm12 = vc.u32 %v5826_v59, %v5839_v30  ;;  %v1171_v60 = vsel %vm1165_vm1, %v1168_v29, %v1170_v1  ;;  %v2283_v24 = vsel %vm2282_vm4, 1, %v6935_v47  ;;  %v5859_v63 = vmul.f32 %v5717_v52, %v5487_v17 }
 0x247   : > { %7114 = vst [vmem:[#allocation5_spill] sm:$0xff] %v5847_v36  ;;  %v5864_v14 = vsel %vm1289_vm8, %v1411_v26, %v5411_v34  ;;  %v1083_v22 = vclz %v1082_v31  ;;  %v2296_v49 = vshll.u32 %v2293_v19, 16  ;;  %v5866_v44 = vadd.f32 -0.16666654, %v2820_v61 }
 0x248   : > { %7115 = vst [vmem:[#allocation16_spill] sm:$0xff] %v5859_v63  ;;  %v1229_v50 = vsel %vm1227_vm12, %v1228_v56, %v1224_v16  ;;  %v2292_v25 = vmul.u32 %v2290_v62, %v2266_v37  ;;  %v2294_v4 = vmul.u32 %v2290_v62, %v2267_v45  ;;  %v5871_v46 = vsel %vm5815_vm3, %v7024_v57, %v1410_v15  ;;  %v7117_v56 = vld [vmem:[#allocation11_spill] sm:$0xff] }
 0x249   : > { %v1552_v40 = vsub.s32 32, %v1551_v9  ;;  %v1225_v17 = vmul.u32 %v5639_v21, %v1171_v60  ;;  %v2285_v52 = vadd.s32 %v2283_v24, %v2281_v33  ;;  %v1536_v34 = vadd.s32 %v5532_v48, %v5519_v3 }
 0x24a   : > { %v1556_v26 = vsub.s32 4294967266, %v1551_v9  ;;  %v2295_v29 = vmul.u32 %v2291_v5, %v2267_v45  ;;  %vm2300_vm7 = vc.u32 %v2292_v25, %v2296_v49  ;;  %v3051_v61 = vadd.s32 4294967294, %v1083_v22 }
 0x24b   : > { %v5876_v20 = vadd.s32 %v1229_v50, %v1225_v17  ;;  %v2275_v37 = vshrl.u32 %v5806_v2, 16  ;;  %v2301_v16 = vsel %vm2300_vm7, 1, %v6935_v47  ;;  %v5882_v1 = vmul.f32 %v5871_v46, %v5871_v46  ;;  %v7118_v17 = vld [vmem:[#allocation26_spill] sm:$0xff] }
 0x24c   : > { %v2298_v42 = vshll.u32 %v2294_v4, 16  ;;  %v2302_v21 = vadd.s32 %v2296_v49, %v2292_v25  ;;  %v2303_v38 = vadd.s32 %v2301_v16, %v2295_v29  ;;  %v1553_v31 = vshll.u32 %v5708_v43, %v1551_v9  ;;  %v7119_v29 = vld [vmem:[#allocation22_spill] sm:$0xff] }
 0x24d   : > { %v1554_v3 = vshrl.u32 %v1536_v34, %v1552_v40  ;;  %vm7116_vm1 = vcmp.lt.s32.totalorder %v7103_v58, 4  ;;  %v2286_v45 = vadd.s32 %v2285_v52, %v2275_v37  ;;  %v1557_v5 = vadd.s32 127, %v1556_v26 }
 0x24e   : > { %v2254_v48 = vsel %vm7116_vm1, %v5765_v0, 2102212464  ;;  %v2233_v2 = vshrl.u32 %v6919_v39, %v7101_v11  ;;  %vm2304_vm13 = vc.u32 %v2302_v21, %v2298_v42  ;;  %v6859_v62 = vand.u32 2147483647, %v7117_v56 }
 0x24f   : > { %vm3052_vm8 = vcmp.lt.s32.totalorder %v3051_v61, 0  ;;  %v1231_v41 = vadd.s32 536870912, %v5876_v20  ;;  %v2277_v33 = vshrl.u32 %v5809_v6, 16  ;;  %v2305_v43 = vsel %vm2304_vm13, 1, %v6935_v47 }
 0x250   : > { %v2253_v15 = vsel %vm2249_vm6, %v2233_v2, %v5758_v12  ;;  %v2255_v0 = vsel %vm2251_vm14, %v5760_v18, %v2254_v48  ;;  %v2297_v9 = vshrl.u32 %v2293_v19, 16  ;;  %v2307_v11 = vadd.s32 %v2305_v43, %v2303_v38  ;;  %v7122_v43 = vld [vmem:[#allocation35_spill] sm:$0xff] }
 0x251   : > { %v1416_v60 = vmul.f32 -0.001358992, %v5882_v1  ;;  %v1555_v24 = vor.u32 %v1554_v3, %v1553_v31  ;;  %v5901_v22 = vadd.s32 %v2286_v45, %v2277_v33  ;;  %v2379_v6 = vand.u32 8388607, %v6859_v62  ;;  %v7121_v33 = vld [vmem:[#allocation42_spill] sm:$0xff] }
 0x252   : > { %v1558_v49 = vshll.u32 %v1557_v5, 23  ;;  %v5905_v50 = vsel %vm3052_vm8, 0, %v3051_v61  ;;  %v2299_v25 = vshrl.u32 %v2294_v4, 16  ;;  %v2308_v40 = vadd.s32 %v2307_v11, %v2297_v9  ;;  %v7120_v5 = vld [vmem:[#allocation32_spill] sm:$0xff] }
 0x253   : > { %v5907_v12 = vshrl.u32 %v1231_v41, 30  ;;  %v2256_v18 = vsel %vm2250_vm2, %v2253_v15, %v2255_v0  ;;  %v5911_v19 = vadd.s32 %v2302_v21, %v2298_v42  ;;  %v2390_v52 = vshrl.u32 %v6917_v28, %v7118_v17 }
 0x254   : > { %v2309_v34 = vadd.s32 %v2308_v40, %v2299_v25  ;;  %v2380_v26 = vor.u32 8388608, %v2379_v6  ;;  %v2392_v37 = vshll.u32 %v6917_v28, %v7119_v29  ;;  %v2393_v61 = vshrl.u32 %v6916_v27, %v7118_v17 }
 0x255   : > { %vm2312_vm14 = vc.u32 %v5901_v22, %v5911_v19  ;;  %v2389_v58 = vshll.u32 %v6919_v39, %v7119_v29  ;;  %v2395_v4 = vshll.u32 %v6916_v27, %v7119_v29  ;;  %v2396_v16 = vshrl.u32 %v6902_v8, %v7118_v17 }
 0x256   : > { %v1559_v42 = vor.u32 4788187, %v1558_v49  ;;  %v1091_v21 = vsub.s32 4294967266, %v5905_v50  ;;  %v2313_v38 = vadd.s32 1, %v2309_v34  ;;  %v5928_v31 = vor.u32 %v2393_v61, %v2392_v37 }
 0x257   : > { %v2310_v3 = vmul.u32 %v5776_v10, %v2256_v18  ;;  %v5931_v48 = vor.u32 %v2390_v52, %v2389_v58  ;;  %v5933_v45 = vor.u32 %v2396_v16, %v2395_v4  ;;  %vm2406_vm6 = vcmp.lt.s32.totalorder %v7120_v5, 3  ;;  %v7123_v18 = vld [vmem:[#allocation41_spill] sm:$0xff] }
 0x258   : > { %v1233_v2 = vshll.u32 %v5907_v12, 30  ;;  %v2314_v41 = vsel %vm2312_vm14, %v2313_v38, %v2309_v34  ;;  %v2418_v15 = vsel %vm2406_vm6, %v7122_v43, %v7121_v33  ;;  %v5941_v0 = vshll.u32 %v2380_v26, 8  ;;  %v7124_v58 = vld [vmem:[#allocation9_spill] sm:$0xff] }
 0x259   : > { %v1423_v9 = vmul.f32 -0.00019511016, %v5882_v1  ;;  %v1562_v11 = vcvt.s32.f32 %v1555_v24  ;;  %v5944_v10 = vadd.s32 %v2314_v41, %v2310_v3  ;;  %vm2404_vm2 = vcmp.lt.s32.totalorder %v7120_v5, 1 }
 0x25a   : > { %v1560_v6 = vand.u32 2147483647, %v1559_v42  ;;  %v1092_v49 = vadd.s32 127, %v1091_v21  ;;  %vm2405_vm15 = vcmp.lt.s32.totalorder %v7120_v5, 2  ;;  %v2416_v25 = vsel %vm2404_vm2, %v5928_v31, %v5933_v45 }
 0x25b   : > { %v1087_v40 = vsub.s32 32, %v5905_v50  ;;  %v2412_v24 = vsel %vm2404_vm2, %v5931_v48, %v5928_v31  ;;  %v2414_v52 = vsel %vm2406_vm6, %v5933_v45, %v7123_v18  ;;  %v2419_v34 = vsel %vm2405_vm15, %v2416_v25, %v2418_v15 }
 0x25c   : > { %v5964_v26 = vsub.s32 %v5876_v20, %v1233_v2  ;;  %v2316_v29 = vadd.s32 536870912, %v5944_v10  ;;  %v2421_v37 = vand.u32 65535, %v5941_v0  ;;  %v2424_v61 = vshrl.u32 %v2419_v34, 16 }
 0x25d   : > { %vm1444_vm5 = vcmp.lt.s32.totalorder %v7124_v58, 0  ;;  %v1424_v16 = vadd.f32 0.008332121, %v1423_v9  ;;  %v1071_v42 = vadd.s32 %v5665_v13, %v5645_v32  ;;  %v2423_v21 = vand.u32 65535, %v2419_v34 }
 0x25e   : > { %v1563_v38 = vmul.f32 %v1562_v11, %v1560_v6  ;;  %v1093_v3 = vshll.u32 %v1092_v49, 23  ;;  %v2415_v20 = vsel %vm2405_vm15, %v2412_v24, %v2414_v52  ;;  %v5974_v2 = vmul.u32 %v2424_v61, %v2421_v37 }
 0x25f   : > { %v2822_v41 = vmul.f32 %v5866_v44, %v5677_v35  ;;  %v1414_v33 = vsel %vm5815_vm3, 0, %v5864_v14  ;;  %v1417_v43 = vadd.f32 0.041655596, %v1416_v60  ;;  %v2422_v15 = vshrl.u32 %v5941_v0, 16 }
 0x260   : > { %v7125_v32 = vand.u32 2147483647, %v7124_v58  ;;  %v1089_v9 = vshrl.u32 %v1071_v42, %v1087_v40  ;;  %v1236_v11 = vsub.s32 0, %v5964_v26  ;;  %v5989_v6 = vshrl.u32 %v2316_v29, 30 }
 0x261   : > { %v2429_v44 = vshll.u32 %v5974_v2, 16  ;;  %vm1235_vm0 = vcmp.lt.s32.totalorder %v5964_v26, 0  ;;  %v2425_v51 = vmul.u32 %v2423_v21, %v2421_v37  ;;  %v5993_v14 = vmul.u32 %v2423_v21, %v2422_v15 }
 0x262   : > { %vm5984_vm9 = vcmp.le.f32.partialorder %v7125_v32, 0.7853982  ;;  %v2446_v60 = vshrl.u32 %v2415_v20, 16  ;;  %v1425_v49 = vmul.f32 %v1424_v16, %v5882_v1  ;;  %v1564_v25 = vxor.u32 2147483648, %v1563_v38 }
 0x263   : > { %v1088_v24 = vshll.u32 %v5798_v54, %v5905_v50  ;;  %v1094_v18 = vor.u32 4788187, %v1093_v3  ;;  %v1418_v40 = vmul.f32 %v1417_v43, %v5882_v1  ;;  %v1431_v52 = vadd.s32 3, %v1414_v33 }
 0x264   : > { %vm2433_vm3 = vc.u32 %v2425_v51, %v2429_v44  ;;  %v2435_v34 = vadd.s32 %v2429_v44, %v2425_v51  ;;  %v1566_v29 = vsub.s32 4, %v5657_v7  ;;  %v1237_v32 = vsel %vm1235_vm0, %v1236_v11, %v5964_v26  ;;  %v7128_v51 = vld [vmem:[#allocation33_spill] sm:$0xff] }
 0x265   : > { %v1090_v42 = vor.u32 %v1089_v9, %v1088_v24  ;;  %v2318_v21 = vshll.u32 %v5989_v6, 30  ;;  %v2823_v4 = vadd.f32 1.0, %v2822_v41  ;;  %v2431_v16 = vshll.u32 %v5993_v14, 16 }
 0x266   : > { %v2445_v62 = vand.u32 65535, %v2415_v20  ;;  %v2448_v23 = vmul.u32 %v2446_v60, %v2421_v37  ;;  %v1426_v36 = vadd.f32 -0.16666654, %v1425_v49  ;;  %v1565_v54 = vsel %vm1444_vm5, %v1564_v25, %v1563_v38 }
 0x267   : > { %v1095_v50 = vand.u32 2147483647, %v1094_v18  ;;  %v2434_v3 = vsel %vm2433_vm3, 1, %v6935_v47  ;;  %v1419_v33 = vadd.f32 -0.4999988, %v1418_v40  ;;  %v1238_v43 = vclz %v1237_v32 }
 0x268   : > { %v2428_v44 = vmul.u32 %v2424_v61, %v2422_v15  ;;  %vm2437_vm4 = vc.u32 %v2435_v34, %v2431_v16  ;;  %v6006_v9 = vand.u32 3, %v1431_v52  ;;  %v1567_v41 = vsel %vm1444_vm5, %v1566_v29, %v5657_v7 }
 0x269   : > { %v1097_v11 = vcvt.s32.f32 %v1090_v42  ;;  %v6012_v20 = vsub.s32 %v5944_v10, %v2318_v21  ;;  %vm979_vm12 = vcmp.lt.s32.totalorder %v7128_v51, 0  ;;  %v6018_v38 = vsel %vm5984_vm9, %v7124_v58, %v1565_v54 }
 0x26a   : > { %v2436_v49 = vadd.s32 %v2434_v3, %v2428_v44  ;;  %v2449_v61 = vmul.u32 %v2445_v62, %v2422_v15  ;;  %v2451_v25 = vshll.u32 %v2448_v23, 16  ;;  %v1427_v24 = vmul.f32 %v1426_v36, %v5882_v1 }
 0x26b   : > { %v1098_v18 = vmul.f32 %v1097_v11, %v1095_v50  ;;  %v2438_v40 = vsel %vm2437_vm4, 1, %v6935_v47  ;;  %v2447_v7 = vmul.u32 %v2445_v62, %v2421_v37  ;;  %v6023_v52 = vmul.f32 %v2823_v4, %v5650_v55 }
 0x26c   : > { %v1420_v10 = vmul.f32 %v1419_v33, %v5882_v1  ;;  %v1569_v34 = vsel %vm5984_vm9, 0, %v1567_v41  ;;  %v3054_v29 = vadd.s32 4294967294, %v1238_v43  ;;  %v6030_v42 = vmul.f32 %v6018_v38, %v6018_v38 }
 0x26d   : > { %7129 = vst [vmem:[#allocation20_spill] sm:$0xff] %v6023_v52  ;;  %v7130_v32 = vand.u32 2147483647, %v7128_v51  ;;  %v2321_v62 = vsub.s32 0, %v6012_v20  ;;  %v2450_v55 = vmul.u32 %v2446_v60, %v2422_v15  ;;  %vm2455_vm1 = vc.u32 %v2447_v7, %v2451_v25 }
 0x26e   : > { %v2440_v37 = vadd.s32 %v2438_v40, %v2436_v49  ;;  %v2453_v1 = vshll.u32 %v2449_v61, 16  ;;  %v2456_v4 = vsel %vm2455_vm1, 1, %v6935_v47  ;;  %v2457_v13 = vadd.s32 %v2451_v25, %v2447_v7 }
 0x26f   : > { %vm6034_vm7 = vcmp.le.f32.partialorder %v7130_v32, 0.7853982  ;;  %v1428_v21 = vadd.f32 1.0, %v1427_v24  ;;  %v1099_v16 = vxor.u32 2147483648, %v1098_v18  ;;  %vm2320_vm13 = vcmp.lt.s32.totalorder %v6012_v20, 0  ;;  %v7133_v32 = vld [vmem:[#allocation46_spill] sm:$0xff] }
 0x270   : > { %v2458_v54 = vadd.s32 %v2456_v4, %v2450_v55  ;;  %vm3055_vm8 = vcmp.lt.s32.totalorder %v3054_v29, 0  ;;  %v2430_v3 = vshrl.u32 %v5974_v2, 16  ;;  %vm2459_vm14 = vc.u32 %v2457_v13, %v2453_v1 }
 0x271   : > { %v6043_v33 = vadd.f32 1.0, %v1420_v10  ;;  %v1578_v15 = vmul.f32 -0.00019511016, %v6030_v42  ;;  %v6046_v60 = vadd.s32 3, %v1569_v34  ;;  %v2460_v43 = vsel %vm2459_vm14, 1, %v6935_v47 }
 0x272   : > { %v2322_v44 = vsel %vm2320_vm13, %v2321_v62, %v6012_v20  ;;  %v2441_v41 = vadd.s32 %v2440_v37, %v2430_v3  ;;  %v2452_v11 = vshrl.u32 %v2448_v23, 16  ;;  %v2462_v49 = vadd.s32 %v2460_v43, %v2458_v54 }
 0x273   : > { %v6051_v25 = vmul.f32 %v1428_v21, %v5871_v46  ;;  %v1571_v24 = vmul.f32 -0.001358992, %v6030_v42  ;;  %v1100_v2 = vsel %vm979_vm12, %v1099_v16, %v1098_v18  ;;  %v6056_v40 = vsel %vm3055_vm8, 0, %v3054_v29  ;;  %v7135_v21 = vld [vmem:[#allocation59_spill] sm:$0xff]  ;;  %v7136_v16 = vld [vmem:[#allocation60_spill] sm:$0xff] }
 0x274   : > { %v2432_v7 = vshrl.u32 %v5993_v14, 16  ;;  %v2454_v10 = vshrl.u32 %v2449_v61, 16  ;;  %v2463_v34 = vadd.s32 %v2462_v49, %v2452_v11  ;;  %v6861_v55 = vand.u32 2147483647, %v7133_v32 }
 0x275   : > { %v1579_v62 = vadd.f32 0.008332121, %v1578_v15  ;;  %v2323_v37 = vclz %v2322_v44  ;;  %v2388_v23 = vshrl.u32 %v6919_v39, %v7118_v17  ;;  %vm7134_vm5 = vcmp.lt.s32.totalorder %v7120_v5, 4 }
 0x276   : > { %v2409_v46 = vsel %vm7134_vm5, %v5933_v45, 2102212464  ;;  %v6068_v18 = vsel %vm6034_vm7, %v7128_v51, %v1100_v2  ;;  %v6070_v29 = vadd.s32 %v2441_v41, %v2432_v7  ;;  %v2464_v14 = vadd.s32 %v2463_v34, %v2454_v10  ;;  %v7137_v34 = vld [vmem:[#allocation64_spill] sm:$0xff] }
 0x277   : > { %v1914_v61 = vand.u32 8388607, %v6861_v55  ;;  %v1246_v4 = vsub.s32 4294967266, %v6056_v40  ;;  %v2408_v17 = vsel %vm2404_vm2, %v2388_v23, %v5931_v48  ;;  %v1927_v45 = vshll.u32 %v6917_v28, %v7135_v21 }
 0x278   : > { %v1928_v54 = vshrl.u32 %v6916_v27, %v7136_v16  ;;  %v2410_v3 = vsel %vm2406_vm6, %v5928_v31, %v2409_v46  ;;  %v6085_v15 = vadd.s32 %v2457_v13, %v2453_v1  ;;  %v1930_v43 = vshll.u32 %v6916_v27, %v7135_v21 }
 0x279   : > { %v1931_v44 = vshrl.u32 %v6902_v8, %v7136_v16  ;;  %v3075_v41 = vadd.s32 4294967294, %v2323_v37  ;;  %v2468_v48 = vadd.s32 1, %v2464_v14  ;;  %v1925_v11 = vshrl.u32 %v6917_v28, %v7136_v16 }
 0x27a   : > { %v6093_v49 = vor.u32 %v1928_v54, %v1927_v45  ;;  %v1572_v2 = vadd.f32 0.041655596, %v1571_v24  ;;  %vm2467_vm2 = vc.u32 %v6070_v29, %v6085_v15  ;;  %v1915_v31 = vor.u32 8388608, %v1914_v61 }
 0x27b   : > { %v6097_v1 = vor.u32 %v1931_v44, %v1930_v43  ;;  %v1247_v13 = vadd.s32 127, %v1246_v4  ;;  %v2411_v7 = vsel %vm2405_vm15, %v2408_v17, %v2410_v3  ;;  %v1924_v10 = vshll.u32 %v6919_v39, %v7135_v21  ;;  %v7138_v4 = vld [vmem:[#allocation12_spill] sm:$0xff]  ;;  %v7139_v17 = vld [vmem:[#allocation65_spill] sm:$0xff] }
 0x27c   : > { %vm1939_vm6 = vcmp.lt.s32.totalorder %v7137_v34, 1  ;;  %v1580_v37 = vmul.f32 %v1579_v62, %v6030_v42  ;;  %v6107_v24 = vmul.f32 %v6068_v18, %v6068_v18  ;;  %v1242_v23 = vsub.s32 32, %v6056_v40 }
 0x27d   : > { %v1951_v46 = vsel %vm1939_vm6, %v6093_v49, %v6097_v1  ;;  %vm1437_vm15 = vcmp.eq.s32.totalorder %v6006_v9, 2  ;;  %vm3076_vm9 = vcmp.lt.s32.totalorder %v3075_v41, 0  ;;  %v2469_v5 = vsel %vm2467_vm2, %v2468_v48, %v2464_v14 }
 0x27e   : > { %v6115_v61 = vor.u32 %v1925_v11, %v1924_v10  ;;  %vm1941_vm0 = vcmp.lt.s32.totalorder %v7137_v34, 3  ;;  %vm1434_vm3 = vcmp.eq.s32.totalorder %v6006_v9, 0  ;;  %v2465_v62 = vmul.u32 %v5941_v0, %v2411_v7 }
 0x27f   : > { %vm1940_vm4 = vcmp.lt.s32.totalorder %v7137_v34, 2  ;;  %v1953_v21 = vsel %vm1941_vm0, %v7139_v17, %v7138_v4  ;;  %v6125_v45 = vshll.u32 %v1915_v31, 8  ;;  %v1101_v54 = vsub.s32 4, %v5751_v53 }
 0x280   : > { %v1226_v14 = vadd.s32 %v5839_v30, %v5826_v59  ;;  %v1248_v3 = vshll.u32 %v1247_v13, 23  ;;  %v6132_v43 = vsel %vm1940_vm4, %v1951_v46, %v1953_v21  ;;  %v1573_v0 = vmul.f32 %v1572_v2, %v6030_v42  ;;  %v7140_v30 = vld [vmem:[#allocation43_spill] sm:$0xff] }
 0x281   : > { %v6135_v44 = vsel %vm3076_vm9, 0, %v3075_v41  ;;  %v6137_v48 = vadd.s32 %v2469_v5, %v2465_v62  ;;  %v6862_v11 = vshrl.u32 %v6132_v43, 16  ;;  %v1581_v31 = vadd.f32 -0.16666654, %v1580_v37 }
 0x282   : > { %v1244_v7 = vshrl.u32 %v1226_v14, %v1242_v23  ;;  %v1947_v59 = vsel %vm1939_vm6, %v6115_v61, %v6093_v49  ;;  %v1949_v13 = vsel %vm1941_vm0, %v6097_v1, %v7140_v30  ;;  %v1438_v2 = vxor.u32 2147483648, %v6043_v33 }
 0x283   : > { %v1106_v41 = vmul.f32 -0.001358992, %v6107_v24  ;;  %v1113_v10 = vmul.f32 -0.00019511016, %v6107_v24  ;;  %v1956_v46 = vand.u32 65535, %v6125_v45  ;;  %v1435_v37 = vxor.u32 2147483648, %v6051_v25 }
 0x284   : > { %v1243_v23 = vshll.u32 %v5964_v26, %v6056_v40  ;;  %v1249_v5 = vor.u32 4788187, %v1248_v3  ;;  %v2331_v62 = vsub.s32 4294967266, %v6135_v44  ;;  %v6157_v4 = vand.u32 3, %v6046_v60 }
 0x285   : > { %v2471_v17 = vadd.s32 536870912, %v6137_v48  ;;  %v6162_v21 = vsel %vm1940_vm4, %v1947_v59, %v1949_v13  ;;  %v6166_v14 = vmul.u32 %v6862_v11, %v1956_v46  ;;  %v1574_v30 = vadd.f32 -0.4999988, %v1573_v0 }
 0x286   : > { %v1582_v50 = vmul.f32 %v1581_v31, %v6030_v42  ;;  %v1102_v26 = vsel %vm979_vm12, %v1101_v54, %v5751_v53  ;;  %v1245_v40 = vor.u32 %v1244_v7, %v1243_v23  ;;  %v1439_v60 = vsel %vm1437_vm15, %v1438_v2, %v6051_v25 }
 0x287   : > { %v1107_v3 = vadd.f32 0.041655596, %v1106_v41  ;;  %v1114_v55 = vadd.f32 0.008332121, %v1113_v10  ;;  %v1958_v59 = vand.u32 65535, %v6132_v43  ;;  %v1436_v13 = vsel %vm1434_vm3, %v6043_v33, %v1435_v37  ;;  %v7141_v37 = vld [vmem:[#allocation37_spill] sm:$0xff] }
 0x288   : > { %v1250_v0 = vand.u32 2147483647, %v1249_v5  ;;  %v2332_v11 = vadd.s32 127, %v2331_v62  ;;  %vm1433_vm1 = vcmp.lt.s32.totalorder %v6006_v9, 2  ;;  %v1104_v53 = vsel %vm6034_vm7, 0, %v1102_v26 }
 0x289   : > { %v6183_v54 = vshrl.u32 %v2471_v17, 30  ;;  %v6186_v25 = vshrl.u32 %v6125_v45, 16  ;;  %v1964_v7 = vshll.u32 %v6166_v14, 16  ;;  %v1575_v2 = vmul.f32 %v1574_v30, %v6030_v42 }
 0x28a   : > { %v1583_v41 = vadd.f32 1.0, %v1582_v50  ;;  %v1252_v33 = vcvt.s32.f32 %v1245_v40  ;;  %v2327_v10 = vsub.s32 32, %v6135_v44  ;;  %vm1134_vm12 = vcmp.lt.s32.totalorder %v7141_v37, 0 }
 0x28b   : > { %v1108_v23 = vmul.f32 %v1107_v3, %v6107_v24  ;;  %v1115_v36 = vmul.f32 %v1114_v55, %v6107_v24  ;;  %v1960_v5 = vmul.u32 %v1958_v59, %v1956_v46  ;;  %v6195_v62 = vmul.u32 %v1958_v59, %v6186_v25 }
 0x28c   : > { %v1253_v17 = vmul.f32 %v1252_v33, %v1250_v0  ;;  %v2311_v26 = vadd.s32 %v5911_v19, %v5901_v22  ;;  %v2333_v31 = vshll.u32 %v2332_v11, 23  ;;  %v7142_v42 = vshrl.u32 %v6162_v21, 16 }
 0x28d   : > { %v2473_v30 = vshll.u32 %v6183_v54, 30  ;;  %vm1968_vm7 = vc.u32 %v1960_v5, %v1964_v7  ;;  %v1970_v40 = vadd.s32 %v1964_v7, %v1960_v5  ;;  %v1980_v3 = vand.u32 65535, %v6162_v21 }
 0x28e   : > { %v6201_v50 = vmul.u32 %v7142_v42, %v1956_v46  ;;  %v1576_v55 = vadd.f32 1.0, %v1575_v2  ;;  %v1584_v52 = vmul.f32 %v1583_v41, %v6018_v38  ;;  %v1121_v59 = vadd.s32 3, %v1104_v53 }
 0x28f   : > { %v2329_v63 = vshrl.u32 %v2311_v26, %v2327_v10  ;;  %vm1430_vm13 = vweird.f32 %v7024_v57  ;;  %v1109_v0 = vadd.f32 -0.4999988, %v1108_v23  ;;  %v1116_v22 = vadd.f32 -0.16666654, %v1115_v36 }
 0x290   : > { %v1966_v19 = vshll.u32 %v6195_v62, 16  ;;  %v1986_v11 = vshll.u32 %v6201_v50, 16  ;;  %v1254_v33 = vxor.u32 2147483648, %v1253_v17  ;;  %v2328_v42 = vshll.u32 %v6012_v20, %v6135_v44 }
 0x291   : > { %v2334_v7 = vor.u32 4788187, %v2333_v31  ;;  %v1969_v5 = vsel %vm1968_vm7, 1, %v6935_v47  ;;  %vm1589_vm8 = vcmp.eq.s32.totalorder %v6157_v4, 0  ;;  %vm1592_vm14 = vcmp.eq.s32.totalorder %v6157_v4, 2 }
 0x292   : > { %v6215_v38 = vsub.s32 %v6137_v48, %v2473_v30  ;;  %v7143_v53 = vshrl.u32 %v6132_v43, 16  ;;  %vm1972_vm5 = vc.u32 %v1970_v40, %v1966_v19  ;;  %v1982_v41 = vmul.u32 %v1980_v3, %v1956_v46 }
 0x293   : > { %v1440_v10 = vsel %vm1433_vm1, %v1436_v13, %v1439_v60  ;;  %v7144_v20 = vand.u32 2147483647, %v7141_v37  ;;  %v1256_v31 = vsub.s32 4, %v5907_v12  ;;  %v2330_v23 = vor.u32 %v2329_v63, %v2328_v42 }
 0x294   : > { %v1963_v2 = vmul.u32 %v7143_v53, %v6186_v25  ;;  %v1117_v48 = vmul.f32 %v1116_v22, %v6107_v24  ;;  %v6230_v36 = vand.u32 3, %v1121_v59  ;;  %vm1990_vm15 = vc.u32 %v1982_v41, %v1986_v11 }
 0x295   : > { %vm6224_vm2 = vcmp.le.f32.partialorder %v7144_v20, 0.7853982  ;;  %v1110_v46 = vmul.f32 %v1109_v0, %v6107_v24  ;;  %v1255_v9 = vsel %vm1134_vm12, %v1254_v33, %v1253_v17  ;;  %v2335_v60 = vand.u32 2147483647, %v2334_v7  ;;  %v7147_v0 = vld [vmem:[#allocation10_spill] sm:$0xff] }
 0x296   : > { %v1971_v43 = vadd.s32 %v1969_v5, %v1963_v2  ;;  %v1973_v13 = vsel %vm1972_vm5, 1, %v6935_v47  ;;  %v1590_v26 = vxor.u32 2147483648, %v1584_v52  ;;  %v1593_v30 = vxor.u32 2147483648, %v1576_v55 }
 0x297   : > { %v2476_v40 = vsub.s32 0, %v6215_v38  ;;  %v1984_v63 = vmul.u32 %v1980_v3, %v6186_v25  ;;  %v1257_v59 = vsel %vm1134_vm12, %v1256_v31, %v5907_v12  ;;  %v2337_v22 = vcvt.s32.f32 %v2330_v23 }
 0x298   : > { %vm2475_vm9 = vcmp.lt.s32.totalorder %v6215_v38, 0  ;;  %v1991_v24 = vsel %vm1990_vm15, 1, %v6935_v47  ;;  %vm2219_vm3 = vcmp.lt.s32.totalorder %v7147_v0, 0  ;;  %vm1588_vm1 = vcmp.lt.s32.totalorder %v6157_v4, 2 }
 0x299   : > { %v1118_v17 = vadd.f32 1.0, %v1117_v48  ;;  %v6248_v19 = vsel %vm6224_vm2, %v7141_v37, %v1255_v9  ;;  %v1975_v3 = vadd.s32 %v1973_v13, %v1971_v43  ;;  %v7148_v33 = vshrl.u32 %v6162_v21, 16 }
 0x29a   : > { %v6255_v42 = vsel %vm1430_vm13, nan, %v1440_v10  ;;  %v6257_v7 = vadd.f32 1.0, %v1110_v46  ;;  %v2338_v5 = vmul.f32 %v2337_v22, %v2335_v60  ;;  %v1965_v53 = vshrl.u32 %v6166_v14, 16 }
 0x29b   : > { %v1985_v12 = vmul.u32 %v7148_v33, %v6186_v25  ;;  %vm1127_vm12 = vcmp.eq.s32.totalorder %v6230_v36, 2  ;;  %v2477_v2 = vsel %vm2475_vm9, %v2476_v40, %v6215_v38  ;;  %v1988_v20 = vshll.u32 %v1984_v63, 16 }
 0x29c   : > { %v1992_v31 = vadd.s32 %v1986_v11, %v1982_v41  ;;  %v1591_v21 = vsel %vm1589_vm8, %v1576_v55, %v1590_v26  ;;  %v1594_v57 = vsel %vm1592_vm14, %v1593_v30, %v1584_v52  ;;  %v1259_v25 = vsel %vm6224_vm2, 0, %v1257_v59  ;;  %v7150_v26 = vld [vmem:[#allocation6_spill] sm:$0xff] }
 0x29d   : > { %v1993_v23 = vadd.s32 %v1991_v24, %v1985_v12  ;;  %v6270_v10 = vmul.f32 %v6248_v19, %v6248_v19  ;;  %v1119_v14 = vmul.f32 %v1118_v17, %v6068_v18  ;;  %v1923_v48 = vshrl.u32 %v6919_v39, %v7136_v16 }
 0x29e   : > { %v1976_v11 = vadd.s32 %v1975_v3, %v1965_v53  ;;  %vm1994_vm7 = vc.u32 %v1992_v31, %v1988_v20  ;;  %v2339_v41 = vxor.u32 2147483648, %v2338_v5  ;;  %v2478_v43 = vclz %v2477_v2 }
 0x29f   : > { %vm7149_vm13 = vcmp.lt.s32.totalorder %v7137_v34, 4  ;;  %v1995_v55 = vsel %vm1994_vm7, 1, %v6935_v47  ;;  %v1128_v44 = vxor.u32 2147483648, %v6257_v7  ;;  %v1967_v46 = vshrl.u32 %v6195_v62, 16  ;;  %v7154_v34 = vld [vmem:[#allocation66_spill] sm:$0xff] }
 0x2a0   : > { %v1944_v52 = vsel %vm7149_vm13, %v6097_v1, 2102212464  ;;  %v1987_v9 = vshrl.u32 %v6201_v50, 16  ;;  %v1997_v18 = vadd.s32 %v1995_v55, %v1993_v23  ;;  %v1261_v60 = vmul.f32 -0.001358992, %v6270_v10 }
 0x2a1   : > { %v1268_v16 = vmul.f32 -0.00019511016, %v6270_v10  ;;  %v1943_v13 = vsel %vm1939_vm6, %v1923_v48, %v6115_v61  ;;  %v6867_v30 = vand.u32 2147483647, %v7150_v26  ;;  %vm1124_vm8 = vcmp.eq.s32.totalorder %v6230_v36, 0 }
 0x2a2   : > { %v1945_v1 = vsel %vm1941_vm0, %v6093_v49, %v1944_v52  ;;  %v6292_v62 = vadd.s32 %v1976_v11, %v1967_v46  ;;  %v1989_v50 = vshrl.u32 %v1984_v63, 16  ;;  %v1998_v40 = vadd.s32 %v1997_v18, %v1987_v9 }
 0x2a3   : > { %v6296_v59 = vsel %vm1588_vm1, %v1591_v21, %v1594_v57  ;;  %v7151_v22 = vand.u32 2147483647, %v7147_v0  ;;  %v2340_v24 = vsel %vm2219_vm3, %v2339_v41, %v2338_v5  ;;  %v3078_v17 = vadd.s32 4294967294, %v2478_v43  ;;  %v7155_v57 = vld [vmem:[#allocation69_spill] sm:$0xff] }
 0x2a4   : > { %v1125_v3 = vxor.u32 2147483648, %v1119_v14  ;;  %v1276_v49 = vadd.s32 3, %v1259_v25  ;;  %v6306_v33 = vadd.s32 %v1992_v31, %v1988_v20  ;;  %v1999_v63 = vadd.s32 %v1998_v40, %v1989_v50  ;;  %v7158_v40 = vld [vmem:[#allocation72_spill] sm:$0xff] }
 0x2a5   : > { %vm6300_vm14 = vcmp.le.f32.partialorder %v7151_v22, 0.7853982  ;;  %v1129_v4 = vsel %vm1127_vm12, %v1128_v44, %v1119_v14  ;;  %v1262_v12 = vadd.f32 0.041655596, %v1261_v60  ;;  %v1946_v53 = vsel %vm1940_vm4, %v1943_v13, %v1945_v1  ;;  %v7156_v1 = vld [vmem:[#allocation67_spill] sm:$0xff] }
 0x2a6   : > { %v2069_v2 = vand.u32 8388607, %v6867_v30  ;;  %vm1123_vm6 = vcmp.lt.s32.totalorder %v6230_v36, 2  ;;  %v1269_v23 = vadd.f32 0.008332121, %v1268_v16  ;;  %v2341_v5 = vsub.s32 4, %v5989_v6 }
 0x2a7   : > { %v6319_v20 = vsel %vm6300_vm14, %v7147_v0, %v2340_v24  ;;  %vm2002_vm0 = vc.u32 %v6292_v62, %v6306_v33  ;;  %vm3079_vm5 = vcmp.lt.s32.totalorder %v3078_v17, 0  ;;  %v2003_v31 = vadd.s32 1, %v1999_v63 }
 0x2a8   : > { %v2082_v21 = vshll.u32 %v6917_v28, %v7154_v34  ;;  %v2083_v25 = vshrl.u32 %v6916_v27, %v7155_v57  ;;  %v2000_v14 = vmul.u32 %v6125_v45, %v1946_v53  ;;  %v2080_v48 = vshrl.u32 %v6917_v28, %v7155_v57 }
 0x2a9   : > { %v2085_v11 = vshll.u32 %v6916_v27, %v7154_v34  ;;  %v2086_v41 = vshrl.u32 %v6902_v8, %v7155_v57  ;;  %v1263_v43 = vmul.f32 %v1262_v12, %v6270_v10  ;;  %v2004_v52 = vsel %vm2002_vm0, %v2003_v31, %v1999_v63 }
 0x2aa   : > { %v2070_v55 = vor.u32 8388608, %v2069_v2  ;;  %v6335_v44 = vor.u32 %v2083_v25, %v2082_v21  ;;  %v1270_v46 = vmul.f32 %v1269_v23, %v6270_v10  ;;  %v2005_v9 = vadd.s32 %v2004_v52, %v2000_v14 }
 0x2ab   : > { %v2079_v45 = vshll.u32 %v6919_v39, %v7154_v34  ;;  %v6340_v18 = vor.u32 %v2086_v41, %v2085_v11  ;;  %v1126_v28 = vsel %vm1124_vm8, %v6257_v7, %v1125_v3  ;;  %v6348_v8 = vsel %vm2219_vm3, %v2341_v5, %v5989_v6  ;;  %v7157_v7 = vld [vmem:[#allocation14_spill] sm:$0xff] }
 0x2ac   : > { %v6352_v27 = vmul.f32 %v6319_v20, %v6319_v20  ;;  %v2481_v60 = vsel %vm3079_vm5, 0, %v3078_v17  ;;  %v2006_v16 = vadd.s32 536870912, %v2005_v9  ;;  %vm2094_vm4 = vcmp.lt.s32.totalorder %v7156_v1, 1 }
 0x2ad   : > { %v6355_v13 = vor.u32 %v2080_v48, %v2079_v45  ;;  %vm2096_vm2 = vcmp.lt.s32.totalorder %v7156_v1, 3  ;;  %v1264_v50 = vadd.f32 -0.4999988, %v1263_v43  ;;  %v2106_v6 = vsel %vm2094_vm4, %v6335_v44, %v6340_v18 }
 0x2ae   : > { %v2108_v22 = vsel %vm2096_vm2, %v7158_v40, %v7157_v7  ;;  %v6367_v24 = vshll.u32 %v2070_v55, 8  ;;  %v1271_v17 = vadd.f32 -0.16666654, %v1270_v46  ;;  %v2486_v3 = vsub.s32 4294967266, %v2481_v60 }
 0x2af   : > { %v6369_v63 = vshrl.u32 %v2006_v16, 30  ;;  %vm2095_vm15 = vcmp.lt.s32.totalorder %v7156_v1, 2  ;;  %v6374_v12 = vsel %vm1123_vm6, %v1126_v28, %v1129_v4  ;;  %v6376_v53 = vand.u32 3, %v1276_v49  ;;  %v7159_v4 = vld [vmem:[#allocation8_spill] sm:$0xff] }
 0x2b0   : > { %v2109_v23 = vsel %vm2095_vm15, %v2106_v6, %v2108_v22  ;;  %v2353_v5 = vmul.f32 -0.00019511016, %v6352_v27  ;;  %v2102_v36 = vsel %vm2094_vm4, %v6355_v13, %v6335_v44  ;;  %v2104_v49 = vsel %vm2096_vm2, %v6340_v18, %v7159_v4 }
 0x2b1   : > { %v2008_v31 = vshll.u32 %v6369_v63, 30  ;;  %v2482_v34 = vsub.s32 32, %v2481_v60  ;;  %v2111_v21 = vand.u32 65535, %v6367_v24  ;;  %v2113_v25 = vand.u32 65535, %v2109_v23 }
 0x2b2   : > { %v2114_v14 = vshrl.u32 %v2109_v23, 16  ;;  %v6395_v48 = vmul.f32 %v1264_v50, %v6270_v10  ;;  %v1272_v11 = vmul.f32 %v1271_v17, %v6270_v10  ;;  %v2487_v41 = vadd.s32 127, %v2486_v3 }
 0x2b3   : > { %v2009_v43 = vsub.s32 %v2005_v9, %v2008_v31  ;;  %v2466_v52 = vadd.s32 %v6085_v15, %v6070_v29  ;;  %v2105_v55 = vsel %vm2095_vm15, %v2102_v36, %v2104_v49  ;;  %v2112_v46 = vshrl.u32 %v6367_v24, 16 }
 0x2b4   : > { %v2116_v45 = vmul.u32 %v2114_v14, %v2111_v21  ;;  %v2346_v28 = vmul.f32 -0.001358992, %v6352_v27  ;;  %v2354_v16 = vadd.f32 0.008332121, %v2353_v5  ;;  %v2115_v7 = vmul.u32 %v2113_v25, %v2111_v21 }
 0x2b5   : > { %vm2010_vm9 = vcmp.lt.s32.totalorder %v2009_v43, 0  ;;  %v2011_v6 = vsub.s32 0, %v2009_v43  ;;  %v2484_v50 = vshrl.u32 %v2466_v52, %v2482_v34  ;;  %v2117_v40 = vmul.u32 %v2113_v25, %v2112_v46 }
 0x2b6   : > { %v2119_v10 = vshll.u32 %v2116_v45, 16  ;;  %v2488_v22 = vshll.u32 %v2487_v41, 23  ;;  %v2135_v17 = vand.u32 65535, %v2105_v55  ;;  %v2136_v3 = vshrl.u32 %v2105_v55, 16 }
 0x2b7   : > { %v2012_v9 = vsel %vm2010_vm9, %v2011_v6, %v2009_v43  ;;  %v6404_v29 = vadd.f32 1.0, %v1272_v11  ;;  %v2118_v23 = vmul.u32 %v2114_v14, %v2112_v46  ;;  %v2347_v31 = vadd.f32 0.041655596, %v2346_v28 }
 0x2b8   : > { %v2013_v15 = vclz %v2012_v9  ;;  %vm2123_vm3 = vc.u32 %v2115_v7, %v2119_v10  ;;  %v2355_v36 = vmul.f32 %v2354_v16, %v6352_v27  ;;  %v2483_v5 = vshll.u32 %v6215_v38, %v2481_v60 }
 0x2b9   : > { %v2124_v4 = vsel %vm2123_vm3, 1, %v6935_v47  ;;  %v2121_v34 = vshll.u32 %v2117_v40, 16  ;;  %v2125_v25 = vadd.s32 %v2119_v10, %v2115_v7  ;;  %v2489_v6 = vor.u32 4788187, %v2488_v22 }
 0x2ba   : > { %v3069_v49 = vadd.s32 4294967294, %v2013_v15  ;;  %v2126_v52 = vadd.s32 %v2124_v4, %v2118_v23  ;;  %v2485_v41 = vor.u32 %v2484_v50, %v2483_v5  ;;  %v2138_v30 = vmul.u32 %v2136_v3, %v2111_v21 }
 0x2bb   : > { %v2139_v55 = vmul.u32 %v2135_v17, %v2112_v46  ;;  %v2001_v11 = vadd.s32 %v6306_v33, %v6292_v62  ;;  %v2120_v14 = vshrl.u32 %v2116_v45, 16  ;;  %vm2127_vm12 = vc.u32 %v2125_v25, %v2121_v34 }
 0x2bc   : > { %vm3070_vm1 = vcmp.lt.s32.totalorder %v3069_v49, 0  ;;  %v2128_v16 = vsel %vm2127_vm12, 1, %v6935_v47  ;;  %v2137_v38 = vmul.u32 %v2135_v17, %v2111_v21  ;;  %v2141_v60 = vshll.u32 %v2138_v30, 16 }
 0x2bd   : > { %v2016_v28 = vsel %vm3070_vm1, 0, %v3069_v49  ;;  %v2130_v2 = vadd.s32 %v2128_v16, %v2126_v52  ;;  %v2140_v7 = vmul.u32 %v2136_v3, %v2112_v46  ;;  %v2143_v50 = vshll.u32 %v2139_v55, 16 }
 0x2be   : > { %v2017_v9 = vsub.s32 32, %v2016_v28  ;;  %v2021_v15 = vsub.s32 4294967266, %v2016_v28  ;;  %v2018_v10 = vshll.u32 %v2009_v43, %v2016_v28  ;;  %vm2145_vm7 = vc.u32 %v2137_v38, %v2141_v60 }
 0x2bf   : > { %v2147_v22 = vadd.s32 %v2141_v60, %v2137_v38  ;;  %vm1585_vm13 = vweird.f32 %v7124_v58  ;;  %v2131_v33 = vadd.s32 %v2130_v2, %v2120_v14  ;;  %v2146_v45 = vsel %vm2145_vm7, 1, %v6935_v47 }
 0x2c0   : > { %v2019_v23 = vshrl.u32 %v2001_v11, %v2017_v9  ;;  %v2022_v62 = vadd.s32 127, %v2021_v15  ;;  %vm1120_vm8 = vweird.f32 %v7128_v51  ;;  %v2078_v21 = vshrl.u32 %v6919_v39, %v7155_v57 }
 0x2c1   : > { %vm7160_vm6 = vcmp.lt.s32.totalorder %v7156_v1, 4  ;;  %v2148_v43 = vadd.s32 %v2146_v45, %v2140_v7  ;;  %vm2149_vm0 = vc.u32 %v2147_v22, %v2143_v50  ;;  %v2122_v5 = vshrl.u32 %v2117_v40, 16 }
 0x2c2   : > { %v2099_v46 = vsel %vm7160_vm6, %v6340_v18, 2102212464  ;;  %v2020_v17 = vor.u32 %v2019_v23, %v2018_v10  ;;  %v2023_v3 = vshll.u32 %v2022_v62, 23  ;;  %v2150_v4 = vsel %vm2149_vm0, 1, %v6935_v47 }
 0x2c3   : > { %vm1909_vm5 = vcmp.lt.s32.totalorder %v7133_v32, 0  ;;  %v2356_v2 = vadd.f32 -0.16666654, %v2355_v36  ;;  %v2490_v49 = vand.u32 2147483647, %v2489_v6  ;;  %v2142_v34 = vshrl.u32 %v2138_v30, 16 }
 0x2c4   : > { %v2152_v25 = vadd.s32 %v2150_v4, %v2148_v43  ;;  %v2024_v52 = vor.u32 4788187, %v2023_v3  ;;  %v2098_v39 = vsel %vm2094_vm4, %v2078_v21, %v6355_v13  ;;  %v2100_v57 = vsel %vm2096_vm2, %v6335_v44, %v2099_v46  ;;  %v6435_v13 = vpop.permute.xlu1 %2862  ;;  %v2858_v21 = vpop.permute.xlu0 %2857  ;;  %v7173_v43 = vld [vmem:[#allocation36_spill] sm:$0xff] }
 0x2c5   : > { %v6428_v18 = vadd.s32 %v2131_v33, %v2122_v5  ;;  %v2348_v40 = vmul.f32 %v2347_v31, %v6352_v27  ;;  %v2492_v47 = vcvt.s32.f32 %v2485_v41  ;;  %v2144_v11 = vshrl.u32 %v2139_v55, 16 }
 0x2c6   : > { %v2153_v14 = vadd.s32 %v2152_v25, %v2142_v34  ;;  %vm2374_vm9 = vcmp.lt.s32.totalorder %v7117_v56, 0  ;;  %v1266_v30 = vadd.f32 1.0, %v6395_v48  ;;  %v2025_v36 = vand.u32 2147483647, %v2024_v52 }
 0x2c7   : > { %v2027_v6 = vcvt.s32.f32 %v2020_v17  ;;  %v6433_v28 = vadd.s32 %v2147_v22, %v2143_v50  ;;  %v2357_v16 = vmul.f32 %v2356_v2, %v6352_v27  ;;  %v2493_v44 = vmul.f32 %v2492_v47, %v2490_v49 }
 0x2c8   : > { %v2101_v38 = vsel %vm2095_vm15, %v2098_v39, %v2100_v57  ;;  %v2154_v31 = vadd.s32 %v2153_v14, %v2144_v11  ;;  %v6442_v41 = vmul.f32 %v6435_v13, %v6255_v42  ;;  %v1274_v48 = vmul.f32 %v6404_v29, %v6248_v19 }
 0x2c9   : > { %v2028_v55 = vmul.f32 %v2027_v6, %v2025_v36  ;;  %vm2157_vm4 = vc.u32 %v6428_v18, %v6433_v28  ;;  %v6451_v60 = vsel %vm1585_vm13, nan, %v6296_v59  ;;  %vm1279_vm2 = vcmp.eq.s32.totalorder %v6376_v53, 0  ;;  %v7169_v6 = vld [vmem:[#allocation28_spill] sm:$0xff] }
 0x2ca   : > { %v2349_v1 = vadd.f32 -0.4999988, %v2348_v40  ;;  %v2158_v9 = vadd.s32 1, %v2154_v31  ;;  %v1131_v42 = vsel %vm1120_vm8, nan, %v6374_v12  ;;  %vm1278_vm15 = vcmp.lt.s32.totalorder %v6376_v53, 2 }
 0x2cb   : > { %v7161_v19 = vsel %vm6300_vm14, 0, %v6348_v8  ;;  %v2029_v15 = vxor.u32 2147483648, %v2028_v55  ;;  %v2155_v58 = vmul.u32 %v6367_v24, %v2101_v38  ;;  %v1283_v59 = vxor.u32 2147483648, %v1266_v30  ;;  %v7165_v24 = vld [vmem:[#allocation70_spill] sm:$0xff] }
 0x2cc   : > { %v2361_v29 = vadd.s32 3, %v7161_v19  ;;  %v2358_v7 = vadd.f32 1.0, %v2357_v16  ;;  %v2494_v10 = vxor.u32 2147483648, %v2493_v44  ;;  %v2159_v50 = vsel %vm2157_vm4, %v2158_v9, %v2154_v31 }
 0x2cd   : > { %v1280_v22 = vxor.u32 2147483648, %v1274_v48  ;;  %v7162_v23 = vand.u32 2147483647, %v7133_v32  ;;  %v2030_v61 = vsel %vm1909_vm5, %v2029_v15, %v2028_v55  ;;  %v2160_v12 = vadd.s32 %v2159_v50, %v2155_v58 }
 0x2ce   : > { %v2350_v8 = vmul.f32 %v2349_v1, %v6352_v27  ;;  %v2496_v62 = vsub.s32 4, %v6183_v54  ;;  %v1726_v33 = vmul.f32 -0.001358992, %v7165_v24  ;;  %vm1275_vm14 = vweird.f32 %v7141_v37 }
 0x2cf   : > { %vm6465_vm3 = vcmp.le.f32.partialorder %v7162_v23, 0.7853982  ;;  %vm1282_vm1 = vcmp.eq.s32.totalorder %v6376_v53, 2  ;;  %v7166_v46 = vand.u32 2147483647, %v7117_v56  ;;  %v2161_v17 = vadd.s32 536870912, %v2160_v12 }
 0x2d0   : > { %v6477_v45 = vsel %vm6465_vm3, %v7133_v32, %v2030_v61  ;;  %v2889_v3 = vmul.f32 %v2858_v21, %v1131_v42  ;;  %v2359_v5 = vmul.f32 %v2358_v7, %v6319_v20  ;;  %v2362_v4 = vand.u32 3, %v2361_v29  ;;  %v7171_v61 = vld [vmem:[#allocation63_spill] sm:$0xff] }
 0x2d1   : > { %vm6483_vm12 = vcmp.le.f32.partialorder %v7166_v46, 0.7853982  ;;  %v6489_v27 = vmul.f32 %v6477_v45, %v6477_v45  ;;  %v2495_v2 = vsel %vm2374_vm9, %v2494_v10, %v2493_v44  ;;  %v1281_v49 = vsel %vm1279_vm2, %v1266_v30, %v1280_v22 }
 0x2d2   : > { %v6498_v52 = vshrl.u32 %v2161_v17, 30  ;;  %v1284_v39 = vsel %vm1282_vm1, %v1283_v59, %v1274_v48  ;;  %v2351_v57 = vadd.f32 1.0, %v2350_v8  ;;  %v2497_v40 = vsel %vm2374_vm9, %v2496_v62, %v6183_v54  ;;  %v7170_v59 = vld [vmem:[#allocation73_spill] sm:$0xff] }
 0x2d3   : > { %v2036_v34 = vmul.f32 -0.001358992, %v6489_v27  ;;  %v2043_v25 = vmul.f32 -0.00019511016, %v6489_v27  ;;  %v1727_v20 = vadd.f32 0.041655596, %v1726_v33  ;;  %v6506_v47 = vsel %vm6483_vm12, %v7117_v56, %v2495_v2 }
 0x2d4   : > { %v2163_v30 = vshll.u32 %v6498_v52, 30  ;;  %v1285_v36 = vsel %vm1278_vm15, %v1281_v49, %v1284_v39  ;;  %v2902_v16 = vadd.f32 %v7169_v6, %v2889_v3  ;;  %vm2363_vm7 = vcmp.lt.s32.totalorder %v2362_v4, 2 }
 0x2d5   : > { %v2037_v11 = vadd.f32 0.041655596, %v2036_v34  ;;  %v2044_v14 = vadd.f32 0.008332121, %v2043_v25  ;;  %v2365_v44 = vxor.u32 2147483648, %v2359_v5  ;;  %vm2360_vm13 = vweird.f32 %v7147_v0 }
 0x2d6   : > { %v2499_v54 = vsel %vm6483_vm12, 0, %v2497_v40  ;;  %v2031_v38 = vsub.s32 4, %v6369_v63  ;;  %v2164_v48 = vsub.s32 %v2160_v12, %v2163_v30  ;;  %vm2364_vm8 = vcmp.eq.s32.totalorder %v2362_v4, 0  ;;  %v7175_v30 = vld [vmem:[#allocation18_spill] sm:$0xff] }
 0x2d7   : > { %v2045_v31 = vmul.f32 %v2044_v14, %v6489_v27  ;;  %v2368_v55 = vxor.u32 2147483648, %v2351_v57  ;;  %v6519_v53 = vmul.f32 %v6506_v47, %v6506_v47  ;;  %v1728_v1 = vmul.f32 %v1727_v20, %v7165_v24 }
 0x2d8   : > { %v2038_v9 = vmul.f32 %v2037_v11, %v6489_v27  ;;  %vm2165_vm6 = vcmp.lt.s32.totalorder %v2164_v48, 0  ;;  %v2166_v19 = vsub.s32 0, %v2164_v48  ;;  %v1286_v29 = vsel %vm1275_vm14, nan, %v1285_v36 }
 0x2d9   : > { %v2046_v42 = vadd.f32 -0.16666654, %v2045_v31  ;;  %v2366_v15 = vsel %vm2364_vm8, %v2351_v57, %v2365_v44  ;;  %vm2367_vm0 = vcmp.eq.s32.totalorder %v2362_v4, 2  ;;  %v2516_v58 = vadd.s32 3, %v2499_v54 }
 0x2da   : > { %v1881_v7 = vmul.f32 -0.001358992, %v7170_v59  ;;  %v2032_v10 = vsel %vm1909_vm5, %v2031_v38, %v6369_v63  ;;  %v2167_v22 = vsel %vm2165_vm6, %v2166_v19, %v2164_v48  ;;  %v2369_v23 = vsel %vm2367_vm0, %v2368_v55, %v2359_v5 }
 0x2db   : > { %v2047_v50 = vmul.f32 %v2046_v42, %v6489_v27  ;;  %v1724_v8 = vsel %vm4811_vm11, 0, %v7171_v61  ;;  %v1729_v62 = vadd.f32 -0.4999988, %v1728_v1  ;;  %v2168_v37 = vclz %v2167_v22 }
 0x2dc   : > { %v2370_v33 = vsel %vm2363_vm7, %v2366_v15, %v2369_v23  ;;  %v2508_v46 = vmul.f32 -0.00019511016, %v6519_v53  ;;  %v1879_v3 = vsel %vm4886_vm10, 0, %v7173_v43  ;;  %v2039_v2 = vadd.f32 -0.4999988, %v2038_v9  ;;  %v7176_v15 = vld [vmem:[#allocation27_spill] sm:$0xff] }
 0x2dd   : > { %v6538_v63 = vmul.f32 %v2858_v21, %v1286_v29  ;;  %v6541_v49 = vadd.f32 %v2902_v16, %v6442_v41  ;;  %v2034_v5 = vsel %vm6465_vm3, 0, %v2032_v10  ;;  %v3072_v34 = vadd.s32 4294967294, %v2168_v37 }
 0x2de   : > { %v6545_v25 = vand.u32 3, %v2516_v58  ;;  %v1741_v4 = vadd.s32 3, %v1724_v8  ;;  %v1882_v39 = vadd.f32 0.041655596, %v1881_v7  ;;  %v2048_v57 = vadd.f32 1.0, %v2047_v50 }
 0x2df   : > { %v6549_v40 = vsel %vm2360_vm13, nan, %v2370_v33  ;;  %v1730_v20 = vmul.f32 %v1729_v62, %v7165_v24  ;;  %v1896_v21 = vadd.s32 3, %v1879_v3  ;;  %vm3073_vm11 = vcmp.lt.s32.totalorder %v3072_v34, 0 }
 0x2e0   : > { %v2509_v11 = vadd.f32 0.008332121, %v2508_v46  ;;  %v2040_v41 = vmul.f32 %v2039_v2, %v6489_v27  ;;  %v2051_v14 = vadd.s32 3, %v2034_v5  ;;  %v2171_v51 = vsel %vm3073_vm11, 0, %v3072_v34 }
 0x2e1   : > { %v1745_v36 = vxor.u32 2147483648, %v7175_v30  ;;  %v2156_v6 = vadd.s32 %v6433_v28, %v6428_v18  ;;  %v2172_v16 = vsub.s32 32, %v2171_v51  ;;  %v2176_v44 = vsub.s32 4294967266, %v2171_v51 }
 0x2e2   : > { %v2501_v0 = vmul.f32 -0.001358992, %v6519_v53  ;;  %v1742_v54 = vand.u32 3, %v1741_v4  ;;  %v1883_v38 = vmul.f32 %v1882_v39, %v7170_v59  ;;  %v2049_v24 = vmul.f32 %v2048_v57, %v6477_v45  ;;  %v7177_v45 = vld [vmem:[#allocation15_spill] sm:$0xff] }
 0x2e3   : > { %v1731_v31 = vadd.f32 1.0, %v1730_v20  ;;  %v2173_v55 = vshll.u32 %v2164_v48, %v2171_v51  ;;  %v2174_v1 = vshrl.u32 %v2156_v6, %v2172_v16  ;;  %v2177_v27 = vadd.s32 127, %v2176_v44  ;;  %v6582_v6 = vpop.permute.xlu2 %2867 }
 0x2e4   : > { %v2510_v9 = vmul.f32 %v2509_v11, %v6519_v53  ;;  %v6560_v42 = vand.u32 3, %v1896_v21  ;;  %v2041_v19 = vadd.f32 1.0, %v2040_v41  ;;  %v2052_v29 = vand.u32 3, %v2051_v14 }
 0x2e5   : > { %v2175_v18 = vor.u32 %v2174_v1, %v2173_v55  ;;  %v2178_v28 = vshll.u32 %v2177_v27, 23  ;;  %v2656_v58 = vmul.f32 -0.001358992, %v7176_v15  ;;  %v2811_v7 = vmul.f32 -0.001358992, %v5677_v35  ;;  %v7182_v1 = vld [vmem:[#allocation16_spill] sm:$0xff] }
 0x2e6   : > { %vm2064_vm10 = vcmp.lt.s32.totalorder %v7150_v26, 0  ;;  %v2502_v10 = vadd.f32 0.041655596, %v2501_v0  ;;  %vm1740_vm5 = vweird.f32 %v7177_v45  ;;  %vm1743_vm9 = vcmp.lt.s32.totalorder %v1742_v54, 2 }
 0x2e7   : > { %v1884_v48 = vadd.f32 -0.4999988, %v1883_v38  ;;  %v2055_v50 = vxor.u32 2147483648, %v2049_v24  ;;  %vm1744_vm4 = vcmp.eq.s32.totalorder %v1742_v54, 0  ;;  %v1748_v22 = vxor.u32 2147483648, %v1731_v31 }
 0x2e8   : > { %v2179_v23 = vor.u32 4788187, %v2178_v28  ;;  %v2657_v61 = vadd.f32 0.041655596, %v2656_v58  ;;  %v2511_v12 = vadd.f32 -0.16666654, %v2510_v9  ;;  %v1746_v8 = vsel %vm1744_vm4, %v1731_v31, %v1745_v36  ;;  %v6605_v58 = vpop.permute.xlu0 %2872 }
 0x2e9   : > { %vm2054_vm2 = vcmp.eq.s32.totalorder %v2052_v29, 0  ;;  %v2058_v62 = vxor.u32 2147483648, %v2041_v19  ;;  %v2182_v33 = vcvt.s32.f32 %v2175_v18  ;;  %v2812_v43 = vadd.f32 0.041655596, %v2811_v7  ;;  %v7181_v31 = vld [vmem:[#allocation23_spill] sm:$0xff] }
 0x2ea   : > { %v2180_v37 = vand.u32 2147483647, %v2179_v23  ;;  %v2658_v46 = vmul.f32 %v2657_v61, %v7176_v15  ;;  %v2503_v17 = vmul.f32 %v2502_v10, %v6519_v53  ;;  %vm1747_vm15 = vcmp.eq.s32.totalorder %v1742_v54, 2 }
 0x2eb   : > { %v1885_v3 = vmul.f32 %v1884_v48, %v7170_v59  ;;  %v2056_v2 = vsel %vm2054_vm2, %v2041_v19, %v2055_v50  ;;  %v1749_v5 = vsel %vm1747_vm15, %v1748_v22, %v7175_v30  ;;  %vm2057_vm3 = vcmp.eq.s32.totalorder %v2052_v29, 2  ;;  %v7184_v48 = vld [vmem:[#allocation17_spill] sm:$0xff] }
 0x2ec   : > { %v2183_v34 = vmul.f32 %v2182_v33, %v2180_v37  ;;  %v2659_v4 = vadd.f32 -0.4999988, %v2658_v46  ;;  %v2512_v39 = vmul.f32 %v2511_v12, %v6519_v53  ;;  %v1750_v57 = vsel %vm1743_vm9, %v1746_v8, %v1749_v5  ;;  %v7185_v37 = vld [vmem:[#allocation45_spill] sm:$0xff] }
 0x2ed   : > { %vm2053_vm14 = vcmp.lt.s32.totalorder %v2052_v29, 2  ;;  %v2059_v20 = vsel %vm2057_vm3, %v2058_v62, %v2049_v24  ;;  %v2813_v14 = vmul.f32 %v2812_v43, %v5677_v35  ;;  %v2504_v51 = vadd.f32 -0.4999988, %v2503_v17 }
 0x2ee   : > { %v2060_v21 = vsel %vm2053_vm14, %v2056_v2, %v2059_v20  ;;  %v2184_v11 = vxor.u32 2147483648, %v2183_v34  ;;  %v2660_v41 = vmul.f32 %v2659_v4, %v7176_v15  ;;  %vm2050_vm1 = vweird.f32 %v7133_v32  ;;  %v2878_v4 = vpop.permute.xlu1 %2877 }
 0x2ef   : > { %v7178_v59 = vand.u32 2147483647, %v7150_v26  ;;  %v2186_v36 = vsub.s32 4, %v6498_v52  ;;  %v1751_v16 = vsel %vm1740_vm5, nan, %v1750_v57  ;;  %v1886_v44 = vadd.f32 1.0, %v1885_v3 }
 0x2f0   : > { %v2185_v0 = vsel %vm2064_vm10, %v2184_v11, %v2183_v34  ;;  %v2661_v54 = vadd.f32 1.0, %v2660_v41  ;;  %v2513_v38 = vadd.f32 1.0, %v2512_v39  ;;  %v2061_v32 = vsel %vm2050_vm1, nan, %v2060_v21  ;;  %v2883_v34 = vpop.permute.xlu2 %2882 }
 0x2f1   : > { %vm6577_vm12 = vcmp.le.f32.partialorder %v7178_v59, 0.7853982  ;;  %vm2674_vm7 = vcmp.eq.s32.totalorder %v7181_v31, 0  ;;  %v7183_v27 = vxor.u32 2147483648, %v7182_v1  ;;  %v2814_v29 = vadd.f32 -0.4999988, %v2813_v14 }
 0x2f2   : > { %v6591_v24 = vsel %vm6577_vm12, %v7150_v26, %v2185_v0  ;;  %v2678_v19 = vxor.u32 2147483648, %v2661_v54  ;;  %v2505_v18 = vmul.f32 %v2504_v51, %v6519_v53  ;;  %v2187_v28 = vsel %vm2064_vm10, %v2186_v36, %v6498_v52  ;;  %v7186_v36 = vld [vmem:[#allocation38_spill] sm:$0xff] }
 0x2f3   : > { %v2190_v55 = vmul.f32 %v6591_v24, %v6591_v24  ;;  %v2676_v9 = vsel %vm2674_vm7, %v2661_v54, %v7183_v27  ;;  %vm2677_vm13 = vcmp.eq.s32.totalorder %v7181_v31, 2  ;;  %v2893_v15 = vmul.f32 %v6582_v6, %v1751_v16  ;;  %v7188_v27 = vld [vmem:[#allocation20_spill] sm:$0xff] }
 0x2f4   : > { %vm2519_vm8 = vcmp.eq.s32.totalorder %v6545_v25, 0  ;;  %vm2673_vm6 = vcmp.lt.s32.totalorder %v7181_v31, 2  ;;  %v2679_v45 = vsel %vm2677_vm13, %v2678_v19, %v7182_v1  ;;  %v2514_v53 = vmul.f32 %v2513_v38, %v6506_v47  ;;  %v7187_v38 = vld [vmem:[#allocation5_spill] sm:$0xff] }
 0x2f5   : > { %v2191_v7 = vmul.f32 -0.001358992, %v2190_v55  ;;  %v2198_v10 = vmul.f32 -0.00019511016, %v2190_v55  ;;  %v1900_v50 = vxor.u32 2147483648, %v7184_v48  ;;  %v2680_v22 = vsel %vm2673_vm6, %v2676_v9, %v2679_v45 }
 0x2f6   : > { %v2895_v52 = vmul.f32 %v6605_v58, %v2061_v32  ;;  %vm1899_vm0 = vcmp.eq.s32.totalorder %v6560_v42, 0  ;;  %v2815_v12 = vmul.f32 %v2814_v29, %v5677_v35  ;;  %v1903_v8 = vxor.u32 2147483648, %v1886_v44 }
 0x2f7   : > { %v2192_v23 = vadd.f32 0.041655596, %v2191_v7  ;;  %v2199_v61 = vadd.f32 0.008332121, %v2198_v10  ;;  %v2189_v62 = vsel %vm6577_vm12, 0, %v2187_v28  ;;  %vm2670_vm11 = vweird.f32 %v7185_v37 }
 0x2f8   : > { %v2904_v33 = vadd.f32 %v6541_v49, %v2893_v15  ;;  %v2506_v47 = vadd.f32 1.0, %v2505_v18  ;;  %v2681_v17 = vsel %vm2670_vm11, nan, %v2680_v22  ;;  %v2520_v3 = vxor.u32 2147483648, %v2514_v53  ;;  %v7190_v18 = vld [vmem:[#allocation13_spill] sm:$0xff] }
 0x2f9   : > { %v2193_v46 = vmul.f32 %v2192_v23, %v2190_v55  ;;  %v2200_v43 = vmul.f32 %v2199_v61, %v2190_v55  ;;  %v1901_v2 = vsel %vm1899_vm0, %v1886_v44, %v1900_v50  ;;  %vm1902_vm10 = vcmp.eq.s32.totalorder %v6560_v42, 2 }
 0x2fa   : > { %v2905_v5 = vadd.f32 %v2904_v33, %v2895_v52  ;;  %v2206_v57 = vadd.s32 3, %v2189_v62  ;;  %v2816_v20 = vadd.f32 1.0, %v2815_v12  ;;  %v2897_v21 = vmul.f32 %v2878_v4, %v6549_v40 }
 0x2fb   : > { %v2194_v35 = vadd.f32 -0.4999988, %v2193_v46  ;;  %v2201_v39 = vadd.f32 -0.16666654, %v2200_v43  ;;  %vm1898_vm5 = vcmp.lt.s32.totalorder %v6560_v42, 2  ;;  %v1904_v49 = vsel %vm1902_vm10, %v1903_v8, %v7184_v48  ;;  %v7191_v48 = vld [vmem:[#allocation58_spill] sm:$0xff] }
 0x2fc   : > { %v2899_v11 = vmul.f32 %v2883_v34, %v2681_v17  ;;  %v2523_v41 = vxor.u32 2147483648, %v2506_v47  ;;  %v1905_v14 = vsel %vm1898_vm5, %v1901_v2, %v1904_v49  ;;  %vm2518_vm9 = vcmp.lt.s32.totalorder %v6545_v25, 2 }
 0x2fd   : > { %v2195_v51 = vmul.f32 %v2194_v35, %v2190_v55  ;;  %v2202_v59 = vmul.f32 %v2201_v39, %v2190_v55  ;;  %v2521_v30 = vsel %vm2519_vm8, %v2506_v47, %v2520_v3  ;;  %vm1895_vm4 = vweird.f32 %v7186_v36  ;;  %v2931_v47 = vpop.permute.xlu0 %2930  ;;  %v2944_v39 = vpop.permute.xlu1 %2943 }
 0x2fe   : > { %v2906_v16 = vadd.f32 %v2905_v5, %v2897_v21  ;;  %v2207_v40 = vand.u32 3, %v2206_v57  ;;  %v2833_v54 = vxor.u32 2147483648, %v2816_v20  ;;  %vm2522_vm2 = vcmp.eq.s32.totalorder %v6545_v25, 2 }
 0x2ff   : > { %v2196_v44 = vadd.f32 1.0, %v2195_v51  ;;  %v2203_v0 = vadd.f32 1.0, %v2202_v59  ;;  %v1906_v42 = vsel %vm1895_vm4, nan, %v1905_v14  ;;  %vm2829_vm15 = vcmp.eq.s32.totalorder %v7187_v38, 0 }
 0x300   : > { %v2907_v32 = vadd.f32 %v2906_v16, %v2899_v11  ;;  %v2524_v31 = vsel %vm2522_vm2, %v2523_v41, %v2514_v53  ;;  %v7189_v9 = vxor.u32 2147483648, %v7188_v27  ;;  %v2892_v29 = vmul.f32 %v6435_v13, %v6451_v60 }
 0x301   : > { %v2204_v55 = vmul.f32 %v2203_v0, %v6591_v24  ;;  %v2213_v1 = vxor.u32 2147483648, %v2196_v44  ;;  %v2915_v28 = vadd.f32 %v7190_v18, %v6538_v63  ;;  %v2525_v15 = vsel %vm2518_vm9, %v2521_v30, %v2524_v31 }
 0x302   : > { %v2831_v19 = vsel %vm2829_vm15, %v2816_v20, %v7189_v9  ;;  %vm2832_vm3 = vcmp.eq.s32.totalorder %v7187_v38, 2  ;;  %vm2209_vm14 = vcmp.eq.s32.totalorder %v2207_v40, 0  ;;  %vm2828_vm1 = vcmp.lt.s32.totalorder %v7187_v38, 2 }
 0x303   : > { %v2210_v7 = vxor.u32 2147483648, %v2204_v55  ;;  %v2834_v24 = vsel %vm2832_vm3, %v2833_v54, %v7188_v27  ;;  %vm2212_vm12 = vcmp.eq.s32.totalorder %v2207_v40, 2  ;;  %v2894_v45 = vmul.f32 %v6582_v6, %v1906_v42 }
 0x304   : > { %v2835_v10 = vsel %vm2828_vm1, %v2831_v19, %v2834_v24  ;;  %v2908_v53 = vrot.slane %v2907_v32, 4  ;;  %vm2515_vm7 = vweird.f32 %v7117_v56  ;;  %vm2208_vm13 = vcmp.lt.s32.totalorder %v2207_v40, 2 }
 0x305   : > { %v2211_v13 = vsel %vm2209_vm14, %v2196_v44, %v2210_v7  ;;  %v2214_v60 = vsel %vm2212_vm12, %v2213_v1, %v2204_v55  ;;  %v2916_v63 = vadd.f32 %v2915_v28, %v2892_v29  ;;  %vm2205_vm8 = vweird.f32 %v7150_v26 }
 0x306   : > { %v2215_v25 = vsel %vm2208_vm13, %v2211_v13, %v2214_v60  ;;  %vm2825_vm6 = vweird.f32 %v7191_v48  ;;  %v2526_v50 = vsel %vm2515_vm7, nan, %v2525_v15  ;;  %v2909_v6 = vadd.f32 %v2908_v53, %v2907_v32 }
 0x307   : > { %v2216_v22 = vsel %vm2205_vm8, nan, %v2215_v25  ;;  %v2836_v52 = vsel %vm2825_vm6, nan, %v2835_v10  ;;  %v2917_v61 = vadd.f32 %v2916_v63, %v2894_v45  ;;  %v2898_v12 = vmul.f32 %v2878_v4, %v2526_v50 }
 0x308   : > { %v2896_v23 = vmul.f32 %v6605_v58, %v2216_v22  ;;  %v2900_v56 = vmul.f32 %v2883_v34, %v2836_v52  ;;  %v2910_v37 = vrot.slane %v2909_v6, 2  ;;  %v2933_v43 = vperm.slane %v2931_v47, 0  ;;  %v3143_v58 = vld [vmem:[%s3382_s11] sm:$0x3] }
 0x309   : > { %v2946_v49 = vperm.slane %v2944_v39, 0  ;;  %v2955_v14 = vlaneseq  ;;  %vm2952_vm0 = vcmask 1040384  }
 0x30a   : > { %v2918_v8 = vadd.f32 %v2917_v61, %v2896_v23  ;;  %v2911_v46 = vadd.f32 %v2910_v37, %v2909_v6  ;;  %v2934_v5 = vmul.f32 %v3143_v58, %v2933_v43 }
 0x30b   : > { %vm2957_vm11 = vcmp.lt.s32.totalorder %v2955_v14, 256 }
 0x30c   : > { %v2919_v62 = vadd.f32 %v2918_v8, %v2898_v12  ;;  %v2912_v3 = vrot.slane %v2911_v46, 1  ;;  %v2936_v34 = vperm.slane %v2934_v5, 0  ;;  %v2937_v20 = vperm.slane %v2934_v5, 1 }
 0x30e   : > { %v2920_v33 = vadd.f32 %v2919_v62, %v2900_v56  ;;  %v2913_v57 = vadd.f32 %v2912_v3, %v2911_v46 }
 0x310   : > { %v2921_v26 = vrot.slane %v2920_v33, 4  ;;  %v2940_v11 = vadd.f32 %v2936_v34, %v2913_v57 }
 0x312   : > { %v2922_v17 = vadd.f32 %v2921_v26, %v2920_v33  ;;  %v2947_v59 = vadd.f32 %v2946_v49, %v2940_v11 }
 0x314   : > { %v2923_v2 = vrot.slane %v2922_v17, 2 }
 0x316   : > { %v2924_v35 = vadd.f32 %v2923_v2, %v2922_v17 }
 0x318   : > { %v2925_v4 = vrot.slane %v2924_v35, 1 }
 0x31a   : > { %v2926_v21 = vadd.f32 %v2925_v4, %v2924_v35 }
 0x31c   : > { %v2941_v41 = vadd.f32 %v2937_v20, %v2926_v21 }
 0x31e   : > { %v2948_v51 = vadd.f32 %v2946_v49, %v2941_v41 }
 0x320   : > { %v2951_v30 = vrot.slane %v2948_v51, 7 }
 0x322   : > { %v2953_v36 = vsel %vm2952_vm0, %v2947_v59, %v2951_v30 }
 0x323   : > { %2959 = vst.msk [vmem:[%s216_s23] sm:$0x3] %vm2957_vm11, %v2953_v36 }
 0x324   : > { %3171 = shalt.err (!%p3168_p3)
}
 0x325   : > { %3090 = dma.vmem_to_hbm [thread:$0]  (%p3283_p5), %s2974_s25, 32, %s2976_s26, %s2961_s30  }
 0x326 PF: > { %p3096_p4 = scmp.ge.s32.totalorder %s3206_s21, 2  ;;  %s2987_s12 = sand.u32 1, %s3194_s18  }
 0x327   : > { %s2988_s13 = scalar_lea.sflag [#allocation3], %s2987_s12 }
 0x328   : > { %p3093_p7 = pnand %p3096_p4, %p3287_p6 }
 0x32a   : > { %p3094_p8 = pneg %p3093_p7 }
 0x32c   : > { %3189 = dma.done.wait (%p3094_p8), %s2988_s13, 32  }
 0x32d   : > { %3191 = vsyncadd (%p3094_p8), %s2988_s13, 4294967264  ;;  %p15_p9 = scmp.ge.s32.totalorder %s3269_s24, 4   ;;  %s7192_s18 = smov %s3198_s19 }
 0x32e   : > { %s7193_s19 = smov %s3202_s20  ;;  %s7194_s20 = smov %s3281_s27 }
 0x32f   : > { %s7195_s21 = smov %s3269_s24  ;;  %17 = sbr.rel (!%p15_p9) target bundleno = 3 (0x3), region = 75 }
 0x334   :  { %2994 = vsyncpa [#allocation3], 1 }
 0x335   :  { %2996 = vsyncpa [#allocation3 + $0x1], 1 }

</bundles_post_ra>
